<compile_context>
chip_gen: v6e
topology: v6e:2x2x1
jax: 0.10.0
libtpu: 0.0.40
codegen_flags: <defaults>
</compile_context>

<pallas_src>
import functools
import math

import jax
import jax.numpy as jnp
from jax.experimental import pallas as pl
from jax.experimental.pallas import tpu as pltpu


# ----------------------------------------------------------------------------
# Numerics helpers (pure jnp: usable inside Pallas kernels and in the plain-JAX
# reference used for the in-script correctness check).
# ----------------------------------------------------------------------------
def _layernorm(x, w, b, eps=1e-5):
    mu = jnp.mean(x, axis=-1, keepdims=True)
    xc = x - mu
    var = jnp.mean(xc * xc, axis=-1, keepdims=True)
    return xc * jax.lax.rsqrt(var + eps) * w + b


def _gelu(x):
    # PyTorch nn.GELU() default: exact erf formulation.
    return 0.5 * x * (1.0 + jax.lax.erf(x * (1.0 / math.sqrt(2.0))))


# ----------------------------------------------------------------------------
# Single fused kernel: embed -> +PE -> joint relation -> depth x encoder -> head
# for BT examples at a time.  Internal token order per grid step:
#   rows [0, BT*J)        : joint tokens, example-major / joint-minor
#   rows [BT*J, BT*(J+1)) : one CLS token per example (stored LAST)
# Attention is permutation invariant and the PE rows are assigned consistently,
# so this is mathematically identical to the PyTorch ordering [CLS, joints...].
# ----------------------------------------------------------------------------
def fused_vit_kernel(x_ref, emb_ref, vec_ref, wqkv_ref, bqkv_ref, wo_ref,
                     w1_ref, b1_ref, w2_ref, head_ref, o_ref,
                     *, num_heads, depth, num_joints, block_batch):
    BT = block_batch
    J = num_joints
    H = num_heads
    MJ = BT * J                       # joint-token rows
    M = MJ + BT                       # + one CLS row per example
    E = vec_ref.shape[1]
    dh = E // H
    scale = 1.0 / math.sqrt(dh)

    # Block-diagonal attention mask over the folded token stream: tokens only
    # attend within their own example.  Joint token t (< MJ) belongs to example
    # floor(t / J); CLS token t (>= MJ) belongs to example t - MJ.  The float
    # floor((t + .5) / J) is exact at these magnitudes and avoids integer
    # division on the VPU.
    ri = jax.lax.broadcasted_iota(jnp.int32, (M, M), 0).astype(jnp.float32)
    ci = jax.lax.broadcasted_iota(jnp.int32, (M, M), 1).astype(jnp.float32)

    def example_id(t):
        return jnp.where(t < MJ, jnp.floor((t + 0.5) * (1.0 / J)), t - MJ)

    mask = jnp.where(example_id(ri) == example_id(ci), 0.0, -1e30)

    # Patch embedding + positional encoding fused into ONE matmul:
    # x_ref rows are [keypoint coords | one-hot joint id]; emb_ref rows are
    # [W_proj ; pe[1:] + b_proj], so `proj` already contains projection + bias
    # + per-joint PE.  (Dropout = identity in eval mode.)
    proj = jnp.dot(x_ref[...], emb_ref[...],
                   preferred_element_type=jnp.float32)           # (MJ, E)
    cls_rows = jnp.broadcast_to(vec_ref[0:1, :], (BT, E))        # cls_token + pe[0]
    x = jnp.concatenate([proj, cls_rows], axis=0)                # (M, E)

    def mha(xin, wqkv, bqkv, wo, bo):
        # Fused QKV projection: one lane-dense (M,E)x(E,3E) matmul.
        qkv = jnp.dot(xin, wqkv, preferred_element_type=jnp.float32) + bqkv  # (M, 3E)
        heads = []
        for h in range(H):                        # H=4: short static unroll
            qh = qkv[:, h * dh:(h + 1) * dh]
            kh = qkv[:, E + h * dh:E + (h + 1) * dh]
            vh = qkv[:, 2 * E + h * dh:2 * E + (h + 1) * dh]
            s = jnp.einsum("md,nd->mn", qh, kh,
                           preferred_element_type=jnp.float32) * scale + mask
            mrow = jnp.max(s, axis=-1, keepdims=True)
            p = jnp.exp(s - mrow)
            denom = jnp.sum(p, axis=-1, keepdims=True)
            a = p * pl.reciprocal(denom, approx=True)            # EUP slot
            heads.append(jnp.dot(a, vh, preferred_element_type=jnp.float32))
        ctx = jnp.concatenate(heads, axis=-1)                    # (M, E)
        # Single output projection, Wo kept in its natural (E, E) layout.
        return jnp.dot(ctx, wo, preferred_element_type=jnp.float32) + bo

    # TODO(synk): JointRelationAttention source was not provided; a residual
    # multi-head self-attention over the S = J+1 tokens is assumed.
    x = x + mha(x, wqkv_ref[0], bqkv_ref[0:1, :], wo_ref[0], vec_ref[1:2, :])

    # TODO(synk): TransformerEncoderLayer source was not provided; pre-norm
    # (x + MHA(LN(x)); x + MLP(LN(x))) with a GELU MLP is assumed.
    # depth=2: static unroll is fine; switch to lax.fori_loop + dynamic ref[l]
    # indexing for much deeper configs.
    for l in range(depth):
        base = 4 + 6 * l
        ln1_w = vec_ref[base + 0:base + 1, :]
        ln1_b = vec_ref[base + 1:base + 2, :]
        bo_l = vec_ref[base + 2:base + 3, :]
        ln2_w = vec_ref[base + 3:base + 4, :]
        ln2_b = vec_ref[base + 4:base + 5, :]
        b2_l = vec_ref[base + 5:base + 6, :]

        h1 = _layernorm(x, ln1_w, ln1_b)
        x = x + mha(h1, wqkv_ref[l + 1], bqkv_ref[l + 1:l + 2, :],
                    wo_ref[l + 1], bo_l)
        h2 = _layernorm(x, ln2_w, ln2_b)
        m1 = _gelu(jnp.dot(h2, w1_ref[l], preferred_element_type=jnp.float32)
                   + b1_ref[l:l + 1, :])
        x = x + jnp.dot(m1, w2_ref[l], preferred_element_type=jnp.float32) + b2_l

    # Final LayerNorm + per-token head on the joint rows only (use_cls_token=
    # False -> torch drops x[:, 0]; here the CLS rows, stored last, are unread).
    hj = _layernorm(x[0:MJ, :], vec_ref[2:3, :], vec_ref[3:4, :])
    o_ref[...] = (jnp.dot(hj, head_ref[0:E, :], preferred_element_type=jnp.float32)
                  + head_ref[E:E + 1, :])


# ----------------------------------------------------------------------------
# Wrapper: batch folding, one-hot PE augmentation, BlockSpecs.
# ----------------------------------------------------------------------------
def keypoint_vit_forward(x, packed, *, num_heads, depth, block_batch=None):
    B, J, Din = x.shape
    Dout = packed["head_wb"].shape[1]

    # Batch folding: BT examples per grid step amortizes the fixed per-step
    # cost; keep >= 2 grid steps whenever B >= 2 so the parallel batch axis can
    # shard across v7x's two TensorCores.
    if block_batch is None:
        block_batch = min(8, pl.cdiv(B, 2)) if B > 1 else 1
    BT = max(1, block_batch)
    G = pl.cdiv(B, BT)
    Bp = G * BT

    xp = x if Bp == B else jnp.concatenate(
        [x, jnp.zeros((Bp - B, J, Din), x.dtype)], axis=0)
    # Augment every token row with a one-hot joint id so the kernel's single
    # embed matmul also applies the per-joint PE + projection bias.
    xf = xp.reshape(Bp * J, Din)
    onehot = jnp.tile(jnp.eye(J, dtype=xf.dtype), (Bp, 1))       # (Bp*J, J)
    x_aug = jnp.concatenate([xf, onehot], axis=1)                # (Bp*J, Din+J)

    weight_order = ["emb_w", "vecs", "wqkv", "bqkv", "wo", "w1", "b1", "w2",
                    "head_wb"]
    weights = [packed[k] for k in weight_order]

    def rep(a):
        nd = a.ndim
        return pl.BlockSpec(a.shape, lambda i, _nd=nd: (0,) * _nd)

    kern = functools.partial(fused_vit_kernel, num_heads=num_heads, depth=depth,
                             num_joints=J, block_batch=BT)
    out = pl.pallas_call(
        kern,
        out_shape=jax.ShapeDtypeStruct((Bp * J, Dout), jnp.float32),
        grid=(G,),
        in_specs=[pl.BlockSpec((BT * J, Din + J), lambda i: (i, 0))]
                 + [rep(a) for a in weights],
        out_specs=pl.BlockSpec((BT * J, Dout), lambda i: (i, 0)),
        compiler_params=pltpu.CompilerParams(
            dimension_semantics=("parallel",)),
    )(x_aug, *weights)
    return out.reshape(Bp, J, Dout)[:B]


# ----------------------------------------------------------------------------
# Deterministic parameter construction (PyTorch-layout "natural" params) and the
# one-time host-side repacking into the consolidated kernel layout.
# ----------------------------------------------------------------------------
def sinusoidal_pe(max_len, d_model):
    pos = jnp.arange(max_len, dtype=jnp.float32)[:, None]
    div = jnp.exp(jnp.arange(0, d_model, 2, dtype=jnp.float32)
                  * (-math.log(10000.0) / d_model))
    pe = jnp.zeros((max_len, d_model), jnp.float32)
    pe = pe.at[:, 0::2].set(jnp.sin(pos * div))
    pe = pe.at[:, 1::2].set(jnp.cos(pos * div))
    return pe


def init_natural_params(key, J, Din, Dout, E, depth, mlp_ratio):
    S = J + 1
    Hd = mlp_ratio * E
    keys = iter(jax.random.split(key, 128))

    def w(shape, scale=0.02):
        return scale * jax.random.normal(next(keys), shape, jnp.float32)

    def attn_params():
        return {
            "wq": w((E, E)), "bq": w((1, E)),
            "wk": w((E, E)), "bk": w((1, E)),
            "wv": w((E, E)), "bv": w((1, E)),
            "wo": w((E, E)), "bo": w((1, E)),
        }

    nat = {
        "embed_w": w((Din, E)),
        "embed_b": w((1, E)),
        "cls": w((1, E), scale=1.0),          # torch.randn cls token
        "pe": sinusoidal_pe(S, E),
        "jr": attn_params(),
        "blocks": [],
        "norm_w": jnp.ones((1, E), jnp.float32),
        "norm_b": jnp.zeros((1, E), jnp.float32),
        "head_w": w((E, Dout)),
        "head_b": w((1, Dout)),
    }
    for _ in range(depth):
        blk = attn_params()
        blk.update({
            "ln1_w": jnp.ones((1, E), jnp.float32), "ln1_b": w((1, E)),
            "ln2_w": jnp.ones((1, E), jnp.float32), "ln2_b": w((1, E)),
            "w1": w((E, Hd)), "b1": w((1, Hd)),
            "w2": w((Hd, E)), "b2": w((1, E)),
        })
        nat["blocks"].append(blk)
    return nat


def pack_params(nat):
    def fuse_qkv(p):
        wmat = jnp.concatenate([p["wq"], p["wk"], p["wv"]], axis=1)   # (E, 3E)
        bvec = jnp.concatenate([p["bq"], p["bk"], p["bv"]], axis=1)   # (1, 3E)
        return wmat, bvec

    jr_w, jr_b = fuse_qkv(nat["jr"])
    blk = [fuse_qkv(b) for b in nat["blocks"]]

    vec_rows = [nat["cls"] + nat["pe"][0:1, :],      # row 0: cls_token + pe[0]
                nat["jr"]["bo"],                     # row 1: joint-relation out bias
                nat["norm_w"], nat["norm_b"]]        # rows 2,3: final LayerNorm
    for b in nat["blocks"]:                          # 6 rows per layer
        vec_rows += [b["ln1_w"], b["ln1_b"], b["bo"],
                     b["ln2_w"], b["ln2_b"], b["b2"]]

    return {
        # [W_proj ; pe[1:] + b_proj]: PE + embed bias folded into one matmul.
        "emb_w": jnp.concatenate(
            [nat["embed_w"], nat["pe"][1:, :] + nat["embed_b"]], axis=0),
        "vecs": jnp.concatenate(vec_rows, axis=0),                         # (4+6d, E)
        "wqkv": jnp.stack([jr_w] + [w_ for w_, _ in blk], axis=0),         # (1+d, E, 3E)
        "bqkv": jnp.concatenate([jr_b] + [b_ for _, b_ in blk], axis=0),   # (1+d, 3E)
        "wo": jnp.stack([nat["jr"]["wo"]]
                        + [b["wo"] for b in nat["blocks"]], axis=0),       # (1+d, E, E)
        "w1": jnp.stack([b["w1"] for b in nat["blocks"]], axis=0),         # (d, E, Hd)
        "b1": jnp.concatenate([b["b1"] for b in nat["blocks"]], axis=0),   # (d, Hd)
        "w2": jnp.stack([b["w2"] for b in nat["blocks"]], axis=0),         # (d, Hd, E)
        "head_wb": jnp.concatenate([nat["head_w"], nat["head_b"]], axis=0),  # (E+1, Dout)
    }


# ----------------------------------------------------------------------------
# Pure-JAX (non-Pallas) reference of the same assumed semantics, CLS-first order.
# ----------------------------------------------------------------------------
def reference_forward(x, nat, num_heads):
    B, J, Din = x.shape
    E = nat["embed_w"].shape[1]
    H = num_heads
    dh = E // H

    proj = jnp.einsum("bjd,de->bje", x, nat["embed_w"]) + nat["embed_b"]
    cls = jnp.broadcast_to(nat["cls"][None], (B, 1, E))
    seq = jnp.concatenate([cls, proj], axis=1) + nat["pe"][None]       # (B, S, E)

    def mha(h, p):
        q = h @ p["wq"] + p["bq"]
        k = h @ p["wk"] + p["bk"]
        v = h @ p["wv"] + p["bv"]

        def split(t):
            return t.reshape(B, -1, H, dh).transpose(0, 2, 1, 3)       # (B, H, S, dh)

        qh, kh, vh = split(q), split(k), split(v)
        sc = jnp.einsum("bhsd,bhtd->bhst", qh, kh) / math.sqrt(dh)
        a = jax.nn.softmax(sc, axis=-1)
        ctx = jnp.einsum("bhst,bhtd->bhsd", a, vh)
        ctx = ctx.transpose(0, 2, 1, 3).reshape(B, -1, E)
        return ctx @ p["wo"] + p["bo"]

    h = seq + mha(seq, nat["jr"])                   # joint relation (assumed residual MHA)
    for blk in nat["blocks"]:
        n1 = _layernorm(h, blk["ln1_w"], blk["ln1_b"])
        h = h + mha(n1, blk)
        n2 = _layernorm(h, blk["ln2_w"], blk["ln2_b"])
        m = _gelu(n2 @ blk["w1"] + blk["b1"]) @ blk["w2"] + blk["b2"]
        h = h + m
    h = _layernorm(h, nat["norm_w"], nat["norm_b"])[:, 1:]
    return h @ nat["head_w"] + nat["head_b"]


if __name__ == "__main__":
    B, J, Din, Dout = 8, 8, 2, 3
    E, depth, num_heads, mlp_ratio = 32, 2, 4, 4

    root = jax.random.PRNGKey(0)
    k_params, k_x = jax.random.split(root)
    nat = init_natural_params(k_params, J, Din, Dout, E, depth, mlp_ratio)
    packed = pack_params(nat)
    x = jax.random.normal(k_x, (B, J, Din), jnp.float32)

    fwd = jax.jit(functools.partial(keypoint_vit_forward,
                                    num_heads=num_heads, depth=depth))
    out = jax.block_until_ready(fwd(x, packed))

    assert out.shape == (B, J, Dout), out.shape
    assert bool(jnp.all(jnp.isfinite(out)))

    ref = reference_forward(x, nat, num_heads)
    max_err = float(jnp.max(jnp.abs(out - ref)))
    assert max_err < 5e-2, f"kernel vs reference mismatch: max abs err {max_err}"

    print("KERNEL_OK")
</pallas_src>

<mosaic_0001>
module attributes {stable_mosaic.version = 11 : i64} {
  func.func @fused_vit_kernel(%arg0: i32, %arg1: memref<32x10xf32, #tpu.memory_space<vmem>>, %arg2: memref<10x32xf32, #tpu.memory_space<vmem>>, %arg3: memref<16x32xf32, #tpu.memory_space<vmem>>, %arg4: memref<3x32x96xf32, #tpu.memory_space<vmem>>, %arg5: memref<3x96xf32, #tpu.memory_space<vmem>>, %arg6: memref<3x32x32xf32, #tpu.memory_space<vmem>>, %arg7: memref<2x32x128xf32, #tpu.memory_space<vmem>>, %arg8: memref<2x128xf32, #tpu.memory_space<vmem>>, %arg9: memref<2x128x32xf32, #tpu.memory_space<vmem>>, %arg10: memref<33x3xf32, #tpu.memory_space<vmem>>, %arg11: memref<32x3xf32, #tpu.memory_space<vmem>>) attributes {dimension_semantics = [#tpu.dimension_semantics<parallel>], iteration_bounds = array<i64: 2>, scalar_prefetch = 0 : i64, scratch_operands = 0 : i64, tpu.core_type = #tpu.core_type<tc>, window_params = [{transform_indices = @transform_0, window_bounds = array<i64: 32, 10>}, {pipeline_mode = #tpu.pipeline_mode<synchronous>, transform_indices = @transform_1, window_bounds = array<i64: 10, 32>}, {pipeline_mode = #tpu.pipeline_mode<synchronous>, transform_indices = @transform_2, window_bounds = array<i64: 16, 32>}, {pipeline_mode = #tpu.pipeline_mode<synchronous>, transform_indices = @transform_3, window_bounds = array<i64: 3, 32, 96>}, {pipeline_mode = #tpu.pipeline_mode<synchronous>, transform_indices = @transform_4, window_bounds = array<i64: 3, 96>}, {pipeline_mode = #tpu.pipeline_mode<synchronous>, transform_indices = @transform_5, window_bounds = array<i64: 3, 32, 32>}, {pipeline_mode = #tpu.pipeline_mode<synchronous>, transform_indices = @transform_6, window_bounds = array<i64: 2, 32, 128>}, {pipeline_mode = #tpu.pipeline_mode<synchronous>, transform_indices = @transform_7, window_bounds = array<i64: 2, 128>}, {pipeline_mode = #tpu.pipeline_mode<synchronous>, transform_indices = @transform_8, window_bounds = array<i64: 2, 128, 32>}, {pipeline_mode = #tpu.pipeline_mode<synchronous>, transform_indices = @transform_9, window_bounds = array<i64: 33, 3>}, {transform_indices = @transform_10, window_bounds = array<i64: 32, 3>}]} {
    %0 = tpu.iota {dimensions = array<i32: 0>} : vector<36x36xi32>
    %1 = arith.sitofp %0 : vector<36x36xi32> to vector<36x36xf32>
    %2 = tpu.iota {dimensions = array<i32: 1>} : vector<36x36xi32>
    %3 = arith.sitofp %2 : vector<36x36xi32> to vector<36x36xf32>
    %cst = arith.constant 3.200000e+01 : f32
    %4 = vector.broadcast %cst : f32 to vector<36x36xf32>
    %5 = arith.cmpf olt, %1, %4 : vector<36x36xf32>
    %cst_0 = arith.constant 5.000000e-01 : f32
    %6 = vector.broadcast %cst_0 : f32 to vector<36x36xf32>
    %7 = arith.addf %1, %6 : vector<36x36xf32>
    %cst_1 = arith.constant 1.250000e-01 : f32
    %8 = vector.broadcast %cst_1 : f32 to vector<36x36xf32>
    %9 = arith.mulf %7, %8 : vector<36x36xf32>
    %10 = math.floor %9 : vector<36x36xf32>
    %cst_2 = arith.constant 3.200000e+01 : f32
    %11 = vector.broadcast %cst_2 : f32 to vector<36x36xf32>
    %12 = arith.subf %1, %11 : vector<36x36xf32>
    %13 = arith.select %5, %10, %12 : vector<36x36xi1>, vector<36x36xf32>
    %cst_3 = arith.constant 3.200000e+01 : f32
    %14 = vector.broadcast %cst_3 : f32 to vector<36x36xf32>
    %15 = arith.cmpf olt, %3, %14 : vector<36x36xf32>
    %cst_4 = arith.constant 5.000000e-01 : f32
    %16 = vector.broadcast %cst_4 : f32 to vector<36x36xf32>
    %17 = arith.addf %3, %16 : vector<36x36xf32>
    %cst_5 = arith.constant 1.250000e-01 : f32
    %18 = vector.broadcast %cst_5 : f32 to vector<36x36xf32>
    %19 = arith.mulf %17, %18 : vector<36x36xf32>
    %20 = math.floor %19 : vector<36x36xf32>
    %cst_6 = arith.constant 3.200000e+01 : f32
    %21 = vector.broadcast %cst_6 : f32 to vector<36x36xf32>
    %22 = arith.subf %3, %21 : vector<36x36xf32>
    %23 = arith.select %15, %20, %22 : vector<36x36xi1>, vector<36x36xf32>
    %24 = arith.cmpf oeq, %13, %23 : vector<36x36xf32>
    %cst_7 = arith.constant 0.000000e+00 : f32
    %cst_8 = arith.constant -1.000000e+30 : f32
    %25 = vector.broadcast %cst_7 : f32 to vector<36x36xf32>
    %26 = vector.broadcast %cst_8 : f32 to vector<36x36xf32>
    %27 = arith.select %24, %25, %26 : vector<36x36xi1>, vector<36x36xf32>
    %c0 = arith.constant 0 : index
    %c0_9 = arith.constant 0 : index
    %28 = vector.load %arg1[%c0, %c0_9] : memref<32x10xf32, #tpu.memory_space<vmem>>, vector<32x10xf32>
    %c0_10 = arith.constant 0 : index
    %c0_11 = arith.constant 0 : index
    %29 = vector.load %arg2[%c0_10, %c0_11] : memref<10x32xf32, #tpu.memory_space<vmem>>, vector<10x32xf32>
    %cst_12 = arith.constant dense<0.000000e+00> : vector<32x32xf32>
    %30 = tpu.matmul %28, %29, %cst_12 {dimension_numbers = #tpu.dot_dimension_numbers<[1], [0], [0], [1], [0, 0, 1, 1], [], []>} : vector<32x10xf32>, vector<10x32xf32>, vector<32x32xf32> -> vector<32x32xf32>
    %c0_13 = arith.constant 0 : index
    %c0_14 = arith.constant 0 : index
    %31 = vector.load %arg3[%c0_13, %c0_14] : memref<16x32xf32, #tpu.memory_space<vmem>>, vector<1x32xf32>
    %32 = vector.shape_cast %31 : vector<1x32xf32> to vector<1x32xf32>
    %33 = vector.broadcast %32 : vector<1x32xf32> to vector<4x32xf32>
    %34 = tpu.concatenate %30, %33 in 0 : vector<32x32xf32>, vector<4x32xf32> -> vector<36x32xf32>
    %c0_15 = arith.constant 0 : index
    %c0_16 = arith.constant 0 : index
    %c0_17 = arith.constant 0 : index
    %35 = vector.load %arg4[%c0_15, %c0_16, %c0_17] : memref<3x32x96xf32, #tpu.memory_space<vmem>>, vector<1x32x96xf32>
    %36 = vector.shape_cast %35 : vector<1x32x96xf32> to vector<32x96xf32>
    %c0_18 = arith.constant 0 : index
    %c0_19 = arith.constant 0 : index
    %37 = vector.load %arg5[%c0_18, %c0_19] : memref<3x96xf32, #tpu.memory_space<vmem>>, vector<1x96xf32>
    %c0_20 = arith.constant 0 : index
    %c0_21 = arith.constant 0 : index
    %c0_22 = arith.constant 0 : index
    %38 = vector.load %arg6[%c0_20, %c0_21, %c0_22] : memref<3x32x32xf32, #tpu.memory_space<vmem>>, vector<1x32x32xf32>
    %39 = vector.shape_cast %38 : vector<1x32x32xf32> to vector<32x32xf32>
    %c1 = arith.constant 1 : index
    %c0_23 = arith.constant 0 : index
    %40 = vector.load %arg3[%c1, %c0_23] : memref<16x32xf32, #tpu.memory_space<vmem>>, vector<1x32xf32>
    %cst_24 = arith.constant dense<0.000000e+00> : vector<36x96xf32>
    %41 = tpu.matmul %34, %36, %cst_24 {dimension_numbers = #tpu.dot_dimension_numbers<[1], [0], [0], [1], [0, 0, 1, 1], [], []>} : vector<36x32xf32>, vector<32x96xf32>, vector<36x96xf32> -> vector<36x96xf32>
    %42 = vector.broadcast %37 : vector<1x96xf32> to vector<36x96xf32>
    %43 = arith.addf %41, %42 : vector<36x96xf32>
    %44 = vector.extract_strided_slice %43 {offsets = [0, 0], sizes = [36, 8], strides = [1, 1]} : vector<36x96xf32> to vector<36x8xf32>
    %45 = vector.extract_strided_slice %43 {offsets = [0, 32], sizes = [36, 8], strides = [1, 1]} : vector<36x96xf32> to vector<36x8xf32>
    %46 = vector.extract_strided_slice %43 {offsets = [0, 64], sizes = [36, 8], strides = [1, 1]} : vector<36x96xf32> to vector<36x8xf32>
    "tpu.trace_start"() <{level = 10 : i32, message = "md,nd->mn"}> : () -> ()
    %cst_25 = arith.constant dense<0.000000e+00> : vector<36x36xf32>
    %47 = tpu.matmul %44, %45, %cst_25 {dimension_numbers = #tpu.dot_dimension_numbers<[1], [1], [0], [0], [0, 0, 1, 0], [], []>} : vector<36x8xf32>, vector<36x8xf32>, vector<36x36xf32> -> vector<36x36xf32>
    "tpu.trace_stop"() : () -> ()
    %cst_26 = arith.constant 0.353553385 : f32
    %48 = vector.broadcast %cst_26 : f32 to vector<36x36xf32>
    %49 = arith.mulf %47, %48 : vector<36x36xf32>
    %50 = arith.addf %49, %27 : vector<36x36xf32>
    %cst_27 = arith.constant dense<0xFF800000> : vector<36xf32>
    %51 = vector.multi_reduction <maximumf>, %50, %cst_27 [1] : vector<36x36xf32> to vector<36xf32>
    %52 = vector.shape_cast %51 : vector<36xf32> to vector<36x1xf32>
    %53 = vector.broadcast %52 : vector<36x1xf32> to vector<36x36xf32>
    %54 = arith.subf %50, %53 : vector<36x36xf32>
    %55 = math.exp %54 : vector<36x36xf32>
    %cst_28 = arith.constant dense<0.000000e+00> : vector<36xf32>
    %56 = vector.multi_reduction <add>, %55, %cst_28 [1] : vector<36x36xf32> to vector<36xf32>
    %57 = vector.shape_cast %56 : vector<36xf32> to vector<36x1xf32>
    %58 = tpu.reciprocal %57 {approx = true} : vector<36x1xf32> -> vector<36x1xf32>
    %59 = vector.broadcast %58 : vector<36x1xf32> to vector<36x36xf32>
    %60 = arith.mulf %55, %59 : vector<36x36xf32>
    %cst_29 = arith.constant dense<0.000000e+00> : vector<36x8xf32>
    %61 = tpu.matmul %60, %46, %cst_29 {dimension_numbers = #tpu.dot_dimension_numbers<[1], [0], [0], [1], [0, 0, 1, 1], [], []>} : vector<36x36xf32>, vector<36x8xf32>, vector<36x8xf32> -> vector<36x8xf32>
    %62 = vector.extract_strided_slice %43 {offsets = [0, 8], sizes = [36, 8], strides = [1, 1]} : vector<36x96xf32> to vector<36x8xf32>
    %63 = vector.extract_strided_slice %43 {offsets = [0, 40], sizes = [36, 8], strides = [1, 1]} : vector<36x96xf32> to vector<36x8xf32>
    %64 = vector.extract_strided_slice %43 {offsets = [0, 72], sizes = [36, 8], strides = [1, 1]} : vector<36x96xf32> to vector<36x8xf32>
    "tpu.trace_start"() <{level = 10 : i32, message = "md,nd->mn"}> : () -> ()
    %cst_30 = arith.constant dense<0.000000e+00> : vector<36x36xf32>
    %65 = tpu.matmul %62, %63, %cst_30 {dimension_numbers = #tpu.dot_dimension_numbers<[1], [1], [0], [0], [0, 0, 1, 0], [], []>} : vector<36x8xf32>, vector<36x8xf32>, vector<36x36xf32> -> vector<36x36xf32>
    "tpu.trace_stop"() : () -> ()
    %cst_31 = arith.constant 0.353553385 : f32
    %66 = vector.broadcast %cst_31 : f32 to vector<36x36xf32>
    %67 = arith.mulf %65, %66 : vector<36x36xf32>
    %68 = arith.addf %67, %27 : vector<36x36xf32>
    %cst_32 = arith.constant dense<0xFF800000> : vector<36xf32>
    %69 = vector.multi_reduction <maximumf>, %68, %cst_32 [1] : vector<36x36xf32> to vector<36xf32>
    %70 = vector.shape_cast %69 : vector<36xf32> to vector<36x1xf32>
    %71 = vector.broadcast %70 : vector<36x1xf32> to vector<36x36xf32>
    %72 = arith.subf %68, %71 : vector<36x36xf32>
    %73 = math.exp %72 : vector<36x36xf32>
    %cst_33 = arith.constant dense<0.000000e+00> : vector<36xf32>
    %74 = vector.multi_reduction <add>, %73, %cst_33 [1] : vector<36x36xf32> to vector<36xf32>
    %75 = vector.shape_cast %74 : vector<36xf32> to vector<36x1xf32>
    %76 = tpu.reciprocal %75 {approx = true} : vector<36x1xf32> -> vector<36x1xf32>
    %77 = vector.broadcast %76 : vector<36x1xf32> to vector<36x36xf32>
    %78 = arith.mulf %73, %77 : vector<36x36xf32>
    %cst_34 = arith.constant dense<0.000000e+00> : vector<36x8xf32>
    %79 = tpu.matmul %78, %64, %cst_34 {dimension_numbers = #tpu.dot_dimension_numbers<[1], [0], [0], [1], [0, 0, 1, 1], [], []>} : vector<36x36xf32>, vector<36x8xf32>, vector<36x8xf32> -> vector<36x8xf32>
    %80 = vector.extract_strided_slice %43 {offsets = [0, 16], sizes = [36, 8], strides = [1, 1]} : vector<36x96xf32> to vector<36x8xf32>
    %81 = vector.extract_strided_slice %43 {offsets = [0, 48], sizes = [36, 8], strides = [1, 1]} : vector<36x96xf32> to vector<36x8xf32>
    %82 = vector.extract_strided_slice %43 {offsets = [0, 80], sizes = [36, 8], strides = [1, 1]} : vector<36x96xf32> to vector<36x8xf32>
    "tpu.trace_start"() <{level = 10 : i32, message = "md,nd->mn"}> : () -> ()
    %cst_35 = arith.constant dense<0.000000e+00> : vector<36x36xf32>
    %83 = tpu.matmul %80, %81, %cst_35 {dimension_numbers = #tpu.dot_dimension_numbers<[1], [1], [0], [0], [0, 0, 1, 0], [], []>} : vector<36x8xf32>, vector<36x8xf32>, vector<36x36xf32> -> vector<36x36xf32>
    "tpu.trace_stop"() : () -> ()
    %cst_36 = arith.constant 0.353553385 : f32
    %84 = vector.broadcast %cst_36 : f32 to vector<36x36xf32>
    %85 = arith.mulf %83, %84 : vector<36x36xf32>
    %86 = arith.addf %85, %27 : vector<36x36xf32>
    %cst_37 = arith.constant dense<0xFF800000> : vector<36xf32>
    %87 = vector.multi_reduction <maximumf>, %86, %cst_37 [1] : vector<36x36xf32> to vector<36xf32>
    %88 = vector.shape_cast %87 : vector<36xf32> to vector<36x1xf32>
    %89 = vector.broadcast %88 : vector<36x1xf32> to vector<36x36xf32>
    %90 = arith.subf %86, %89 : vector<36x36xf32>
    %91 = math.exp %90 : vector<36x36xf32>
    %cst_38 = arith.constant dense<0.000000e+00> : vector<36xf32>
    %92 = vector.multi_reduction <add>, %91, %cst_38 [1] : vector<36x36xf32> to vector<36xf32>
    %93 = vector.shape_cast %92 : vector<36xf32> to vector<36x1xf32>
    %94 = tpu.reciprocal %93 {approx = true} : vector<36x1xf32> -> vector<36x1xf32>
    %95 = vector.broadcast %94 : vector<36x1xf32> to vector<36x36xf32>
    %96 = arith.mulf %91, %95 : vector<36x36xf32>
    %cst_39 = arith.constant dense<0.000000e+00> : vector<36x8xf32>
    %97 = tpu.matmul %96, %82, %cst_39 {dimension_numbers = #tpu.dot_dimension_numbers<[1], [0], [0], [1], [0, 0, 1, 1], [], []>} : vector<36x36xf32>, vector<36x8xf32>, vector<36x8xf32> -> vector<36x8xf32>
    %98 = vector.extract_strided_slice %43 {offsets = [0, 24], sizes = [36, 8], strides = [1, 1]} : vector<36x96xf32> to vector<36x8xf32>
    %99 = vector.extract_strided_slice %43 {offsets = [0, 56], sizes = [36, 8], strides = [1, 1]} : vector<36x96xf32> to vector<36x8xf32>
    %100 = vector.extract_strided_slice %43 {offsets = [0, 88], sizes = [36, 8], strides = [1, 1]} : vector<36x96xf32> to vector<36x8xf32>
    "tpu.trace_start"() <{level = 10 : i32, message = "md,nd->mn"}> : () -> ()
    %cst_40 = arith.constant dense<0.000000e+00> : vector<36x36xf32>
    %101 = tpu.matmul %98, %99, %cst_40 {dimension_numbers = #tpu.dot_dimension_numbers<[1], [1], [0], [0], [0, 0, 1, 0], [], []>} : vector<36x8xf32>, vector<36x8xf32>, vector<36x36xf32> -> vector<36x36xf32>
    "tpu.trace_stop"() : () -> ()
    %cst_41 = arith.constant 0.353553385 : f32
    %102 = vector.broadcast %cst_41 : f32 to vector<36x36xf32>
    %103 = arith.mulf %101, %102 : vector<36x36xf32>
    %104 = arith.addf %103, %27 : vector<36x36xf32>
    %cst_42 = arith.constant dense<0xFF800000> : vector<36xf32>
    %105 = vector.multi_reduction <maximumf>, %104, %cst_42 [1] : vector<36x36xf32> to vector<36xf32>
    %106 = vector.shape_cast %105 : vector<36xf32> to vector<36x1xf32>
    %107 = vector.broadcast %106 : vector<36x1xf32> to vector<36x36xf32>
    %108 = arith.subf %104, %107 : vector<36x36xf32>
    %109 = math.exp %108 : vector<36x36xf32>
    %cst_43 = arith.constant dense<0.000000e+00> : vector<36xf32>
    %110 = vector.multi_reduction <add>, %109, %cst_43 [1] : vector<36x36xf32> to vector<36xf32>
    %111 = vector.shape_cast %110 : vector<36xf32> to vector<36x1xf32>
    %112 = tpu.reciprocal %111 {approx = true} : vector<36x1xf32> -> vector<36x1xf32>
    %113 = vector.broadcast %112 : vector<36x1xf32> to vector<36x36xf32>
    %114 = arith.mulf %109, %113 : vector<36x36xf32>
    %cst_44 = arith.constant dense<0.000000e+00> : vector<36x8xf32>
    %115 = tpu.matmul %114, %100, %cst_44 {dimension_numbers = #tpu.dot_dimension_numbers<[1], [0], [0], [1], [0, 0, 1, 1], [], []>} : vector<36x36xf32>, vector<36x8xf32>, vector<36x8xf32> -> vector<36x8xf32>
    %116 = tpu.concatenate %61, %79, %97, %115 in 1 : vector<36x8xf32>, vector<36x8xf32>, vector<36x8xf32>, vector<36x8xf32> -> vector<36x32xf32>
    %cst_45 = arith.constant dense<0.000000e+00> : vector<36x32xf32>
    %117 = tpu.matmul %116, %39, %cst_45 {dimension_numbers = #tpu.dot_dimension_numbers<[1], [0], [0], [1], [0, 0, 1, 1], [], []>} : vector<36x32xf32>, vector<32x32xf32>, vector<36x32xf32> -> vector<36x32xf32>
    %118 = vector.broadcast %40 : vector<1x32xf32> to vector<36x32xf32>
    %119 = arith.addf %117, %118 : vector<36x32xf32>
    %120 = arith.addf %34, %119 : vector<36x32xf32>
    %c4 = arith.constant 4 : index
    %c0_46 = arith.constant 0 : index
    %121 = vector.load %arg3[%c4, %c0_46] : memref<16x32xf32, #tpu.memory_space<vmem>>, vector<1x32xf32>
    %c5 = arith.constant 5 : index
    %c0_47 = arith.constant 0 : index
    %122 = vector.load %arg3[%c5, %c0_47] : memref<16x32xf32, #tpu.memory_space<vmem>>, vector<1x32xf32>
    %c6 = arith.constant 6 : index
    %c0_48 = arith.constant 0 : index
    %123 = vector.load %arg3[%c6, %c0_48] : memref<16x32xf32, #tpu.memory_space<vmem>>, vector<1x32xf32>
    %c7 = arith.constant 7 : index
    %c0_49 = arith.constant 0 : index
    %124 = vector.load %arg3[%c7, %c0_49] : memref<16x32xf32, #tpu.memory_space<vmem>>, vector<1x32xf32>
    %c8 = arith.constant 8 : index
    %c0_50 = arith.constant 0 : index
    %125 = vector.load %arg3[%c8, %c0_50] : memref<16x32xf32, #tpu.memory_space<vmem>>, vector<1x32xf32>
    %c9 = arith.constant 9 : index
    %c0_51 = arith.constant 0 : index
    %126 = vector.load %arg3[%c9, %c0_51] : memref<16x32xf32, #tpu.memory_space<vmem>>, vector<1x32xf32>
    %cst_52 = arith.constant dense<0.000000e+00> : vector<36xf32>
    %127 = vector.multi_reduction <add>, %120, %cst_52 [1] : vector<36x32xf32> to vector<36xf32>
    %128 = vector.shape_cast %127 : vector<36xf32> to vector<36x1xf32>
    %cst_53 = arith.constant 3.200000e+01 : f32
    %129 = vector.broadcast %cst_53 : f32 to vector<36x1xf32>
    %130 = arith.divf %128, %129 : vector<36x1xf32>
    %131 = vector.broadcast %130 : vector<36x1xf32> to vector<36x32xf32>
    %132 = arith.subf %120, %131 : vector<36x32xf32>
    %133 = arith.mulf %132, %132 : vector<36x32xf32>
    %cst_54 = arith.constant dense<0.000000e+00> : vector<36xf32>
    %134 = vector.multi_reduction <add>, %133, %cst_54 [1] : vector<36x32xf32> to vector<36xf32>
    %135 = vector.shape_cast %134 : vector<36xf32> to vector<36x1xf32>
    %cst_55 = arith.constant 3.200000e+01 : f32
    %136 = vector.broadcast %cst_55 : f32 to vector<36x1xf32>
    %137 = arith.divf %135, %136 : vector<36x1xf32>
    %cst_56 = arith.constant 9.99999974E-6 : f32
    %138 = vector.broadcast %cst_56 : f32 to vector<36x1xf32>
    %139 = arith.addf %137, %138 : vector<36x1xf32>
    %140 = math.rsqrt %139 : vector<36x1xf32>
    %141 = vector.broadcast %140 : vector<36x1xf32> to vector<36x32xf32>
    %142 = arith.mulf %132, %141 : vector<36x32xf32>
    %143 = vector.broadcast %121 : vector<1x32xf32> to vector<36x32xf32>
    %144 = arith.mulf %142, %143 : vector<36x32xf32>
    %145 = vector.broadcast %122 : vector<1x32xf32> to vector<36x32xf32>
    %146 = arith.addf %144, %145 : vector<36x32xf32>
    %c1_57 = arith.constant 1 : index
    %c0_58 = arith.constant 0 : index
    %c0_59 = arith.constant 0 : index
    %147 = vector.load %arg4[%c1_57, %c0_58, %c0_59] : memref<3x32x96xf32, #tpu.memory_space<vmem>>, vector<1x32x96xf32>
    %148 = vector.shape_cast %147 : vector<1x32x96xf32> to vector<32x96xf32>
    %c1_60 = arith.constant 1 : index
    %c0_61 = arith.constant 0 : index
    %149 = vector.load %arg5[%c1_60, %c0_61] : memref<3x96xf32, #tpu.memory_space<vmem>>, vector<1x96xf32>
    %c1_62 = arith.constant 1 : index
    %c0_63 = arith.constant 0 : index
    %c0_64 = arith.constant 0 : index
    %150 = vector.load %arg6[%c1_62, %c0_63, %c0_64] : memref<3x32x32xf32, #tpu.memory_space<vmem>>, vector<1x32x32xf32>
    %151 = vector.shape_cast %150 : vector<1x32x32xf32> to vector<32x32xf32>
    %cst_65 = arith.constant dense<0.000000e+00> : vector<36x96xf32>
    %152 = tpu.matmul %146, %148, %cst_65 {dimension_numbers = #tpu.dot_dimension_numbers<[1], [0], [0], [1], [0, 0, 1, 1], [], []>} : vector<36x32xf32>, vector<32x96xf32>, vector<36x96xf32> -> vector<36x96xf32>
    %153 = vector.broadcast %149 : vector<1x96xf32> to vector<36x96xf32>
    %154 = arith.addf %152, %153 : vector<36x96xf32>
    %155 = vector.extract_strided_slice %154 {offsets = [0, 0], sizes = [36, 8], strides = [1, 1]} : vector<36x96xf32> to vector<36x8xf32>
    %156 = vector.extract_strided_slice %154 {offsets = [0, 32], sizes = [36, 8], strides = [1, 1]} : vector<36x96xf32> to vector<36x8xf32>
    %157 = vector.extract_strided_slice %154 {offsets = [0, 64], sizes = [36, 8], strides = [1, 1]} : vector<36x96xf32> to vector<36x8xf32>
    "tpu.trace_start"() <{level = 10 : i32, message = "md,nd->mn"}> : () -> ()
    %cst_66 = arith.constant dense<0.000000e+00> : vector<36x36xf32>
    %158 = tpu.matmul %155, %156, %cst_66 {dimension_numbers = #tpu.dot_dimension_numbers<[1], [1], [0], [0], [0, 0, 1, 0], [], []>} : vector<36x8xf32>, vector<36x8xf32>, vector<36x36xf32> -> vector<36x36xf32>
    "tpu.trace_stop"() : () -> ()
    %cst_67 = arith.constant 0.353553385 : f32
    %159 = vector.broadcast %cst_67 : f32 to vector<36x36xf32>
    %160 = arith.mulf %158, %159 : vector<36x36xf32>
    %161 = arith.addf %160, %27 : vector<36x36xf32>
    %cst_68 = arith.constant dense<0xFF800000> : vector<36xf32>
    %162 = vector.multi_reduction <maximumf>, %161, %cst_68 [1] : vector<36x36xf32> to vector<36xf32>
    %163 = vector.shape_cast %162 : vector<36xf32> to vector<36x1xf32>
    %164 = vector.broadcast %163 : vector<36x1xf32> to vector<36x36xf32>
    %165 = arith.subf %161, %164 : vector<36x36xf32>
    %166 = math.exp %165 : vector<36x36xf32>
    %cst_69 = arith.constant dense<0.000000e+00> : vector<36xf32>
    %167 = vector.multi_reduction <add>, %166, %cst_69 [1] : vector<36x36xf32> to vector<36xf32>
    %168 = vector.shape_cast %167 : vector<36xf32> to vector<36x1xf32>
    %169 = tpu.reciprocal %168 {approx = true} : vector<36x1xf32> -> vector<36x1xf32>
    %170 = vector.broadcast %169 : vector<36x1xf32> to vector<36x36xf32>
    %171 = arith.mulf %166, %170 : vector<36x36xf32>
    %cst_70 = arith.constant dense<0.000000e+00> : vector<36x8xf32>
    %172 = tpu.matmul %171, %157, %cst_70 {dimension_numbers = #tpu.dot_dimension_numbers<[1], [0], [0], [1], [0, 0, 1, 1], [], []>} : vector<36x36xf32>, vector<36x8xf32>, vector<36x8xf32> -> vector<36x8xf32>
    %173 = vector.extract_strided_slice %154 {offsets = [0, 8], sizes = [36, 8], strides = [1, 1]} : vector<36x96xf32> to vector<36x8xf32>
    %174 = vector.extract_strided_slice %154 {offsets = [0, 40], sizes = [36, 8], strides = [1, 1]} : vector<36x96xf32> to vector<36x8xf32>
    %175 = vector.extract_strided_slice %154 {offsets = [0, 72], sizes = [36, 8], strides = [1, 1]} : vector<36x96xf32> to vector<36x8xf32>
    "tpu.trace_start"() <{level = 10 : i32, message = "md,nd->mn"}> : () -> ()
    %cst_71 = arith.constant dense<0.000000e+00> : vector<36x36xf32>
    %176 = tpu.matmul %173, %174, %cst_71 {dimension_numbers = #tpu.dot_dimension_numbers<[1], [1], [0], [0], [0, 0, 1, 0], [], []>} : vector<36x8xf32>, vector<36x8xf32>, vector<36x36xf32> -> vector<36x36xf32>
    "tpu.trace_stop"() : () -> ()
    %cst_72 = arith.constant 0.353553385 : f32
    %177 = vector.broadcast %cst_72 : f32 to vector<36x36xf32>
    %178 = arith.mulf %176, %177 : vector<36x36xf32>
    %179 = arith.addf %178, %27 : vector<36x36xf32>
    %cst_73 = arith.constant dense<0xFF800000> : vector<36xf32>
    %180 = vector.multi_reduction <maximumf>, %179, %cst_73 [1] : vector<36x36xf32> to vector<36xf32>
    %181 = vector.shape_cast %180 : vector<36xf32> to vector<36x1xf32>
    %182 = vector.broadcast %181 : vector<36x1xf32> to vector<36x36xf32>
    %183 = arith.subf %179, %182 : vector<36x36xf32>
    %184 = math.exp %183 : vector<36x36xf32>
    %cst_74 = arith.constant dense<0.000000e+00> : vector<36xf32>
    %185 = vector.multi_reduction <add>, %184, %cst_74 [1] : vector<36x36xf32> to vector<36xf32>
    %186 = vector.shape_cast %185 : vector<36xf32> to vector<36x1xf32>
    %187 = tpu.reciprocal %186 {approx = true} : vector<36x1xf32> -> vector<36x1xf32>
    %188 = vector.broadcast %187 : vector<36x1xf32> to vector<36x36xf32>
    %189 = arith.mulf %184, %188 : vector<36x36xf32>
    %cst_75 = arith.constant dense<0.000000e+00> : vector<36x8xf32>
    %190 = tpu.matmul %189, %175, %cst_75 {dimension_numbers = #tpu.dot_dimension_numbers<[1], [0], [0], [1], [0, 0, 1, 1], [], []>} : vector<36x36xf32>, vector<36x8xf32>, vector<36x8xf32> -> vector<36x8xf32>
    %191 = vector.extract_strided_slice %154 {offsets = [0, 16], sizes = [36, 8], strides = [1, 1]} : vector<36x96xf32> to vector<36x8xf32>
    %192 = vector.extract_strided_slice %154 {offsets = [0, 48], sizes = [36, 8], strides = [1, 1]} : vector<36x96xf32> to vector<36x8xf32>
    %193 = vector.extract_strided_slice %154 {offsets = [0, 80], sizes = [36, 8], strides = [1, 1]} : vector<36x96xf32> to vector<36x8xf32>
    "tpu.trace_start"() <{level = 10 : i32, message = "md,nd->mn"}> : () -> ()
    %cst_76 = arith.constant dense<0.000000e+00> : vector<36x36xf32>
    %194 = tpu.matmul %191, %192, %cst_76 {dimension_numbers = #tpu.dot_dimension_numbers<[1], [1], [0], [0], [0, 0, 1, 0], [], []>} : vector<36x8xf32>, vector<36x8xf32>, vector<36x36xf32> -> vector<36x36xf32>
    "tpu.trace_stop"() : () -> ()
    %cst_77 = arith.constant 0.353553385 : f32
    %195 = vector.broadcast %cst_77 : f32 to vector<36x36xf32>
    %196 = arith.mulf %194, %195 : vector<36x36xf32>
    %197 = arith.addf %196, %27 : vector<36x36xf32>
    %cst_78 = arith.constant dense<0xFF800000> : vector<36xf32>
    %198 = vector.multi_reduction <maximumf>, %197, %cst_78 [1] : vector<36x36xf32> to vector<36xf32>
    %199 = vector.shape_cast %198 : vector<36xf32> to vector<36x1xf32>
    %200 = vector.broadcast %199 : vector<36x1xf32> to vector<36x36xf32>
    %201 = arith.subf %197, %200 : vector<36x36xf32>
    %202 = math.exp %201 : vector<36x36xf32>
    %cst_79 = arith.constant dense<0.000000e+00> : vector<36xf32>
    %203 = vector.multi_reduction <add>, %202, %cst_79 [1] : vector<36x36xf32> to vector<36xf32>
    %204 = vector.shape_cast %203 : vector<36xf32> to vector<36x1xf32>
    %205 = tpu.reciprocal %204 {approx = true} : vector<36x1xf32> -> vector<36x1xf32>
    %206 = vector.broadcast %205 : vector<36x1xf32> to vector<36x36xf32>
    %207 = arith.mulf %202, %206 : vector<36x36xf32>
    %cst_80 = arith.constant dense<0.000000e+00> : vector<36x8xf32>
    %208 = tpu.matmul %207, %193, %cst_80 {dimension_numbers = #tpu.dot_dimension_numbers<[1], [0], [0], [1], [0, 0, 1, 1], [], []>} : vector<36x36xf32>, vector<36x8xf32>, vector<36x8xf32> -> vector<36x8xf32>
    %209 = vector.extract_strided_slice %154 {offsets = [0, 24], sizes = [36, 8], strides = [1, 1]} : vector<36x96xf32> to vector<36x8xf32>
    %210 = vector.extract_strided_slice %154 {offsets = [0, 56], sizes = [36, 8], strides = [1, 1]} : vector<36x96xf32> to vector<36x8xf32>
    %211 = vector.extract_strided_slice %154 {offsets = [0, 88], sizes = [36, 8], strides = [1, 1]} : vector<36x96xf32> to vector<36x8xf32>
    "tpu.trace_start"() <{level = 10 : i32, message = "md,nd->mn"}> : () -> ()
    %cst_81 = arith.constant dense<0.000000e+00> : vector<36x36xf32>
    %212 = tpu.matmul %209, %210, %cst_81 {dimension_numbers = #tpu.dot_dimension_numbers<[1], [1], [0], [0], [0, 0, 1, 0], [], []>} : vector<36x8xf32>, vector<36x8xf32>, vector<36x36xf32> -> vector<36x36xf32>
    "tpu.trace_stop"() : () -> ()
    %cst_82 = arith.constant 0.353553385 : f32
    %213 = vector.broadcast %cst_82 : f32 to vector<36x36xf32>
    %214 = arith.mulf %212, %213 : vector<36x36xf32>
    %215 = arith.addf %214, %27 : vector<36x36xf32>
    %cst_83 = arith.constant dense<0xFF800000> : vector<36xf32>
    %216 = vector.multi_reduction <maximumf>, %215, %cst_83 [1] : vector<36x36xf32> to vector<36xf32>
    %217 = vector.shape_cast %216 : vector<36xf32> to vector<36x1xf32>
    %218 = vector.broadcast %217 : vector<36x1xf32> to vector<36x36xf32>
    %219 = arith.subf %215, %218 : vector<36x36xf32>
    %220 = math.exp %219 : vector<36x36xf32>
    %cst_84 = arith.constant dense<0.000000e+00> : vector<36xf32>
    %221 = vector.multi_reduction <add>, %220, %cst_84 [1] : vector<36x36xf32> to vector<36xf32>
    %222 = vector.shape_cast %221 : vector<36xf32> to vector<36x1xf32>
    %223 = tpu.reciprocal %222 {approx = true} : vector<36x1xf32> -> vector<36x1xf32>
    %224 = vector.broadcast %223 : vector<36x1xf32> to vector<36x36xf32>
    %225 = arith.mulf %220, %224 : vector<36x36xf32>
    %cst_85 = arith.constant dense<0.000000e+00> : vector<36x8xf32>
    %226 = tpu.matmul %225, %211, %cst_85 {dimension_numbers = #tpu.dot_dimension_numbers<[1], [0], [0], [1], [0, 0, 1, 1], [], []>} : vector<36x36xf32>, vector<36x8xf32>, vector<36x8xf32> -> vector<36x8xf32>
    %227 = tpu.concatenate %172, %190, %208, %226 in 1 : vector<36x8xf32>, vector<36x8xf32>, vector<36x8xf32>, vector<36x8xf32> -> vector<36x32xf32>
    %cst_86 = arith.constant dense<0.000000e+00> : vector<36x32xf32>
    %228 = tpu.matmul %227, %151, %cst_86 {dimension_numbers = #tpu.dot_dimension_numbers<[1], [0], [0], [1], [0, 0, 1, 1], [], []>} : vector<36x32xf32>, vector<32x32xf32>, vector<36x32xf32> -> vector<36x32xf32>
    %229 = vector.broadcast %123 : vector<1x32xf32> to vector<36x32xf32>
    %230 = arith.addf %228, %229 : vector<36x32xf32>
    %231 = arith.addf %120, %230 : vector<36x32xf32>
    %cst_87 = arith.constant dense<0.000000e+00> : vector<36xf32>
    %232 = vector.multi_reduction <add>, %231, %cst_87 [1] : vector<36x32xf32> to vector<36xf32>
    %233 = vector.shape_cast %232 : vector<36xf32> to vector<36x1xf32>
    %cst_88 = arith.constant 3.200000e+01 : f32
    %234 = vector.broadcast %cst_88 : f32 to vector<36x1xf32>
    %235 = arith.divf %233, %234 : vector<36x1xf32>
    %236 = vector.broadcast %235 : vector<36x1xf32> to vector<36x32xf32>
    %237 = arith.subf %231, %236 : vector<36x32xf32>
    %238 = arith.mulf %237, %237 : vector<36x32xf32>
    %cst_89 = arith.constant dense<0.000000e+00> : vector<36xf32>
    %239 = vector.multi_reduction <add>, %238, %cst_89 [1] : vector<36x32xf32> to vector<36xf32>
    %240 = vector.shape_cast %239 : vector<36xf32> to vector<36x1xf32>
    %cst_90 = arith.constant 3.200000e+01 : f32
    %241 = vector.broadcast %cst_90 : f32 to vector<36x1xf32>
    %242 = arith.divf %240, %241 : vector<36x1xf32>
    %cst_91 = arith.constant 9.99999974E-6 : f32
    %243 = vector.broadcast %cst_91 : f32 to vector<36x1xf32>
    %244 = arith.addf %242, %243 : vector<36x1xf32>
    %245 = math.rsqrt %244 : vector<36x1xf32>
    %246 = vector.broadcast %245 : vector<36x1xf32> to vector<36x32xf32>
    %247 = arith.mulf %237, %246 : vector<36x32xf32>
    %248 = vector.broadcast %124 : vector<1x32xf32> to vector<36x32xf32>
    %249 = arith.mulf %247, %248 : vector<36x32xf32>
    %250 = vector.broadcast %125 : vector<1x32xf32> to vector<36x32xf32>
    %251 = arith.addf %249, %250 : vector<36x32xf32>
    %c0_92 = arith.constant 0 : index
    %c0_93 = arith.constant 0 : index
    %c0_94 = arith.constant 0 : index
    %252 = vector.load %arg7[%c0_92, %c0_93, %c0_94] : memref<2x32x128xf32, #tpu.memory_space<vmem>>, vector<1x32x128xf32>
    %253 = vector.shape_cast %252 : vector<1x32x128xf32> to vector<32x128xf32>
    %cst_95 = arith.constant dense<0.000000e+00> : vector<36x128xf32>
    %254 = tpu.matmul %251, %253, %cst_95 {dimension_numbers = #tpu.dot_dimension_numbers<[1], [0], [0], [1], [0, 0, 1, 1], [], []>} : vector<36x32xf32>, vector<32x128xf32>, vector<36x128xf32> -> vector<36x128xf32>
    %c0_96 = arith.constant 0 : index
    %c0_97 = arith.constant 0 : index
    %255 = vector.load %arg8[%c0_96, %c0_97] : memref<2x128xf32, #tpu.memory_space<vmem>>, vector<1x128xf32>
    %256 = vector.broadcast %255 : vector<1x128xf32> to vector<36x128xf32>
    %257 = arith.addf %254, %256 : vector<36x128xf32>
    %cst_98 = arith.constant 5.000000e-01 : f32
    %258 = vector.broadcast %cst_98 : f32 to vector<36x128xf32>
    %259 = arith.mulf %258, %257 : vector<36x128xf32>
    %cst_99 = arith.constant 0.707106769 : f32
    %260 = vector.broadcast %cst_99 : f32 to vector<36x128xf32>
    %261 = arith.mulf %257, %260 : vector<36x128xf32>
    %262 = math.erf %261 : vector<36x128xf32>
    %cst_100 = arith.constant 1.000000e+00 : f32
    %263 = vector.broadcast %cst_100 : f32 to vector<36x128xf32>
    %264 = arith.addf %263, %262 : vector<36x128xf32>
    %265 = arith.mulf %259, %264 : vector<36x128xf32>
    %c0_101 = arith.constant 0 : index
    %c0_102 = arith.constant 0 : index
    %c0_103 = arith.constant 0 : index
    %266 = vector.load %arg9[%c0_101, %c0_102, %c0_103] : memref<2x128x32xf32, #tpu.memory_space<vmem>>, vector<1x128x32xf32>
    %267 = vector.shape_cast %266 : vector<1x128x32xf32> to vector<128x32xf32>
    %cst_104 = arith.constant dense<0.000000e+00> : vector<36x32xf32>
    %268 = tpu.matmul %265, %267, %cst_104 {dimension_numbers = #tpu.dot_dimension_numbers<[1], [0], [0], [1], [0, 0, 1, 1], [], []>} : vector<36x128xf32>, vector<128x32xf32>, vector<36x32xf32> -> vector<36x32xf32>
    %269 = arith.addf %231, %268 : vector<36x32xf32>
    %270 = vector.broadcast %126 : vector<1x32xf32> to vector<36x32xf32>
    %271 = arith.addf %269, %270 : vector<36x32xf32>
    %c10 = arith.constant 10 : index
    %c0_105 = arith.constant 0 : index
    %272 = vector.load %arg3[%c10, %c0_105] : memref<16x32xf32, #tpu.memory_space<vmem>>, vector<1x32xf32>
    %c11 = arith.constant 11 : index
    %c0_106 = arith.constant 0 : index
    %273 = vector.load %arg3[%c11, %c0_106] : memref<16x32xf32, #tpu.memory_space<vmem>>, vector<1x32xf32>
    %c12 = arith.constant 12 : index
    %c0_107 = arith.constant 0 : index
    %274 = vector.load %arg3[%c12, %c0_107] : memref<16x32xf32, #tpu.memory_space<vmem>>, vector<1x32xf32>
    %c13 = arith.constant 13 : index
    %c0_108 = arith.constant 0 : index
    %275 = vector.load %arg3[%c13, %c0_108] : memref<16x32xf32, #tpu.memory_space<vmem>>, vector<1x32xf32>
    %c14 = arith.constant 14 : index
    %c0_109 = arith.constant 0 : index
    %276 = vector.load %arg3[%c14, %c0_109] : memref<16x32xf32, #tpu.memory_space<vmem>>, vector<1x32xf32>
    %c15 = arith.constant 15 : index
    %c0_110 = arith.constant 0 : index
    %277 = vector.load %arg3[%c15, %c0_110] : memref<16x32xf32, #tpu.memory_space<vmem>>, vector<1x32xf32>
    %cst_111 = arith.constant dense<0.000000e+00> : vector<36xf32>
    %278 = vector.multi_reduction <add>, %271, %cst_111 [1] : vector<36x32xf32> to vector<36xf32>
    %279 = vector.shape_cast %278 : vector<36xf32> to vector<36x1xf32>
    %cst_112 = arith.constant 3.200000e+01 : f32
    %280 = vector.broadcast %cst_112 : f32 to vector<36x1xf32>
    %281 = arith.divf %279, %280 : vector<36x1xf32>
    %282 = vector.broadcast %281 : vector<36x1xf32> to vector<36x32xf32>
    %283 = arith.subf %271, %282 : vector<36x32xf32>
    %284 = arith.mulf %283, %283 : vector<36x32xf32>
    %cst_113 = arith.constant dense<0.000000e+00> : vector<36xf32>
    %285 = vector.multi_reduction <add>, %284, %cst_113 [1] : vector<36x32xf32> to vector<36xf32>
    %286 = vector.shape_cast %285 : vector<36xf32> to vector<36x1xf32>
    %cst_114 = arith.constant 3.200000e+01 : f32
    %287 = vector.broadcast %cst_114 : f32 to vector<36x1xf32>
    %288 = arith.divf %286, %287 : vector<36x1xf32>
    %cst_115 = arith.constant 9.99999974E-6 : f32
    %289 = vector.broadcast %cst_115 : f32 to vector<36x1xf32>
    %290 = arith.addf %288, %289 : vector<36x1xf32>
    %291 = math.rsqrt %290 : vector<36x1xf32>
    %292 = vector.broadcast %291 : vector<36x1xf32> to vector<36x32xf32>
    %293 = arith.mulf %283, %292 : vector<36x32xf32>
    %294 = vector.broadcast %272 : vector<1x32xf32> to vector<36x32xf32>
    %295 = arith.mulf %293, %294 : vector<36x32xf32>
    %296 = vector.broadcast %273 : vector<1x32xf32> to vector<36x32xf32>
    %297 = arith.addf %295, %296 : vector<36x32xf32>
    %c2 = arith.constant 2 : index
    %c0_116 = arith.constant 0 : index
    %c0_117 = arith.constant 0 : index
    %298 = vector.load %arg4[%c2, %c0_116, %c0_117] : memref<3x32x96xf32, #tpu.memory_space<vmem>>, vector<1x32x96xf32>
    %299 = vector.shape_cast %298 : vector<1x32x96xf32> to vector<32x96xf32>
    %c2_118 = arith.constant 2 : index
    %c0_119 = arith.constant 0 : index
    %300 = vector.load %arg5[%c2_118, %c0_119] : memref<3x96xf32, #tpu.memory_space<vmem>>, vector<1x96xf32>
    %c2_120 = arith.constant 2 : index
    %c0_121 = arith.constant 0 : index
    %c0_122 = arith.constant 0 : index
    %301 = vector.load %arg6[%c2_120, %c0_121, %c0_122] : memref<3x32x32xf32, #tpu.memory_space<vmem>>, vector<1x32x32xf32>
    %302 = vector.shape_cast %301 : vector<1x32x32xf32> to vector<32x32xf32>
    %cst_123 = arith.constant dense<0.000000e+00> : vector<36x96xf32>
    %303 = tpu.matmul %297, %299, %cst_123 {dimension_numbers = #tpu.dot_dimension_numbers<[1], [0], [0], [1], [0, 0, 1, 1], [], []>} : vector<36x32xf32>, vector<32x96xf32>, vector<36x96xf32> -> vector<36x96xf32>
    %304 = vector.broadcast %300 : vector<1x96xf32> to vector<36x96xf32>
    %305 = arith.addf %303, %304 : vector<36x96xf32>
    %306 = vector.extract_strided_slice %305 {offsets = [0, 0], sizes = [36, 8], strides = [1, 1]} : vector<36x96xf32> to vector<36x8xf32>
    %307 = vector.extract_strided_slice %305 {offsets = [0, 32], sizes = [36, 8], strides = [1, 1]} : vector<36x96xf32> to vector<36x8xf32>
    %308 = vector.extract_strided_slice %305 {offsets = [0, 64], sizes = [36, 8], strides = [1, 1]} : vector<36x96xf32> to vector<36x8xf32>
    "tpu.trace_start"() <{level = 10 : i32, message = "md,nd->mn"}> : () -> ()
    %cst_124 = arith.constant dense<0.000000e+00> : vector<36x36xf32>
    %309 = tpu.matmul %306, %307, %cst_124 {dimension_numbers = #tpu.dot_dimension_numbers<[1], [1], [0], [0], [0, 0, 1, 0], [], []>} : vector<36x8xf32>, vector<36x8xf32>, vector<36x36xf32> -> vector<36x36xf32>
    "tpu.trace_stop"() : () -> ()
    %cst_125 = arith.constant 0.353553385 : f32
    %310 = vector.broadcast %cst_125 : f32 to vector<36x36xf32>
    %311 = arith.mulf %309, %310 : vector<36x36xf32>
    %312 = arith.addf %311, %27 : vector<36x36xf32>
    %cst_126 = arith.constant dense<0xFF800000> : vector<36xf32>
    %313 = vector.multi_reduction <maximumf>, %312, %cst_126 [1] : vector<36x36xf32> to vector<36xf32>
    %314 = vector.shape_cast %313 : vector<36xf32> to vector<36x1xf32>
    %315 = vector.broadcast %314 : vector<36x1xf32> to vector<36x36xf32>
    %316 = arith.subf %312, %315 : vector<36x36xf32>
    %317 = math.exp %316 : vector<36x36xf32>
    %cst_127 = arith.constant dense<0.000000e+00> : vector<36xf32>
    %318 = vector.multi_reduction <add>, %317, %cst_127 [1] : vector<36x36xf32> to vector<36xf32>
    %319 = vector.shape_cast %318 : vector<36xf32> to vector<36x1xf32>
    %320 = tpu.reciprocal %319 {approx = true} : vector<36x1xf32> -> vector<36x1xf32>
    %321 = vector.broadcast %320 : vector<36x1xf32> to vector<36x36xf32>
    %322 = arith.mulf %317, %321 : vector<36x36xf32>
    %cst_128 = arith.constant dense<0.000000e+00> : vector<36x8xf32>
    %323 = tpu.matmul %322, %308, %cst_128 {dimension_numbers = #tpu.dot_dimension_numbers<[1], [0], [0], [1], [0, 0, 1, 1], [], []>} : vector<36x36xf32>, vector<36x8xf32>, vector<36x8xf32> -> vector<36x8xf32>
    %324 = vector.extract_strided_slice %305 {offsets = [0, 8], sizes = [36, 8], strides = [1, 1]} : vector<36x96xf32> to vector<36x8xf32>
    %325 = vector.extract_strided_slice %305 {offsets = [0, 40], sizes = [36, 8], strides = [1, 1]} : vector<36x96xf32> to vector<36x8xf32>
    %326 = vector.extract_strided_slice %305 {offsets = [0, 72], sizes = [36, 8], strides = [1, 1]} : vector<36x96xf32> to vector<36x8xf32>
    "tpu.trace_start"() <{level = 10 : i32, message = "md,nd->mn"}> : () -> ()
    %cst_129 = arith.constant dense<0.000000e+00> : vector<36x36xf32>
    %327 = tpu.matmul %324, %325, %cst_129 {dimension_numbers = #tpu.dot_dimension_numbers<[1], [1], [0], [0], [0, 0, 1, 0], [], []>} : vector<36x8xf32>, vector<36x8xf32>, vector<36x36xf32> -> vector<36x36xf32>
    "tpu.trace_stop"() : () -> ()
    %cst_130 = arith.constant 0.353553385 : f32
    %328 = vector.broadcast %cst_130 : f32 to vector<36x36xf32>
    %329 = arith.mulf %327, %328 : vector<36x36xf32>
    %330 = arith.addf %329, %27 : vector<36x36xf32>
    %cst_131 = arith.constant dense<0xFF800000> : vector<36xf32>
    %331 = vector.multi_reduction <maximumf>, %330, %cst_131 [1] : vector<36x36xf32> to vector<36xf32>
    %332 = vector.shape_cast %331 : vector<36xf32> to vector<36x1xf32>
    %333 = vector.broadcast %332 : vector<36x1xf32> to vector<36x36xf32>
    %334 = arith.subf %330, %333 : vector<36x36xf32>
    %335 = math.exp %334 : vector<36x36xf32>
    %cst_132 = arith.constant dense<0.000000e+00> : vector<36xf32>
    %336 = vector.multi_reduction <add>, %335, %cst_132 [1] : vector<36x36xf32> to vector<36xf32>
    %337 = vector.shape_cast %336 : vector<36xf32> to vector<36x1xf32>
    %338 = tpu.reciprocal %337 {approx = true} : vector<36x1xf32> -> vector<36x1xf32>
    %339 = vector.broadcast %338 : vector<36x1xf32> to vector<36x36xf32>
    %340 = arith.mulf %335, %339 : vector<36x36xf32>
    %cst_133 = arith.constant dense<0.000000e+00> : vector<36x8xf32>
    %341 = tpu.matmul %340, %326, %cst_133 {dimension_numbers = #tpu.dot_dimension_numbers<[1], [0], [0], [1], [0, 0, 1, 1], [], []>} : vector<36x36xf32>, vector<36x8xf32>, vector<36x8xf32> -> vector<36x8xf32>
    %342 = vector.extract_strided_slice %305 {offsets = [0, 16], sizes = [36, 8], strides = [1, 1]} : vector<36x96xf32> to vector<36x8xf32>
    %343 = vector.extract_strided_slice %305 {offsets = [0, 48], sizes = [36, 8], strides = [1, 1]} : vector<36x96xf32> to vector<36x8xf32>
    %344 = vector.extract_strided_slice %305 {offsets = [0, 80], sizes = [36, 8], strides = [1, 1]} : vector<36x96xf32> to vector<36x8xf32>
    "tpu.trace_start"() <{level = 10 : i32, message = "md,nd->mn"}> : () -> ()
    %cst_134 = arith.constant dense<0.000000e+00> : vector<36x36xf32>
    %345 = tpu.matmul %342, %343, %cst_134 {dimension_numbers = #tpu.dot_dimension_numbers<[1], [1], [0], [0], [0, 0, 1, 0], [], []>} : vector<36x8xf32>, vector<36x8xf32>, vector<36x36xf32> -> vector<36x36xf32>
    "tpu.trace_stop"() : () -> ()
    %cst_135 = arith.constant 0.353553385 : f32
    %346 = vector.broadcast %cst_135 : f32 to vector<36x36xf32>
    %347 = arith.mulf %345, %346 : vector<36x36xf32>
    %348 = arith.addf %347, %27 : vector<36x36xf32>
    %cst_136 = arith.constant dense<0xFF800000> : vector<36xf32>
    %349 = vector.multi_reduction <maximumf>, %348, %cst_136 [1] : vector<36x36xf32> to vector<36xf32>
    %350 = vector.shape_cast %349 : vector<36xf32> to vector<36x1xf32>
    %351 = vector.broadcast %350 : vector<36x1xf32> to vector<36x36xf32>
    %352 = arith.subf %348, %351 : vector<36x36xf32>
    %353 = math.exp %352 : vector<36x36xf32>
    %cst_137 = arith.constant dense<0.000000e+00> : vector<36xf32>
    %354 = vector.multi_reduction <add>, %353, %cst_137 [1] : vector<36x36xf32> to vector<36xf32>
    %355 = vector.shape_cast %354 : vector<36xf32> to vector<36x1xf32>
    %356 = tpu.reciprocal %355 {approx = true} : vector<36x1xf32> -> vector<36x1xf32>
    %357 = vector.broadcast %356 : vector<36x1xf32> to vector<36x36xf32>
    %358 = arith.mulf %353, %357 : vector<36x36xf32>
    %cst_138 = arith.constant dense<0.000000e+00> : vector<36x8xf32>
    %359 = tpu.matmul %358, %344, %cst_138 {dimension_numbers = #tpu.dot_dimension_numbers<[1], [0], [0], [1], [0, 0, 1, 1], [], []>} : vector<36x36xf32>, vector<36x8xf32>, vector<36x8xf32> -> vector<36x8xf32>
    %360 = vector.extract_strided_slice %305 {offsets = [0, 24], sizes = [36, 8], strides = [1, 1]} : vector<36x96xf32> to vector<36x8xf32>
    %361 = vector.extract_strided_slice %305 {offsets = [0, 56], sizes = [36, 8], strides = [1, 1]} : vector<36x96xf32> to vector<36x8xf32>
    %362 = vector.extract_strided_slice %305 {offsets = [0, 88], sizes = [36, 8], strides = [1, 1]} : vector<36x96xf32> to vector<36x8xf32>
    "tpu.trace_start"() <{level = 10 : i32, message = "md,nd->mn"}> : () -> ()
    %cst_139 = arith.constant dense<0.000000e+00> : vector<36x36xf32>
    %363 = tpu.matmul %360, %361, %cst_139 {dimension_numbers = #tpu.dot_dimension_numbers<[1], [1], [0], [0], [0, 0, 1, 0], [], []>} : vector<36x8xf32>, vector<36x8xf32>, vector<36x36xf32> -> vector<36x36xf32>
    "tpu.trace_stop"() : () -> ()
    %cst_140 = arith.constant 0.353553385 : f32
    %364 = vector.broadcast %cst_140 : f32 to vector<36x36xf32>
    %365 = arith.mulf %363, %364 : vector<36x36xf32>
    %366 = arith.addf %365, %27 : vector<36x36xf32>
    %cst_141 = arith.constant dense<0xFF800000> : vector<36xf32>
    %367 = vector.multi_reduction <maximumf>, %366, %cst_141 [1] : vector<36x36xf32> to vector<36xf32>
    %368 = vector.shape_cast %367 : vector<36xf32> to vector<36x1xf32>
    %369 = vector.broadcast %368 : vector<36x1xf32> to vector<36x36xf32>
    %370 = arith.subf %366, %369 : vector<36x36xf32>
    %371 = math.exp %370 : vector<36x36xf32>
    %cst_142 = arith.constant dense<0.000000e+00> : vector<36xf32>
    %372 = vector.multi_reduction <add>, %371, %cst_142 [1] : vector<36x36xf32> to vector<36xf32>
    %373 = vector.shape_cast %372 : vector<36xf32> to vector<36x1xf32>
    %374 = tpu.reciprocal %373 {approx = true} : vector<36x1xf32> -> vector<36x1xf32>
    %375 = vector.broadcast %374 : vector<36x1xf32> to vector<36x36xf32>
    %376 = arith.mulf %371, %375 : vector<36x36xf32>
    %cst_143 = arith.constant dense<0.000000e+00> : vector<36x8xf32>
    %377 = tpu.matmul %376, %362, %cst_143 {dimension_numbers = #tpu.dot_dimension_numbers<[1], [0], [0], [1], [0, 0, 1, 1], [], []>} : vector<36x36xf32>, vector<36x8xf32>, vector<36x8xf32> -> vector<36x8xf32>
    %378 = tpu.concatenate %323, %341, %359, %377 in 1 : vector<36x8xf32>, vector<36x8xf32>, vector<36x8xf32>, vector<36x8xf32> -> vector<36x32xf32>
    %cst_144 = arith.constant dense<0.000000e+00> : vector<36x32xf32>
    %379 = tpu.matmul %378, %302, %cst_144 {dimension_numbers = #tpu.dot_dimension_numbers<[1], [0], [0], [1], [0, 0, 1, 1], [], []>} : vector<36x32xf32>, vector<32x32xf32>, vector<36x32xf32> -> vector<36x32xf32>
    %380 = vector.broadcast %274 : vector<1x32xf32> to vector<36x32xf32>
    %381 = arith.addf %379, %380 : vector<36x32xf32>
    %382 = arith.addf %271, %381 : vector<36x32xf32>
    %cst_145 = arith.constant dense<0.000000e+00> : vector<36xf32>
    %383 = vector.multi_reduction <add>, %382, %cst_145 [1] : vector<36x32xf32> to vector<36xf32>
    %384 = vector.shape_cast %383 : vector<36xf32> to vector<36x1xf32>
    %cst_146 = arith.constant 3.200000e+01 : f32
    %385 = vector.broadcast %cst_146 : f32 to vector<36x1xf32>
    %386 = arith.divf %384, %385 : vector<36x1xf32>
    %387 = vector.broadcast %386 : vector<36x1xf32> to vector<36x32xf32>
    %388 = arith.subf %382, %387 : vector<36x32xf32>
    %389 = arith.mulf %388, %388 : vector<36x32xf32>
    %cst_147 = arith.constant dense<0.000000e+00> : vector<36xf32>
    %390 = vector.multi_reduction <add>, %389, %cst_147 [1] : vector<36x32xf32> to vector<36xf32>
    %391 = vector.shape_cast %390 : vector<36xf32> to vector<36x1xf32>
    %cst_148 = arith.constant 3.200000e+01 : f32
    %392 = vector.broadcast %cst_148 : f32 to vector<36x1xf32>
    %393 = arith.divf %391, %392 : vector<36x1xf32>
    %cst_149 = arith.constant 9.99999974E-6 : f32
    %394 = vector.broadcast %cst_149 : f32 to vector<36x1xf32>
    %395 = arith.addf %393, %394 : vector<36x1xf32>
    %396 = math.rsqrt %395 : vector<36x1xf32>
    %397 = vector.broadcast %396 : vector<36x1xf32> to vector<36x32xf32>
    %398 = arith.mulf %388, %397 : vector<36x32xf32>
    %399 = vector.broadcast %275 : vector<1x32xf32> to vector<36x32xf32>
    %400 = arith.mulf %398, %399 : vector<36x32xf32>
    %401 = vector.broadcast %276 : vector<1x32xf32> to vector<36x32xf32>
    %402 = arith.addf %400, %401 : vector<36x32xf32>
    %c1_150 = arith.constant 1 : index
    %c0_151 = arith.constant 0 : index
    %c0_152 = arith.constant 0 : index
    %403 = vector.load %arg7[%c1_150, %c0_151, %c0_152] : memref<2x32x128xf32, #tpu.memory_space<vmem>>, vector<1x32x128xf32>
    %404 = vector.shape_cast %403 : vector<1x32x128xf32> to vector<32x128xf32>
    %cst_153 = arith.constant dense<0.000000e+00> : vector<36x128xf32>
    %405 = tpu.matmul %402, %404, %cst_153 {dimension_numbers = #tpu.dot_dimension_numbers<[1], [0], [0], [1], [0, 0, 1, 1], [], []>} : vector<36x32xf32>, vector<32x128xf32>, vector<36x128xf32> -> vector<36x128xf32>
    %c1_154 = arith.constant 1 : index
    %c0_155 = arith.constant 0 : index
    %406 = vector.load %arg8[%c1_154, %c0_155] : memref<2x128xf32, #tpu.memory_space<vmem>>, vector<1x128xf32>
    %407 = vector.broadcast %406 : vector<1x128xf32> to vector<36x128xf32>
    %408 = arith.addf %405, %407 : vector<36x128xf32>
    %cst_156 = arith.constant 5.000000e-01 : f32
    %409 = vector.broadcast %cst_156 : f32 to vector<36x128xf32>
    %410 = arith.mulf %409, %408 : vector<36x128xf32>
    %cst_157 = arith.constant 0.707106769 : f32
    %411 = vector.broadcast %cst_157 : f32 to vector<36x128xf32>
    %412 = arith.mulf %408, %411 : vector<36x128xf32>
    %413 = math.erf %412 : vector<36x128xf32>
    %cst_158 = arith.constant 1.000000e+00 : f32
    %414 = vector.broadcast %cst_158 : f32 to vector<36x128xf32>
    %415 = arith.addf %414, %413 : vector<36x128xf32>
    %416 = arith.mulf %410, %415 : vector<36x128xf32>
    %c1_159 = arith.constant 1 : index
    %c0_160 = arith.constant 0 : index
    %c0_161 = arith.constant 0 : index
    %417 = vector.load %arg9[%c1_159, %c0_160, %c0_161] : memref<2x128x32xf32, #tpu.memory_space<vmem>>, vector<1x128x32xf32>
    %418 = vector.shape_cast %417 : vector<1x128x32xf32> to vector<128x32xf32>
    %cst_162 = arith.constant dense<0.000000e+00> : vector<36x32xf32>
    %419 = tpu.matmul %416, %418, %cst_162 {dimension_numbers = #tpu.dot_dimension_numbers<[1], [0], [0], [1], [0, 0, 1, 1], [], []>} : vector<36x128xf32>, vector<128x32xf32>, vector<36x32xf32> -> vector<36x32xf32>
    %420 = arith.addf %382, %419 : vector<36x32xf32>
    %421 = vector.broadcast %277 : vector<1x32xf32> to vector<36x32xf32>
    %422 = arith.addf %420, %421 : vector<36x32xf32>
    %423 = vector.extract_strided_slice %422 {offsets = [0, 0], sizes = [32, 32], strides = [1, 1]} : vector<36x32xf32> to vector<32x32xf32>
    %c2_163 = arith.constant 2 : index
    %c0_164 = arith.constant 0 : index
    %424 = vector.load %arg3[%c2_163, %c0_164] : memref<16x32xf32, #tpu.memory_space<vmem>>, vector<1x32xf32>
    %c3 = arith.constant 3 : index
    %c0_165 = arith.constant 0 : index
    %425 = vector.load %arg3[%c3, %c0_165] : memref<16x32xf32, #tpu.memory_space<vmem>>, vector<1x32xf32>
    %cst_166 = arith.constant dense<0.000000e+00> : vector<32xf32>
    %426 = vector.multi_reduction <add>, %423, %cst_166 [1] : vector<32x32xf32> to vector<32xf32>
    %427 = vector.shape_cast %426 : vector<32xf32> to vector<32x1xf32>
    %cst_167 = arith.constant 3.200000e+01 : f32
    %428 = vector.broadcast %cst_167 : f32 to vector<32x1xf32>
    %429 = arith.divf %427, %428 : vector<32x1xf32>
    %430 = vector.broadcast %429 : vector<32x1xf32> to vector<32x32xf32>
    %431 = arith.subf %423, %430 : vector<32x32xf32>
    %432 = arith.mulf %431, %431 : vector<32x32xf32>
    %cst_168 = arith.constant dense<0.000000e+00> : vector<32xf32>
    %433 = vector.multi_reduction <add>, %432, %cst_168 [1] : vector<32x32xf32> to vector<32xf32>
    %434 = vector.shape_cast %433 : vector<32xf32> to vector<32x1xf32>
    %cst_169 = arith.constant 3.200000e+01 : f32
    %435 = vector.broadcast %cst_169 : f32 to vector<32x1xf32>
    %436 = arith.divf %434, %435 : vector<32x1xf32>
    %cst_170 = arith.constant 9.99999974E-6 : f32
    %437 = vector.broadcast %cst_170 : f32 to vector<32x1xf32>
    %438 = arith.addf %436, %437 : vector<32x1xf32>
    %439 = math.rsqrt %438 : vector<32x1xf32>
    %440 = vector.broadcast %439 : vector<32x1xf32> to vector<32x32xf32>
    %441 = arith.mulf %431, %440 : vector<32x32xf32>
    %442 = vector.broadcast %424 : vector<1x32xf32> to vector<32x32xf32>
    %443 = arith.mulf %441, %442 : vector<32x32xf32>
    %444 = vector.broadcast %425 : vector<1x32xf32> to vector<32x32xf32>
    %445 = arith.addf %443, %444 : vector<32x32xf32>
    %c0_171 = arith.constant 0 : index
    %c0_172 = arith.constant 0 : index
    %446 = vector.load %arg10[%c0_171, %c0_172] : memref<33x3xf32, #tpu.memory_space<vmem>>, vector<32x3xf32>
    %cst_173 = arith.constant dense<0.000000e+00> : vector<32x3xf32>
    %447 = tpu.matmul %445, %446, %cst_173 {dimension_numbers = #tpu.dot_dimension_numbers<[1], [0], [0], [1], [0, 0, 1, 1], [], []>} : vector<32x32xf32>, vector<32x3xf32>, vector<32x3xf32> -> vector<32x3xf32>
    %c32 = arith.constant 32 : index
    %c0_174 = arith.constant 0 : index
    %448 = vector.load %arg10[%c32, %c0_174] : memref<33x3xf32, #tpu.memory_space<vmem>>, vector<1x3xf32>
    %449 = vector.broadcast %448 : vector<1x3xf32> to vector<32x3xf32>
    %450 = arith.addf %447, %449 : vector<32x3xf32>
    %c0_175 = arith.constant 0 : index
    %c0_176 = arith.constant 0 : index
    %451 = vector.load %arg11[%c0_175, %c0_176] : memref<32x3xf32, #tpu.memory_space<vmem>>, vector<32x3xf32>
    tpu.vector_store %arg11[%c0_175, %c0_176], %450 {strides = array<i32>} : memref<32x3xf32, #tpu.memory_space<vmem>>, vector<32x3xf32>,
    return
  }
  func.func @transform_0(%arg0: i32) -> (i32, i32) {
    %c0_i32 = arith.constant 0 : i32
    %c0_i32_0 = arith.constant 0 : i32
    return %arg0, %c0_i32 : i32, i32
  }
  func.func @transform_1(%arg0: i32) -> (i32, i32) {
    %c0_i32 = arith.constant 0 : i32
    %c0_i32_0 = arith.constant 0 : i32
    %c0_i32_1 = arith.constant 0 : i32
    return %c0_i32, %c0_i32_0 : i32, i32
  }
  func.func @transform_2(%arg0: i32) -> (i32, i32) {
    %c0_i32 = arith.constant 0 : i32
    %c0_i32_0 = arith.constant 0 : i32
    %c0_i32_1 = arith.constant 0 : i32
    return %c0_i32, %c0_i32_0 : i32, i32
  }
  func.func @transform_3(%arg0: i32) -> (i32, i32, i32) {
    %c0_i32 = arith.constant 0 : i32
    %c0_i32_0 = arith.constant 0 : i32
    %c0_i32_1 = arith.constant 0 : i32
    %c0_i32_2 = arith.constant 0 : i32
    return %c0_i32, %c0_i32_0, %c0_i32_1 : i32, i32, i32
  }
  func.func @transform_4(%arg0: i32) -> (i32, i32) {
    %c0_i32 = arith.constant 0 : i32
    %c0_i32_0 = arith.constant 0 : i32
    %c0_i32_1 = arith.constant 0 : i32
    return %c0_i32, %c0_i32_0 : i32, i32
  }
  func.func @transform_5(%arg0: i32) -> (i32, i32, i32) {
    %c0_i32 = arith.constant 0 : i32
    %c0_i32_0 = arith.constant 0 : i32
    %c0_i32_1 = arith.constant 0 : i32
    %c0_i32_2 = arith.constant 0 : i32
    return %c0_i32, %c0_i32_0, %c0_i32_1 : i32, i32, i32
  }
  func.func @transform_6(%arg0: i32) -> (i32, i32, i32) {
    %c0_i32 = arith.constant 0 : i32
    %c0_i32_0 = arith.constant 0 : i32
    %c0_i32_1 = arith.constant 0 : i32
    %c0_i32_2 = arith.constant 0 : i32
    return %c0_i32, %c0_i32_0, %c0_i32_1 : i32, i32, i32
  }
  func.func @transform_7(%arg0: i32) -> (i32, i32) {
    %c0_i32 = arith.constant 0 : i32
    %c0_i32_0 = arith.constant 0 : i32
    %c0_i32_1 = arith.constant 0 : i32
    return %c0_i32, %c0_i32_0 : i32, i32
  }
  func.func @transform_8(%arg0: i32) -> (i32, i32, i32) {
    %c0_i32 = arith.constant 0 : i32
    %c0_i32_0 = arith.constant 0 : i32
    %c0_i32_1 = arith.constant 0 : i32
    %c0_i32_2 = arith.constant 0 : i32
    return %c0_i32, %c0_i32_0, %c0_i32_1 : i32, i32, i32
  }
  func.func @transform_9(%arg0: i32) -> (i32, i32) {
    %c0_i32 = arith.constant 0 : i32
    %c0_i32_0 = arith.constant 0 : i32
    %c0_i32_1 = arith.constant 0 : i32
    return %c0_i32, %c0_i32_0 : i32, i32
  }
  func.func @transform_10(%arg0: i32) -> (i32, i32) {
    %c0_i32 = arith.constant 0 : i32
    %c0_i32_0 = arith.constant 0 : i32
    return %arg0, %c0_i32 : i32, i32
  }
}

</mosaic_0001>

<bundles_post_ra>
// kernel: tile.9
= control target key start
LH: loop header
LB: loop body
LE: loop exit
PB: predicated region body
PF: predicated region fallthrough
CT: control target
= control target key end

     0   :  { %vm4_vm0 = vcmask 1047556   ;;  %s99_s14 = smov 56   ;;  %s100_s19 = smov 40   ;;  %vm6_vm1 = vcmask 64512   ;;  %vm16_vm2 = vcmask 523712   ;;  %vm26_vm3 = vcmask 458112   ;;  %s196_s0 = inlined_call_operand.vmem [shape: f32[8,8,8], index: 0, kind: input, shape index: {}]   ;;  %s197_s1 = inlined_call_operand.vmem [shape: f32[64,8], index: 1, kind: output, shape index: {}]  }
   0x1   :  { %v78_v0 = vld [vmem:[%s196_s0 + $0x7] ss:$8 sm:$0xf]   ;;  %v82_v3 = vld [vmem:[%s196_s0 + $0x5] ss:$8 sm:$0xf]  }
   0x2   :  { %v79_v1 = vld [vmem:[%s196_s0 + $0x7] ss:$8 sm:$0xf0]   ;;  %v83_v4 = vld [vmem:[%s196_s0 + $0x5] ss:$8 sm:$0xf0]  }
   0x3   :  { %v13_v2 = vsel %vm4_vm0, %v79_v1, %v78_v0  ;;  %v33_v5 = vsel %vm4_vm0, %v83_v4, %v82_v3  ;;  %v80_v6 = vld [vmem:[%s196_s0 + $0x6] ss:$8 sm:$0xf]   ;;  %v84_v9 = vld [vmem:[%s196_s0 + $0x4] ss:$8 sm:$0xf]  }
   0x4   :  { %14 = vrot.lane.b32.xlu0 %v13_v2, %s99_s14  ;;  %v81_v7 = vld [vmem:[%s196_s0 + $0x6] ss:$8 sm:$0xf0]   ;;  %34 = vrot.lane.b32.xlu1 %v33_v5, %s100_s19  ;;  %v85_v10 = vld [vmem:[%s196_s0 + $0x4] ss:$8 sm:$0xf0]  }
   0x5   :  { %v23_v8 = vsel %vm4_vm0, %v81_v7, %v80_v6  ;;  %v86_v11 = vld [vmem:[%s196_s0 + $0x3] ss:$8 sm:$0xf]   ;;  %v43_v12 = vsel %vm4_vm0, %v85_v10, %v84_v9  ;;  %s101_s28 = smov 48   ;;  %s102_s4 = smov 32   ;;  %vm36_vm4 = vcmask 392512  }
   0x6   :  { %v87_v13 = vld [vmem:[%s196_s0 + $0x3] ss:$8 sm:$0xf0]   ;;  %v88_v14 = vld [vmem:[%s196_s0 + $0x2] ss:$8 sm:$0xf]  }
   0x7   :  { %v89_v15 = vld [vmem:[%s196_s0 + $0x2] ss:$8 sm:$0xf0]   ;;  %v53_v16 = vsel %vm4_vm0, %v87_v13, %v86_v11  ;;  %v90_v17 = vld [vmem:[%s196_s0 + $0x1] ss:$8 sm:$0xf]  }
   0x8   :  { %24 = vrot.lane.b32.xlu0 %v23_v8, %s101_s28  ;;  %44 = vrot.lane.b32.xlu1 %v43_v12, %s102_s4  ;;  %v63_v18 = vsel %vm4_vm0, %v89_v15, %v88_v14  ;;  %v91_v19 = vld [vmem:[%s196_s0 + $0x1] ss:$8 sm:$0xf0]   ;;  %v2_v20 = vld [vmem:[%s196_s0] ss:$8 sm:$0xf]  }
   0x9   :  { %v3_v21 = vld [vmem:[%s196_s0] ss:$8 sm:$0xf0]   ;;  %s103_s0 = smov 24   ;;  %s104_s13 = smov 16   ;;  %v73_v23 = vsel %vm4_vm0, %v91_v19, %v90_v17  ;;  %vm46_vm5 = vcmask 326912  }
   0xa   :  { %v5_v22 = vsel %vm4_vm0, %v3_v21, %v2_v20  ;;  %s105_s16 = smov 8   ;;  %vm56_vm6 = vcmask 261312   ;;  %vm66_vm7 = vcmask 195712   ;;  %vm76_vm8 = vcmask 130112  }
   0xb   :  { %7 = vst.msk [vmem:[%s197_s1] sm:$0xff] %vm6_vm1, %v5_v22  }
   0xc   :  { %54 = vrot.lane.b32.xlu0 %v53_v16, %s103_s0  ;;  %64 = vrot.lane.b32.xlu1 %v63_v18, %s104_s13 }
  0x10   :  { %74 = vrot.lane.b32.xlu0 %v73_v23, %s105_s16 }
  0x76   :  { %v15_v24 = vpop.permute.xlu0 %14   ;;  %v35_v25 = vpop.permute.xlu1 %34  }
  0x77   :  { %17 = vst.msk [vmem:[%s197_s1] sm:$0xff] %vm16_vm2, %v15_v24  }
  0x7a   :  { %v25_v26 = vpop.permute.xlu0 %24   ;;  %v45_v27 = vpop.permute.xlu1 %44  }
  0x7b   :  { %27 = vst.msk [vmem:[%s197_s1] sm:$0xff] %vm26_vm3, %v25_v26  }
  0x7c   :  { %37 = vst.msk [vmem:[%s197_s1] sm:$0xff] %vm36_vm4, %v35_v25  }
  0x7d   :  { %47 = vst.msk [vmem:[%s197_s1] sm:$0xff] %vm46_vm5, %v45_v27  }
  0x7e   :  { %v55_v28 = vpop.permute.xlu0 %54   ;;  %v65_v29 = vpop.permute.xlu1 %64  }
  0x7f   :  { %57 = vst.msk [vmem:[%s197_s1] sm:$0xff] %vm56_vm6, %v55_v28  }
  0x80   :  { %67 = vst.msk [vmem:[%s197_s1] sm:$0xff] %vm66_vm7, %v65_v29  }
  0x82   :  { %v75_v30 = vpop.permute.xlu0 %74  }
  0x83   :  { %77 = vst.msk [vmem:[%s197_s1] sm:$0xff] %vm76_vm8, %v75_v30  }

// kernel: keypoint_vit_forward.1
= control target key start
LH: loop header
LB: loop body
LE: loop exit
PB: predicated region body
PF: predicated region fallthrough
CT: control target
= control target key end

     0   :  { %s8346_s13 = smov 0   ;;  %s10942_s0 = inlined_call_operand.vmem [shape: f32[64,10], index: 0, kind: input, shape index: {}]   ;;  %s10943_s1 = inlined_call_operand.vmem [shape: f32[10,32], index: 1, kind: input, shape index: {}]   ;;  %s10944_s2 = inlined_call_operand.vmem [shape: f32[16,32], index: 2, kind: input, shape index: {}]   ;;  %s10945_s3 = inlined_call_operand.vmem [shape: f32[3,32,96], index: 3, kind: input, shape index: {}]   ;;  %s10946_s4 = inlined_call_operand.vmem [shape: f32[3,96], index: 4, kind: input, shape index: {}]   ;;  %s10947_s5 = inlined_call_operand.vmem [shape: f32[3,32,32], index: 5, kind: input, shape index: {}]   ;;  %s10948_s6 = inlined_call_operand.vmem [shape: f32[2,32,128], index: 6, kind: input, shape index: {}]   ;;  %s10949_s7 = inlined_call_operand.vmem [shape: f32[2,128], index: 7, kind: input, shape index: {}]   ;;  %s10950_s8 = inlined_call_operand.vmem [shape: f32[2,128,32], index: 8, kind: input, shape index: {}]   ;;  %s10951_s9 = inlined_call_operand.vmem [shape: f32[33,3], index: 9, kind: input, shape index: {}]   ;;  %s10952_s10 = inlined_call_operand.vmem [shape: f32[64,3], index: 10, kind: output, shape index: {}]  }
   0x1 LB: > { %s6346_s14 = sadd.s32 4294967295, %s8272_s13   ;;  %p6350_p0 = scmp.ge.s32.totalorder %s8272_s13, 1  ;;  %s8272_s13 = sphi %s8346_s13, %s20_s13  }
   0x2   : > { %p313_p1 = scmp.lt.s32.totalorder %s8272_s13, 3 }
   0x4   : > { %p314_p2 = pnand %p6350_p0, %p313_p1 }
   0x5   : > { %s6351_s19 = sshll.u32 (!%p314_p2), %s6346_s14, 2  ;;  %s8276_s17 = smov (!%p314_p2), 96  }
   0x6   : > { %317 = sbr.rel (%p314_p2) target bundleno = 7254 (0x1c56), region = 60  ;;  %p352_p3 = scmp.lt.s32.totalorder (!%p314_p2), %s6351_s19, 7 }
   0x7   : > { %s8277_s18 = smov (!%p314_p2), 88   ;;  %s8278_s20 = smov (!%p314_p2), 80  }
   0x8   : > { %s8279_s21 = smov (!%p314_p2), 120   ;;  %s8280_s22 = smov (!%p314_p2), 72  }
   0x9   : > { %s8281_s23 = smov (!%p314_p2), 112   ;;  %s10968_s25 = smov (!%p314_p2), 104  }
   0xa   : > { %s10966_s26 = smov (!%p314_p2), 64   ;;  %s10962_s28 = smov (!%p314_p2), 48  }
   0xb   : > { %v428_v0 = vld [vmem:[%s10943_s1 + $0x8] sm:$0x3]  ;;  %vm442_vm0 = vcmask 1041408   ;;  %v427_v1 = vld [vmem:[%s10943_s1] sm:$0xff]  ;;  %v539_v2 = vld [vmem:[%s10945_s3 + $0x18] sm:$0xff]  ;;  %v8274_v3 = vmov 0.0  }
   0xc   : > { %7030 = vmatprep.subr.msk.mxu1 %vm442_vm0, %v428_v0  ;;  %7040 = vmatprep.subr.mxu0 %v8274_v3  ;;  %v538_v4 = vld [vmem:[%s10945_s3 + $0x10] sm:$0xff]  ;;  %s10980_s19 = smov (!%p352_p3, %s6351_s19), 7  ;;  %vm429_vm1 = vcmask 80896   ;;  %v537_v9 = vld [vmem:[%s10945_s3 + $0x8] sm:$0xff]  ;;  %v536_v10 = vld [vmem:[%s10945_s3] sm:$0xff]  ;;  %vm8275_vm2 = vmmov 0  }
   0xd   : > { %7031 = vmatpush3.msk.msra.mxu1 %vm442_vm0, %v428_v0  ;;  %7041 = vmatpush3.msra.mxu0 %v539_v2  ;;  %s10953_s24 = sshll.u32 %s10980_s19, 3  ;;  %vm550_vm3 = vcmask 261120   ;;  %v6366_v15 = vld [vmem:[%s10944_s2] ss:$0 sm:$0xff]  ;;  %vm671_vm4 = vcmask 64512   ;;  %vm878_vm5 = vcmask 1043456  }
   0xe   : > { %7032 = vmatprep.subr.mxu1 %v427_v1  ;;  %7042 = vmatprep.subr.mxu0 %v8274_v3  ;;  %s355_s27 = scalar_lea.vmem %s10942_s0, %s10953_s24  ;;  %v6367_v20 = vld [vmem:[%s10946_s4] ss:$0 sm:$0xff]  ;;  %vm792_vm11 = vcmask 293888   ;;  %s10954_s29 = smov 40  }
   0xf   : > { %7033 = vmatpush3.msra.mxu1 %v427_v1  ;;  %7043 = vmatpush3.msra.mxu0 %v538_v4  ;;  %v423_v5 = vld [vmem:[%s355_s27] sm:$0xff]  ;;  %v424_v6 = vld [vmem:[%s355_s27 + $0x8] sm:$0xff]  ;;  %v425_v7 = vld [vmem:[%s355_s27 + $0x10] sm:$0xff]  ;;  %s10960_s30 = smov 8   ;;  %s10958_s11 = smov 16  }
  0x10   : > { %7088 = vmatprep.subr.mxu1 %v8274_v3  ;;  %7044 = vmatprep.subr.mxu0 %v8274_v3  ;;  %v426_v8 = vld [vmem:[%s355_s27 + $0x18] sm:$0xff]  ;;  %s10964_s27 = smov 56   ;;  %s10956_s24 = smov 24  }
  0x11   : > { %7034 = vmatprep.mubr.msk.f32.mxu1 %vm429_vm1, %v423_v5  ;;  %7045 = vmatpush3.msra.mxu0 %v537_v9  ;;  %s10970_s16 = smov 40   ;;  %s10971_s12 = smov 8  }
  0x12   : > { %7035 = vmatmul.mubr.msk.f32.vlgmr.msra.gmra.mxu1 %vm429_vm1, %v424_v6  ;;  %7046 = vmatprep.subr.mxu0 %v8274_v3 }
  0x13   : > { %7037 = vmatprep.mubr.msk.f32.mxu1 %vm429_vm1, %v425_v7  ;;  %7047 = vmatpush3.msra.mxu0 %v536_v10 }
  0x14   : > { %7048 = vmatprep.mubr.msk.f32.mxu0 %vm8275_vm2, %v8274_v3  ;;  %7063 = vmatprep.subr.mxu0 %v8274_v3 }
  0x16   : > { %7038 = vmatmul.mubr.msk.f32.gmra.mxu1 %vm429_vm1, %v426_v8 }
  0x17   : > { %7098 = vmatprep.mubr.msk.f32.mxu1 %vm8275_vm2, %v8274_v3 }
  0xd2   : > { %v8390_v11 = vpop.f32.mrf.mxu1 }
  0xd4   : > { %v8392_v12 = vpop.f32.mrf.mxu1 }
  0xd5   : > { %7049 = vmatmul.mubr.msk.f32.vlgmr.msra.gmra.mxu0 %vm550_vm3, %v8392_v12 }
  0xd6   : > { %7051 = vmatprep.mubr.msk.f32.mxu0 %vm8275_vm2, %v8274_v3  ;;  %v8398_v13 = vpop.f32.mrf.mxu1 }
  0xd8   : > { %v8404_v14 = vpop.f32.mrf.mxu1 }
  0xd9   : > { %7052 = vmatmul.mubr.msk.f32.gmra.mxu0 %vm550_vm3, %v8390_v11 }
  0xda   : > { %7054 = vmatprep.mubr.msk.f32.mxu0 %vm8275_vm2, %v8274_v3 }
  0xdd   : > { %7055 = vmatmul.mubr.msk.f32.gmra.mxu0 %vm550_vm3, %v8404_v14 }
  0xde   : > { %7057 = vmatprep.mubr.msk.f32.mxu0 %vm8275_vm2, %v8274_v3 }
  0xe1   : > { %7058 = vmatmul.mubr.msk.f32.gmra.mxu0 %vm550_vm3, %v8398_v13 }
  0xe2   : > { %7060 = vmatprep.mubr.msk.f32.mxu0 %vm8275_vm2, %v8274_v3 }
  0xe5   : > { %7061 = vmatmul.mubr.msk.f32.gmra.mxu0 %vm550_vm3, %v6366_v15  ;;  %v363_v15 = vlaneseq }
  0xe6   : > { %7073 = vmatprep.mubr.msk.f32.mxu0 %vm8275_vm2, %v8274_v3 }
 0x195   : > { %v632_v16 = vpop.f32.mrf.mxu0 }
 0x196   : > { %v8443_v31 = vadd.f32 %v6367_v20, %v632_v16  ;;  %v364_v16 = vshrl.u32 %v363_v15, 7 }
 0x197   : > { %v7050_v17 = vpop.f32.mrf.mxu0 }
 0x198   : > { %v375_v17 = vand.u32 127, %v363_v15 }
 0x199   : > { %v637_v18 = vpop.f32.mrf.mxu0 }
 0x19a   : > { %v8427_v25 = vadd.f32 %v6367_v20, %v637_v18  ;;  %v369_v18 = vcvt.s32.f32 %v364_v16 }
 0x19b   : > { %v7053_v19 = vpop.f32.mrf.mxu0 }
 0x19c   : > { %v376_v19 = vcvt.s32.f32 %v375_v17  ;;  %vm377_vm6 = vcmp.lt.f32.partialorder %v369_v18, 32.0 }
 0x19d   : > { %v642_v21 = vpop.f32.mrf.mxu0 }
 0x19e   : > { %v8423_v22 = vadd.f32 %v6367_v20, %v642_v21  ;;  %v382_v21 = vadd.f32 0.5, %v369_v18  ;;  %vm407_vm7 = vcmp.lt.f32.partialorder %v376_v19, 32.0 }
 0x19f   : > { %v7056_v23 = vpop.f32.mrf.mxu0 }
 0x1a0   : > { %665 = vrot.lane.b32.xlu1 %v8423_v22, %s8276_s17  ;;  %v408_v23 = vadd.f32 0.5, %v376_v19 }
 0x1a1   : > { %v647_v24 = vpop.f32.mrf.mxu0 }
 0x1a2   : > { %v8437_v30 = vadd.f32 %v6367_v20, %v647_v24 }
 0x1a3   : > { %v7059_v26 = vpop.f32.mrf.mxu0 }
 0x1a4   : > { %663 = vrot.lane.b32.xlu1 %v8427_v25, %s8276_s17  ;;  %v366_v26 = vadd.s32 16, %v364_v16 }
 0x1a5   : > { %v652_v27 = vpop.f32.mrf.mxu0 }
 0x1a6   : > { %v8431_v28 = vadd.f32 %v6367_v20, %v652_v27  ;;  %v365_v20 = vadd.s32 8, %v364_v16  ;;  %v387_v27 = vmul.f32 0.125, %v382_v21 }
 0x1a7   : > { %v7062_v29 = vpop.f32.mrf.mxu0 }
 0x1a8   : > { %989 = vrot.lane.b32.xlu1 %v8431_v28, %s8277_s18  ;;  %669 = vrot.lane.b32.xlu0 %v8431_v28, %s8276_s17  ;;  %v370_v24 = vcvt.s32.f32 %v365_v20  ;;  %v409_v29 = vmul.f32 0.125, %v408_v23 }
 0x1aa   : > { %vm378_vm8 = vcmp.lt.f32.partialorder %v370_v24, 32.0 }
 0x1ac   : > { %985 = vrot.lane.b32.xlu1 %v8423_v22, %s8277_s18  ;;  %667 = vrot.lane.b32.xlu0 %v8437_v30, %s8276_s17 }
 0x1b0   : > { %981 = vrot.lane.b32.xlu1 %v8443_v31, %s8277_s18  ;;  %661 = vrot.lane.b32.xlu0 %v8443_v31, %s8276_s17 }
 0x1b4   : > { %1305 = vrot.lane.b32.xlu1 %v8431_v28, %s8278_s20  ;;  %987 = vrot.lane.b32.xlu0 %v8437_v30, %s8277_s18 }
 0x1b8   : > { %1303 = vrot.lane.b32.xlu1 %v8437_v30, %s8278_s20  ;;  %983 = vrot.lane.b32.xlu0 %v8427_v25, %s8277_s18 }
 0x1bc   : > { %1301 = vrot.lane.b32.xlu1 %v8423_v22, %s8278_s20  ;;  %971 = vrot.lane.b32.xlu0 %v8443_v31, %s8279_s21 }
 0x1c0   : > { %1299 = vrot.lane.b32.xlu1 %v8427_v25, %s8278_s20  ;;  %973 = vrot.lane.b32.xlu0 %v8427_v25, %s8279_s21 }
 0x1c4   : > { %1297 = vrot.lane.b32.xlu1 %v8443_v31, %s8278_s20  ;;  %975 = vrot.lane.b32.xlu0 %v8423_v22, %s8279_s21 }
 0x1c8   : > { %1621 = vrot.lane.b32.xlu1 %v8431_v28, %s8280_s22  ;;  %977 = vrot.lane.b32.xlu0 %v8437_v30, %s8279_s21 }
 0x1cc   : > { %1619 = vrot.lane.b32.xlu1 %v8437_v30, %s8280_s22  ;;  %979 = vrot.lane.b32.xlu0 %v8431_v28, %s8279_s21 }
 0x1d0   : > { %1617 = vrot.lane.b32.xlu1 %v8423_v22, %s8280_s22  ;;  %1287 = vrot.lane.b32.xlu0 %v8443_v31, %s8281_s23 }
 0x1d4   : > { %1615 = vrot.lane.b32.xlu1 %v8427_v25, %s8280_s22  ;;  %1289 = vrot.lane.b32.xlu0 %v8427_v25, %s8281_s23 }
 0x1d8   : > { %1613 = vrot.lane.b32.xlu1 %v8443_v31, %s8280_s22  ;;  %1291 = vrot.lane.b32.xlu0 %v8423_v22, %s8281_s23 }
 0x1dc   : > { %1605 = vrot.lane.b32.xlu1 %v8427_v25, %s10968_s25  ;;  %1293 = vrot.lane.b32.xlu0 %v8437_v30, %s8281_s23 }
 0x1e0   : > { %1609 = vrot.lane.b32.xlu1 %v8437_v30, %s10968_s25  ;;  %1295 = vrot.lane.b32.xlu0 %v8431_v28, %s8281_s23 }
 0x1e4   : > { %853 = vrot.lane.b32.xlu1 %v8423_v22, %s10966_s26  ;;  %1603 = vrot.lane.b32.xlu0 %v8443_v31, %s10968_s25 }
 0x1e8   : > { %1170 = vrot.lane.b32.xlu1 %v8423_v22, %s10964_s27  ;;  %1607 = vrot.lane.b32.xlu0 %v8423_v22, %s10968_s25 }
 0x1ec   : > { %1486 = vrot.lane.b32.xlu1 %v8423_v22, %s10962_s28  ;;  %1611 = vrot.lane.b32.xlu0 %v8431_v28, %s10968_s25 }
 0x1f0   : > { %857 = vrot.lane.b32.xlu1 %v8431_v28, %s10966_s26  ;;  %855 = vrot.lane.b32.xlu0 %v8437_v30, %s10966_s26 }
 0x1f4   : > { %1174 = vrot.lane.b32.xlu1 %v8431_v28, %s10964_s27  ;;  %851 = vrot.lane.b32.xlu0 %v8427_v25, %s10966_s26 }
 0x1f8   : > { %1490 = vrot.lane.b32.xlu1 %v8431_v28, %s10962_s28  ;;  %849 = vrot.lane.b32.xlu0 %v8443_v31, %s10966_s26 }
 0x1fc   : > { %1172 = vrot.lane.b32.xlu0 %v8437_v30, %s10964_s27 }
 0x200   : > { %1168 = vrot.lane.b32.xlu0 %v8427_v25, %s10964_s27 }
 0x204   : > { %1166 = vrot.lane.b32.xlu0 %v8443_v31, %s10964_s27 }
 0x208   : > { %1488 = vrot.lane.b32.xlu0 %v8437_v30, %s10962_s28 }
 0x20c   : > { %1484 = vrot.lane.b32.xlu0 %v8427_v25, %s10962_s28 }
 0x212   : > { %v666_v32 = vpop.permute.xlu1 %665 }
 0x216   : > { %v664_v33 = vpop.permute.xlu1 %663 }
 0x21a   : > { %v990_v34 = vpop.permute.xlu1 %989  ;;  %v670_v35 = vpop.permute.xlu0 %669 }
 0x21b   : > { %7064 = vmatpush3.xpose.msk.msra.mxu0 %vm671_vm4, %v670_v35  ;;  %v392_v35 = vfloor.f32 %v387_v27 }
 0x21c   : > { %7065 = vmatprep.subr.mxu0 %v8274_v3 }
 0x21e   : > { %v986_v36 = vpop.permute.xlu1 %985  ;;  %v668_v37 = vpop.permute.xlu0 %667 }
 0x21f   : > { %7066 = vmatpush3.xpose.msk.msra.mxu0 %vm671_vm4, %v668_v37  ;;  %v410_v37 = vfloor.f32 %v409_v29 }
 0x220   : > { %7067 = vmatprep.subr.mxu0 %v8274_v3 }
 0x222   : > { %v982_v38 = vpop.permute.xlu1 %981  ;;  %v662_v39 = vpop.permute.xlu0 %661 }
 0x223   : > { %7068 = vmatpush3.xpose.msk.msra.mxu0 %vm671_vm4, %v666_v32  ;;  %v383_v32 = vadd.f32 0.5, %v370_v24 }
 0x224   : > { %7069 = vmatprep.subr.mxu0 %v8274_v3 }
 0x226   : > { %v1306_v40 = vpop.permute.xlu1 %1305  ;;  %v988_v41 = vpop.permute.xlu0 %987 }
 0x227   : > { %7070 = vmatpush3.xpose.msk.msra.mxu0 %vm671_vm4, %v664_v33  ;;  %v371_v33 = vcvt.s32.f32 %v366_v26 }
 0x228   : > { %7071 = vmatprep.subr.mxu0 %v8274_v3 }
 0x229   : > { %vm379_vm10 = vcmp.lt.f32.partialorder %v371_v33, 32.0 }
 0x22a   : > { %v1304_v42 = vpop.permute.xlu1 %1303  ;;  %v984_v43 = vpop.permute.xlu0 %983 }
 0x22b   : > { %7072 = vmatpush3.xpose.msk.msra.mxu0 %vm671_vm4, %v662_v39  ;;  %v388_v39 = vmul.f32 0.125, %v383_v32 }
 0x22c   : > { %7113 = vmatprep.subr.mxu0 %v8274_v3 }
 0x22e   : > { %v1302_v44 = vpop.permute.xlu1 %1301  ;;  %7074 = vmatmul.mubr.msk.f32.vlgmr.msra.gmra.mxu0 %vm671_vm4, %v8443_v31  ;;  %v972_v45 = vpop.permute.xlu0 %971 }
 0x22f   : > { %7114 = vmatpush3.xpose.msk.msra.mxu0 %vm671_vm4, %v990_v34  ;;  %7076 = vmatprep.mubr.msk.f32.mxu0 %vm8275_vm2, %v8274_v3  ;;  %v367_v34 = vadd.s32 24, %v364_v16 }
 0x230   : > { %7115 = vmatprep.subr.mxu0 %v8274_v3 }
 0x232   : > { %v1300_v46 = vpop.permute.xlu1 %1299  ;;  %7077 = vmatmul.mubr.msk.f32.gmra.mxu0 %vm671_vm4, %v8427_v25  ;;  %v974_v47 = vpop.permute.xlu0 %973 }
 0x233   : > { %7116 = vmatpush3.xpose.msk.msra.mxu0 %vm671_vm4, %v988_v41  ;;  %7079 = vmatprep.mubr.msk.f32.mxu0 %vm8275_vm2, %v8274_v3  ;;  %v372_v41 = vcvt.s32.f32 %v367_v34 }
 0x234   : > { %7117 = vmatprep.subr.mxu0 %v8274_v3 }
 0x235   : > { %vm380_vm13 = vcmp.lt.f32.partialorder %v372_v41, 32.0 }
 0x236   : > { %v1298_v48 = vpop.permute.xlu1 %1297  ;;  %7080 = vmatmul.mubr.msk.f32.gmra.mxu0 %vm671_vm4, %v8423_v22  ;;  %v976_v49 = vpop.permute.xlu0 %975 }
 0x237   : > { %7118 = vmatpush3.xpose.msk.msra.mxu0 %vm671_vm4, %v986_v36  ;;  %7082 = vmatprep.mubr.msk.f32.mxu0 %vm8275_vm2, %v8274_v3  ;;  %v6355_v36 = vadd.f32 -32.0, %v369_v18 }
 0x238   : > { %7119 = vmatprep.subr.mxu0 %v8274_v3 }
 0x23a   : > { %v1622_v50 = vpop.permute.xlu1 %1621  ;;  %7083 = vmatmul.mubr.msk.f32.gmra.mxu0 %vm671_vm4, %v8437_v30  ;;  %v978_v51 = vpop.permute.xlu0 %977 }
 0x23b   : > { %7120 = vmatpush3.xpose.msk.msra.mxu0 %vm671_vm4, %v984_v43  ;;  %7085 = vmatprep.mubr.msk.f32.mxu0 %vm8275_vm2, %v8274_v3  ;;  %v402_v43 = vsel %vm377_vm6, %v392_v35, %v6355_v36  ;;  %vm805_vm6 = vcmask 289792  }
 0x23c   : > { %7121 = vmatprep.subr.mxu0 %v8274_v3 }
 0x23e   : > { %v1620_v52 = vpop.permute.xlu1 %1619  ;;  %7086 = vmatmul.mubr.msk.f32.gmra.mxu0 %vm671_vm4, %v8431_v28  ;;  %v980_v53 = vpop.permute.xlu0 %979 }
 0x23f   : > { %7122 = vmatpush3.xpose.msk.msra.mxu0 %vm671_vm4, %v982_v38  ;;  %7123 = vmatprep.mubr.msk.f32.mxu0 %vm8275_vm2, %v8274_v3  ;;  %v6360_v38 = vadd.f32 -32.0, %v376_v19 }
 0x240   : > { %7163 = vmatprep.subr.mxu0 %v8274_v3 }
 0x242   : > { %v1618_v54 = vpop.permute.xlu1 %1617  ;;  %7124 = vmatmul.mubr.msk.f32.vlgmr.msra.gmra.mxu0 %vm671_vm4, %v972_v45  ;;  %v1288_v55 = vpop.permute.xlu0 %1287  ;;  %v393_v45 = vfloor.f32 %v388_v39 }
 0x243   : > { %7164 = vmatpush3.xpose.msk.msra.mxu0 %vm671_vm4, %v1306_v40  ;;  %7126 = vmatprep.mubr.msk.f32.mxu0 %vm8275_vm2, %v8274_v3  ;;  %v384_v40 = vadd.f32 0.5, %v371_v33 }
 0x244   : > { %7165 = vmatprep.subr.mxu0 %v8274_v3 }
 0x246   : > { %v1616_v56 = vpop.permute.xlu1 %1615  ;;  %7127 = vmatmul.mubr.msk.f32.gmra.mxu0 %vm671_vm4, %v974_v47  ;;  %v1290_v57 = vpop.permute.xlu0 %1289  ;;  %v389_v47 = vmul.f32 0.125, %v384_v40 }
 0x247   : > { %7166 = vmatpush3.xpose.msk.msra.mxu0 %vm671_vm4, %v1304_v42  ;;  %7129 = vmatprep.mubr.msk.f32.mxu0 %vm8275_vm2, %v8274_v3  ;;  %v368_v42 = vadd.s32 32, %v364_v16 }
 0x248   : > { %7167 = vmatprep.subr.mxu0 %v8274_v3 }
 0x24a   : > { %v1614_v58 = vpop.permute.xlu1 %1613  ;;  %7130 = vmatmul.mubr.msk.f32.gmra.mxu0 %vm671_vm4, %v976_v49  ;;  %v1292_v59 = vpop.permute.xlu0 %1291  ;;  %v373_v49 = vcvt.s32.f32 %v368_v42 }
 0x24b   : > { %7168 = vmatpush3.xpose.msk.msra.mxu0 %vm671_vm4, %v1302_v44  ;;  %7132 = vmatprep.mubr.msk.f32.mxu0 %vm8275_vm2, %v8274_v3  ;;  %v412_v44 = vsel %vm407_vm7, %v410_v37, %v6360_v38  ;;  %vm1984_vm7 = vcmask 130048  }
 0x24c   : > { %7169 = vmatprep.subr.mxu0 %v8274_v3  ;;  %vm413_vm9 = vcmp.eq.f32.partialorder %v402_v43, %v412_v44  ;;  %v6359_v15 = vadd.f32 -32.0, %v373_v49  ;;  %vm381_vm15 = vcmp.lt.f32.partialorder %v373_v49, 32.0 }
 0x24e   : > { %v1606_v60 = vpop.permute.xlu1 %1605  ;;  %7133 = vmatmul.mubr.msk.f32.gmra.mxu0 %vm671_vm4, %v978_v51  ;;  %v1294_v61 = vpop.permute.xlu0 %1293  ;;  %v394_v51 = vfloor.f32 %v389_v47 }
 0x24f   : > { %7170 = vmatpush3.xpose.msk.msra.mxu0 %vm671_vm4, %v1300_v46  ;;  %7135 = vmatprep.mubr.msk.f32.mxu0 %vm8275_vm2, %v8274_v3  ;;  %v6356_v46 = vadd.f32 -32.0, %v370_v24 }
 0x250   : > { %7171 = vmatprep.subr.mxu0 %v8274_v3 }
 0x252   : > { %v1610_v62 = vpop.permute.xlu1 %1609  ;;  %7136 = vmatmul.mubr.msk.f32.gmra.mxu0 %vm671_vm4, %v980_v53  ;;  %v1296_v63 = vpop.permute.xlu0 %1295 }
 0x253   : > { %7172 = vmatpush3.xpose.msk.msra.mxu0 %vm671_vm4, %v1298_v48  ;;  %7173 = vmatprep.mubr.msk.f32.mxu0 %vm8275_vm2, %v8274_v3  ;;  %v385_v48 = vadd.f32 0.5, %v372_v41 }
 0x254   : > { %7213 = vmatprep.subr.mxu0 %v8274_v3 }
 0x255   : > { %v390_v53 = vmul.f32 0.125, %v385_v48 }
 0x256   : > { %v854_v0 = vpop.permute.xlu1 %853  ;;  %7174 = vmatmul.mubr.msk.f32.vlgmr.msra.gmra.mxu0 %vm671_vm4, %v1288_v55  ;;  %v1604_v1 = vpop.permute.xlu0 %1603 }
 0x257   : > { %7214 = vmatpush3.xpose.msk.msra.mxu0 %vm671_vm4, %v1622_v50  ;;  %7176 = vmatprep.mubr.msk.f32.mxu0 %vm8275_vm2, %v8274_v3  ;;  %v403_v50 = vsel %vm378_vm8, %v393_v45, %v6356_v46  ;;  %vm1990_vm8 = vcmask 195584  }
 0x258   : > { %7215 = vmatprep.subr.mxu0 %v8274_v3  ;;  %vm414_vm12 = vcmp.eq.f32.partialorder %v403_v50, %v412_v44 }
 0x25a   : > { %v8601_v2 = vpop.permute.xlu1 %1170  ;;  %7177 = vmatmul.mubr.msk.f32.gmra.mxu0 %vm671_vm4, %v1290_v57  ;;  %v1608_v4 = vpop.permute.xlu0 %1607 }
 0x25b   : > { %7216 = vmatpush3.xpose.msk.msra.mxu0 %vm671_vm4, %v1620_v52  ;;  %7179 = vmatprep.mubr.msk.f32.mxu0 %vm8275_vm2, %v8274_v3  ;;  %v6357_v52 = vadd.f32 -32.0, %v371_v33 }
 0x25c   : > { %7217 = vmatprep.subr.mxu0 %v8274_v3 }
 0x25e   : > { %v8608_v5 = vpop.permute.xlu1 %1486  ;;  %7180 = vmatmul.mubr.msk.f32.gmra.mxu0 %vm671_vm4, %v1292_v59  ;;  %v1612_v6 = vpop.permute.xlu0 %1611 }
 0x25f   : > { %7218 = vmatpush3.xpose.msk.msra.mxu0 %vm671_vm4, %v1618_v54  ;;  %7182 = vmatprep.mubr.msk.f32.mxu0 %vm8275_vm2, %v8274_v3  ;;  %v386_v54 = vadd.f32 0.5, %v373_v49 }
 0x260   : > { %7219 = vmatprep.subr.mxu0 %v8274_v3 }
 0x262   : > { %v858_v7 = vpop.permute.xlu1 %857  ;;  %7183 = vmatmul.mubr.msk.f32.gmra.mxu0 %vm671_vm4, %v1294_v61  ;;  %v856_v8 = vpop.permute.xlu0 %855  ;;  %v395_v61 = vfloor.f32 %v390_v53 }
 0x263   : > { %7089 = vmatpush3.msk.msra.mxu1 %vm878_vm5, %v858_v7  ;;  %7220 = vmatpush3.xpose.msk.msra.mxu0 %vm671_vm4, %v1616_v56  ;;  %v8286_v56 = vmov -1e+30  }
 0x264   : > { %7090 = vmatprep.subr.mxu1 %v8274_v3  ;;  %7185 = vmatprep.mubr.msk.f32.mxu0 %vm8275_vm2, %v8274_v3  ;;  %v8646_v57 = vsel %vm413_vm9, 0.0, %v8286_v56  ;;  %vm2128_vm9 = vcmask 257024  }
 0x265   : > { %7091 = vmatpush3.msra.mxu1 %v856_v8  ;;  %7221 = vmatprep.subr.mxu0 %v8274_v3 }
 0x266   : > { %7092 = vmatprep.subr.mxu1 %v8274_v3  ;;  %7186 = vmatmul.mubr.msk.f32.gmra.mxu0 %vm671_vm4, %v1296_v63  ;;  %v852_v9 = vpop.permute.xlu0 %851  ;;  %v391_v63 = vmul.f32 0.125, %v386_v54 }
 0x267   : > { %7093 = vmatpush3.msra.mxu1 %v854_v0  ;;  %7222 = vmatpush3.xpose.msk.msra.mxu0 %vm671_vm4, %v1614_v58 }
 0x268   : > { %7094 = vmatprep.subr.mxu1 %v8274_v3  ;;  %7223 = vmatprep.mubr.msk.f32.mxu0 %vm8275_vm2, %v8274_v3 }
 0x269   : > { %7095 = vmatpush3.msra.mxu1 %v852_v9  ;;  %7263 = vmatprep.subr.mxu0 %v8274_v3 }
 0x26a   : > { %7096 = vmatprep.subr.mxu1 %v8274_v3  ;;  %7224 = vmatmul.mubr.msk.f32.vlgmr.msra.gmra.mxu0 %vm671_vm4, %v1604_v1  ;;  %v850_v10 = vpop.permute.xlu0 %849 }
 0x26b   : > { %7097 = vmatpush3.msra.mxu1 %v850_v10  ;;  %7226 = vmatprep.mubr.msk.f32.mxu0 %vm8275_vm2, %v8274_v3  ;;  %v396_v10 = vfloor.f32 %v391_v63 }
 0x26c   : > { %7138 = vmatprep.subr.mxu1 %v8274_v3 }
 0x26d   : > { %v406_v23 = vsel %vm381_vm15, %v396_v10, %v6359_v15 }
 0x26e   : > { %7227 = vmatmul.mubr.msk.f32.gmra.mxu0 %vm671_vm4, %v1606_v60  ;;  %v404_v60 = vsel %vm379_vm10, %v394_v51, %v6357_v52  ;;  %vm417_vm1 = vcmp.eq.f32.partialorder %v406_v23, %v412_v44 }
 0x26f   : > { %7229 = vmatprep.mubr.msk.f32.mxu0 %vm8275_vm2, %v8274_v3  ;;  %vm415_vm14 = vcmp.eq.f32.partialorder %v404_v60, %v412_v44  ;;  %v8672_v36 = vsel %vm417_vm1, 0.0, %v8286_v56 }
 0x270   : > { %v8658_v18 = vsel %vm415_vm14, 0.0, %v8286_v56 }
 0x272   : > { %7230 = vmatmul.mubr.msk.f32.gmra.mxu0 %vm671_vm4, %v1608_v4  ;;  %v8651_v4 = vsel %vm414_vm12, 0.0, %v8286_v56 }
 0x273   : > { %7232 = vmatprep.mubr.msk.f32.mxu0 %vm8275_vm2, %v8274_v3 }
 0x276   : > { %7233 = vmatmul.mubr.msk.f32.gmra.mxu0 %vm671_vm4, %v1610_v62  ;;  %v6358_v62 = vadd.f32 -32.0, %v372_v41 }
 0x277   : > { %7235 = vmatprep.mubr.msk.f32.mxu0 %vm8275_vm2, %v8274_v3 }
 0x278   : > { %v405_v9 = vsel %vm380_vm13, %v395_v61, %v6358_v62 }
 0x279   : > { %vm416_vm0 = vcmp.eq.f32.partialorder %v405_v9, %v412_v44 }
 0x27a   : > { %7236 = vmatmul.mubr.msk.f32.gmra.mxu0 %vm671_vm4, %v1612_v6  ;;  %v8665_v27 = vsel %vm416_vm0, 0.0, %v8286_v56 }
 0x27b   : > { %7271 = vmatprep.mubr.msk.f32.mxu0 %vm8275_vm2, %v8274_v3 }
 0x2ee   : > { %v758_v55 = vpop.f32.mrf.mxu0 }
 0x2ef   : > { %v782_v58 = vmul.f32 0.35355338, %v758_v55 }
 0x2f0   : > { %v7075_v59 = vpop.f32.mrf.mxu0 }
 0x2f1   : > { %v8649_v0 = vadd.f32 %v782_v58, %v8646_v57 }
 0x2f2   : > { %v763_v1 = vpop.f32.mrf.mxu0 }
 0x2f3   : > { %v783_v6 = vmul.f32 0.35355338, %v763_v1  ;;  %v793_v7 = vsel %vm792_vm11, %v8649_v0, -inf }
 0x2f4   : > { %794 = vmax.xlane.f32.xlu1 %v793_v7  ;;  %v7078_v8 = vpop.f32.mrf.mxu0 }
 0x2f5   : > { %v8656_v16 = vadd.f32 %v783_v6, %v8651_v4 }
 0x2f6   : > { %v768_v17 = vpop.f32.mrf.mxu0 }
 0x2f7   : > { %v784_v19 = vmul.f32 0.35355338, %v768_v17  ;;  %v796_v20 = vsel %vm792_vm11, %v8656_v16, -inf }
 0x2f8   : > { %797 = vmax.xlane.f32.xlu0 %v796_v20  ;;  %v7081_v21 = vpop.f32.mrf.mxu0 }
 0x2f9   : > { %v8663_v24 = vadd.f32 %v784_v19, %v8658_v18 }
 0x2fa   : > { %v773_v26 = vpop.f32.mrf.mxu0 }
 0x2fb   : > { %v785_v29 = vmul.f32 0.35355338, %v773_v26  ;;  %v799_v32 = vsel %vm792_vm11, %v8663_v24, -inf }
 0x2fc   : > { %800 = vmax.xlane.f32.xlu0 %v799_v32  ;;  %v7084_v33 = vpop.f32.mrf.mxu0 }
 0x2fd   : > { %v8670_v34 = vadd.f32 %v785_v29, %v8665_v27 }
 0x2fe   : > { %v778_v35 = vpop.f32.mrf.mxu0 }
 0x2ff   : > { %v786_v37 = vmul.f32 0.35355338, %v778_v35  ;;  %v802_v38 = vsel %vm792_vm11, %v8670_v34, -inf }
 0x300   : > { %803 = vmax.xlane.f32.xlu1 %v802_v38  ;;  %v7087_v39 = vpop.f32.mrf.mxu0 }
 0x301   : > { %v8677_v40 = vadd.f32 %v786_v37, %v8672_v36 }
 0x302   : > { %v1077_v41 = vpop.f32.mrf.mxu0 }
 0x303   : > { %v1101_v42 = vmul.f32 0.35355338, %v1077_v41  ;;  %v806_v43 = vsel %vm805_vm6, %v8677_v40, -inf }
 0x304   : > { %807 = vmax.xlane.f32.xlu0 %v806_v43  ;;  %v7125_v44 = vpop.f32.mrf.mxu0 }
 0x305   : > { %v8682_v45 = vadd.f32 %v1101_v42, %v8646_v57 }
 0x306   : > { %v1082_v46 = vpop.f32.mrf.mxu0 }
 0x307   : > { %v1102_v47 = vmul.f32 0.35355338, %v1082_v46  ;;  %v1111_v48 = vsel %vm792_vm11, %v8682_v45, -inf }
 0x308   : > { %1112 = vmax.xlane.f32.xlu1 %v1111_v48  ;;  %v7128_v49 = vpop.f32.mrf.mxu0 }
 0x309   : > { %v8687_v50 = vadd.f32 %v1102_v47, %v8651_v4 }
 0x30a   : > { %v1087_v51 = vpop.f32.mrf.mxu0 }
 0x30b   : > { %v1103_v52 = vmul.f32 0.35355338, %v1087_v51  ;;  %v1114_v53 = vsel %vm792_vm11, %v8687_v50, -inf }
 0x30c   : > { %1115 = vmax.xlane.f32.xlu0 %v1114_v53  ;;  %v7131_v54 = vpop.f32.mrf.mxu0 }
 0x30d   : > { %v8692_v55 = vadd.f32 %v1103_v52, %v8658_v18 }
 0x30e   : > { %v1092_v56 = vpop.f32.mrf.mxu0 }
 0x30f   : > { %v1104_v58 = vmul.f32 0.35355338, %v1092_v56  ;;  %v1117_v59 = vsel %vm792_vm11, %v8692_v55, -inf }
 0x310   : > { %1118 = vmax.xlane.f32.xlu1 %v1117_v59  ;;  %v7134_v60 = vpop.f32.mrf.mxu0 }
 0x311   : > { %v8697_v61 = vadd.f32 %v1104_v58, %v8665_v27 }
 0x312   : > { %v1097_v62 = vpop.f32.mrf.mxu0 }
 0x313   : > { %v1105_v63 = vmul.f32 0.35355338, %v1097_v62  ;;  %v1120_v1 = vsel %vm792_vm11, %v8697_v61, -inf }
 0x314   : > { %1121 = vmax.xlane.f32.xlu0 %v1120_v1  ;;  %v7137_v6 = vpop.f32.mrf.mxu0 }
 0x315   : > { %v8702_v7 = vadd.f32 %v1105_v63, %v8672_v36 }
 0x316   : > { %v1393_v8 = vpop.f32.mrf.mxu0 }
 0x317   : > { %v1417_v9 = vmul.f32 0.35355338, %v1393_v8  ;;  %v1123_v10 = vsel %vm805_vm6, %v8702_v7, -inf }
 0x318   : > { %1124 = vmax.xlane.f32.xlu1 %v1123_v10  ;;  %v7175_v15 = vpop.f32.mrf.mxu0 }
 0x319   : > { %v8707_v17 = vadd.f32 %v1417_v9, %v8646_v57 }
 0x31a   : > { %v1398_v19 = vpop.f32.mrf.mxu0 }
 0x31b   : > { %v1427_v20 = vsel %vm792_vm11, %v8707_v17, -inf  ;;  %v1418_v49 = vmul.f32 0.35355338, %v1398_v19 }
 0x31c   : > { %1428 = vmax.xlane.f32.xlu0 %v1427_v20  ;;  %v7178_v21 = vpop.f32.mrf.mxu0 }
 0x31d   : > { %v8716_v53 = vadd.f32 %v1418_v49, %v8651_v4 }
 0x31e   : > { %v1403_v23 = vpop.f32.mrf.mxu0 }
 0x31f   : > { %v1419_v51 = vmul.f32 0.35355338, %v1403_v23  ;;  %v1430_v56 = vsel %vm792_vm11, %v8716_v53, -inf }
 0x320   : > { %v7181_v26 = vpop.f32.mrf.mxu0 }
 0x321   : > { %v8721_v58 = vadd.f32 %v1419_v51, %v8658_v18 }
 0x322   : > { %v1408_v29 = vpop.f32.mrf.mxu0 }
 0x323   : > { %v1420_v52 = vmul.f32 0.35355338, %v1408_v29  ;;  %v1433_v6 = vsel %vm792_vm11, %v8721_v58, -inf }
 0x324   : > { %v7184_v32 = vpop.f32.mrf.mxu0 }
 0x325   : > { %v8724_v59 = vadd.f32 %v1420_v52, %v8665_v27 }
 0x326   : > { %v1413_v33 = vpop.f32.mrf.mxu0 }
 0x327   : > { %v1436_v8 = vsel %vm792_vm11, %v8724_v59, -inf }
 0x328   : > { %v7187_v35 = vpop.f32.mrf.mxu0 }
 0x329   : > { %1806 = vrot.lane.b32.xlu1 %v8431_v28, %s10954_s29  ;;  %v1421_v28 = vmul.f32 0.35355338, %v1413_v33 }
 0x32a   : > { %v1709_v37 = vpop.f32.mrf.mxu0 }
 0x32b   : > { %v1733_v54 = vmul.f32 0.35355338, %v1709_v37  ;;  %v8727_v60 = vadd.f32 %v1421_v28, %v8672_v36  ;;  %v8760_v37 = vpop.permute.xlu0 %1172 }
 0x32c   : > { %v7225_v38 = vpop.f32.mrf.mxu0 }
 0x32d   : > { %v8730_v62 = vadd.f32 %v1733_v54, %v8646_v57  ;;  %v1439_v9 = vsel %vm805_vm6, %v8727_v60, -inf }
 0x32e   : > { %v1714_v39 = vpop.f32.mrf.mxu0 }
 0x32f   : > { %v1734_v63 = vmul.f32 0.35355338, %v1714_v39  ;;  %v1743_v10 = vsel %vm792_vm11, %v8730_v62, -inf  ;;  %v8762_v38 = vpop.permute.xlu0 %1168 }
 0x330   : > { %v7228_v41 = vpop.f32.mrf.mxu0 }
 0x331   : > { %v8741_v20 = vadd.f32 %v1734_v63, %v8651_v4  ;;  %v8766_v41 = vpop.permute.xlu1 %1174 }
 0x332   : > { %1482 = vrot.lane.b32.xlu0 %v8443_v31, %s10962_s28  ;;  %v1719_v42 = vpop.f32.mrf.mxu0 }
 0x333   : > { %v1735_v1 = vmul.f32 0.35355338, %v1719_v42  ;;  %v1746_v23 = vsel %vm792_vm11, %v8741_v20, -inf  ;;  %v8764_v39 = vpop.permute.xlu0 %1166 }
 0x334   : > { %v7231_v43 = vpop.f32.mrf.mxu0 }
 0x335   : > { %v8744_v21 = vadd.f32 %v1735_v1, %v8658_v18  ;;  %v8770_v43 = vpop.permute.xlu1 %1490 }
 0x336   : > { %v1724_v44 = vpop.f32.mrf.mxu0 }
 0x337   : > { %v1736_v15 = vmul.f32 0.35355338, %v1724_v44  ;;  %v1749_v26 = vsel %vm792_vm11, %v8744_v21, -inf  ;;  %v8768_v42 = vpop.permute.xlu0 %1488 }
 0x338   : > { %v7234_v46 = vpop.f32.mrf.mxu0 }
 0x339   : > { %v8751_v29 = vadd.f32 %v1736_v15, %v8665_v27 }
 0x33a   : > { %v1729_v47 = vpop.f32.mrf.mxu0 }
 0x33b   : > { %v1737_v19 = vmul.f32 0.35355338, %v1729_v47  ;;  %v1752_v33 = vsel %vm792_vm11, %v8751_v29, -inf  ;;  %v8772_v44 = vpop.permute.xlu0 %1484 }
 0x33c   : > { %v7237_v48 = vpop.f32.mrf.mxu0 }
 0x33d   : > { %v8754_v32 = vadd.f32 %v1737_v19, %v8672_v36 }
 0x33f   : > { %v1755_v35 = vsel %vm805_vm6, %v8754_v32, -inf }
 0x34d   : > { %1431 = vmax.xlane.f32.xlu1 %v1430_v56 }
 0x351   : > { %1434 = vmax.xlane.f32.xlu0 %v1433_v6  ;;  %1437 = vmax.xlane.f32.xlu1 %v1436_v8 }
 0x355   : > { %1440 = vmax.xlane.f32.xlu0 %v1439_v9  ;;  %1744 = vmax.xlane.f32.xlu1 %v1743_v10 }
 0x359   : > { %1747 = vmax.xlane.f32.xlu0 %v1746_v23  ;;  %1750 = vmax.xlane.f32.xlu1 %v1749_v26 }
 0x35d   : > { %1753 = vmax.xlane.f32.xlu0 %v1752_v33  ;;  %1756 = vmax.xlane.f32.xlu1 %v1755_v35 }
 0x37d   : > { %v795_v46 = vpop.xlane.xlu1 %794 }
 0x37e   : > { %v809_v47 = vsub.f32 %v8649_v0, %v795_v46 }
 0x380   : > { %v814_v48 = vmul.f32 1.442695, %v809_v47 }
 0x381   : > { %v798_v49 = vpop.xlane.xlu0 %797 }
 0x382   : > { %7957 = vpow2.f32 %v814_v48  ;;  %v810_v51 = vsub.f32 %v8656_v16, %v798_v49 }
 0x384   : > { %v816_v52 = vmul.f32 1.442695, %v810_v51 }
 0x385   : > { %v801_v28 = vpop.xlane.xlu0 %800 }
 0x386   : > { %7959 = vpow2.f32 %v816_v52  ;;  %v811_v54 = vsub.f32 %v8663_v24, %v801_v28 }
 0x388   : > { %v818_v56 = vmul.f32 1.442695, %v811_v54 }
 0x389   : > { %v804_v63 = vpop.xlane.xlu1 %803 }
 0x38a   : > { %7961 = vpow2.f32 %v818_v56  ;;  %v812_v1 = vsub.f32 %v8670_v34, %v804_v63 }
 0x38c   : > { %v820_v6 = vmul.f32 1.442695, %v812_v1 }
 0x38d   : > { %v808_v8 = vpop.xlane.xlu0 %807 }
 0x38e   : > { %7963 = vpow2.f32 %v820_v6  ;;  %v813_v0 = vsub.f32 %v8677_v40, %v808_v8 }
 0x38f   : > { %v8779_v9 = vpop.eup %7957 }
 0x390   : > { %v822_v10 = vmul.f32 1.442695, %v813_v0  ;;  %v824_v16 = vsel %vm792_vm11, %v8779_v9, 0.0 }
 0x391   : > { %v1113_v15 = vpop.xlane.xlu1 %1112  ;;  %825 = vadd.xlane.f32.xlu0 %v824_v16 }
 0x392   : > { %7965 = vpow2.f32 %v822_v10  ;;  %v1126_v24 = vsub.f32 %v8682_v45, %v1113_v15 }
 0x393   : > { %v8784_v19 = vpop.eup %7959 }
 0x394   : > { %v1131_v23 = vmul.f32 1.442695, %v1126_v24  ;;  %v827_v34 = vsel %vm792_vm11, %v8784_v19, 0.0 }
 0x395   : > { %v1116_v26 = vpop.xlane.xlu0 %1115  ;;  %828 = vadd.xlane.f32.xlu1 %v827_v34 }
 0x396   : > { %7967 = vpow2.f32 %v1131_v23  ;;  %v1127_v40 = vsub.f32 %v8687_v50, %v1116_v26 }
 0x397   : > { %v8789_v33 = vpop.eup %7961 }
 0x398   : > { %v1133_v35 = vmul.f32 1.442695, %v1127_v40  ;;  %v830_v46 = vsel %vm792_vm11, %v8789_v33, 0.0 }
 0x399   : > { %v1119_v47 = vpop.xlane.xlu1 %1118  ;;  %831 = vadd.xlane.f32.xlu0 %v830_v46 }
 0x39a   : > { %7969 = vpow2.f32 %v1133_v35  ;;  %v1128_v45 = vsub.f32 %v8692_v55, %v1119_v47 }
 0x39b   : > { %v8794_v48 = vpop.eup %7963 }
 0x39c   : > { %v1135_v49 = vmul.f32 1.442695, %v1128_v45  ;;  %v833_v51 = vsel %vm792_vm11, %v8794_v48, 0.0 }
 0x39d   : > { %v1122_v52 = vpop.xlane.xlu0 %1121  ;;  %834 = vadd.xlane.f32.xlu1 %v833_v51 }
 0x39e   : > { %7971 = vpow2.f32 %v1135_v49  ;;  %v1129_v50 = vsub.f32 %v8697_v61, %v1122_v52 }
 0x39f   : > { %v8799_v28 = vpop.eup %7965 }
 0x3a0   : > { %v1137_v54 = vmul.f32 1.442695, %v1129_v50  ;;  %v836_v56 = vsel %vm805_vm6, %v8799_v28, 0.0 }
 0x3a1   : > { %v1125_v63 = vpop.xlane.xlu1 %1124  ;;  %837 = vadd.xlane.f32.xlu0 %v836_v56 }
 0x3a2   : > { %7973 = vpow2.f32 %v1137_v54  ;;  %v1130_v55 = vsub.f32 %v8702_v7, %v1125_v63 }
 0x3a3   : > { %v8804_v1 = vpop.eup %7967 }
 0x3a4   : > { %v1139_v6 = vmul.f32 1.442695, %v1130_v55  ;;  %v1141_v8 = vsel %vm792_vm11, %v8804_v1, 0.0 }
 0x3a5   : > { %v1429_v0 = vpop.xlane.xlu0 %1428  ;;  %1142 = vadd.xlane.f32.xlu0 %v1141_v8  ;;  %v8833_v46 = vpop.permute.xlu1 %1806 }
 0x3a6   : > { %7975 = vpow2.f32 %v1139_v6  ;;  %v1442_v61 = vsub.f32 %v8707_v17, %v1429_v0 }
 0x3a7   : > { %v8809_v10 = vpop.eup %7969 }
 0x3a8   : > { %v1447_v16 = vmul.f32 1.442695, %v1442_v61  ;;  %v1144_v15 = vsel %vm792_vm11, %v8809_v10, 0.0 }
 0x3a9   : > { %1145 = vadd.xlane.f32.xlu1 %v1144_v15  ;;  %v8835_v47 = vpop.permute.xlu0 %1482 }
 0x3aa   : > { %7977 = vpow2.f32 %v1447_v16 }
 0x3ab   : > { %v8813_v7 = vpop.eup %7971 }
 0x3ac   : > { %v1147_v24 = vsel %vm792_vm11, %v8813_v7, 0.0 }
 0x3ad   : > { %1148 = vadd.xlane.f32.xlu0 %v1147_v24 }
 0x3af   : > { %v8817_v23 = vpop.eup %7973 }
 0x3b0   : > { %v1150_v34 = vsel %vm792_vm11, %v8817_v23, 0.0 }
 0x3b1   : > { %1151 = vadd.xlane.f32.xlu1 %v1150_v34 }
 0x3b3   : > { %v8821_v17 = vpop.eup %7975 }
 0x3b4   : > { %v1153_v26 = vsel %vm805_vm6, %v8821_v17, 0.0 }
 0x3b5   : > { %1154 = vadd.xlane.f32.xlu1 %v1153_v26 }
 0x3b7   : > { %v8825_v40 = vpop.eup %7977 }
 0x3b8   : > { %v1457_v35 = vsel %vm792_vm11, %v8825_v40, 0.0 }
 0x3b9   : > { %1458 = vadd.xlane.f32.xlu0 %v1457_v35 }
 0x3c6   : > { %1802 = vrot.lane.b32.xlu1 %v8423_v22, %s10954_s29 }
 0x3cf   : > { %1804 = vrot.lane.b32.xlu0 %v8437_v30, %s10954_s29 }
 0x3d6   : > { %v1432_v45 = vpop.xlane.xlu1 %1431 }
 0x3d7   : > { %v1443_v49 = vsub.f32 %v8716_v53, %v1432_v45 }
 0x3d9   : > { %v1449_v51 = vmul.f32 1.442695, %v1443_v49 }
 0x3da   : > { %v1435_v52 = vpop.xlane.xlu0 %1434  ;;  %v1438_v50 = vpop.xlane.xlu1 %1437 }
 0x3db   : > { %7979 = vpow2.f32 %v1449_v51  ;;  %v1444_v54 = vsub.f32 %v8721_v58, %v1435_v52  ;;  %v1445_v56 = vsub.f32 %v8724_v59, %v1438_v50 }
 0x3dd   : > { %v1451_v63 = vmul.f32 1.442695, %v1444_v54  ;;  %v1453_v22 = vmul.f32 1.442695, %v1445_v56 }
 0x3de   : > { %v1441_v55 = vpop.xlane.xlu0 %1440  ;;  %v1745_v6 = vpop.xlane.xlu1 %1744 }
 0x3df   : > { %7981 = vpow2.f32 %v1451_v63  ;;  %v1446_v30 = vsub.f32 %v8727_v60, %v1441_v55  ;;  %v1758_v8 = vsub.f32 %v8730_v62, %v1745_v6 }
 0x3e0   : > { %7983 = vpow2.f32 %v1453_v22 }
 0x3e1   : > { %v1455_v0 = vmul.f32 1.442695, %v1446_v30  ;;  %v1763_v53 = vmul.f32 1.442695, %v1758_v8 }
 0x3e2   : > { %v1748_v61 = vpop.xlane.xlu0 %1747  ;;  %v1751_v16 = vpop.xlane.xlu1 %1750 }
 0x3e3   : > { %7985 = vpow2.f32 %v1455_v0  ;;  %v1759_v15 = vsub.f32 %v8741_v20, %v1748_v61  ;;  %v1760_v58 = vsub.f32 %v8744_v21, %v1751_v16 }
 0x3e4   : > { %7987 = vpow2.f32 %v1763_v53 }
 0x3e5   : > { %v1765_v59 = vmul.f32 1.442695, %v1759_v15  ;;  %v1767_v24 = vmul.f32 1.442695, %v1760_v58 }
 0x3e6   : > { %v1754_v34 = vpop.xlane.xlu0 %1753  ;;  %v1757_v26 = vpop.xlane.xlu1 %1756 }
 0x3e7   : > { %7989 = vpow2.f32 %v1765_v59  ;;  %v1761_v60 = vsub.f32 %v8751_v29, %v1754_v34  ;;  %v1762_v62 = vsub.f32 %v8754_v32, %v1757_v26 }
 0x3e8   : > { %v8846_v35 = vpop.eup %7979  ;;  %7991 = vpow2.f32 %v1767_v24 }
 0x3e9   : > { %v1769_v45 = vmul.f32 1.442695, %v1761_v60  ;;  %v1460_v49 = vsel %vm792_vm11, %v8846_v35, 0.0  ;;  %v1771_v20 = vmul.f32 1.442695, %v1762_v62 }
 0x3ea   : > { %1461 = vadd.xlane.f32.xlu1 %v1460_v49 }
 0x3eb   : > { %7993 = vpow2.f32 %v1769_v45 }
 0x3ec   : > { %v8850_v21 = vpop.eup %7981  ;;  %7995 = vpow2.f32 %v1771_v20 }
 0x3ed   : > { %v8852_v51 = vpop.eup %7983  ;;  %v1463_v52 = vsel %vm792_vm11, %v8850_v21, 0.0 }
 0x3ee   : > { %1464 = vadd.xlane.f32.xlu0 %v1463_v52  ;;  %v1466_v29 = vsel %vm792_vm11, %v8852_v51, 0.0 }
 0x3ef   : > { %1467 = vadd.xlane.f32.xlu1 %v1466_v29 }
 0x3f0   : > { %v8858_v32 = vpop.eup %7985 }
 0x3f1   : > { %v8860_v50 = vpop.eup %7987  ;;  %v1469_v54 = vsel %vm805_vm6, %v8858_v32, 0.0 }
 0x3f2   : > { %v1773_v56 = vsel %vm792_vm11, %v8860_v50, 0.0 }
 0x3f3   : > { %1774 = vadd.xlane.f32.xlu0 %v1773_v56  ;;  %1470 = vadd.xlane.f32.xlu1 %v1469_v54 }
 0x3f4   : > { %v8866_v63 = vpop.eup %7989 }
 0x3f5   : > { %v8868_v22 = vpop.eup %7991  ;;  %v1776_v55 = vsel %vm792_vm11, %v8866_v63, 0.0 }
 0x3f6   : > { %v1779_v6 = vsel %vm792_vm11, %v8868_v22, 0.0 }
 0x3f7   : > { %1780 = vadd.xlane.f32.xlu0 %v1779_v6  ;;  %1777 = vadd.xlane.f32.xlu1 %v1776_v55 }
 0x3f8   : > { %v8874_v30 = vpop.eup %7993 }
 0x3f9   : > { %v1782_v8 = vsel %vm792_vm11, %v8874_v30, 0.0  ;;  %v8878_v0 = vpop.eup %7995 }
 0x3fa   : > { %v1785_v53 = vsel %vm805_vm6, %v8878_v0, 0.0 }
 0x3fb   : > { %1783 = vadd.xlane.f32.xlu1 %v1782_v8 }
 0x3ff   : > { %1786 = vadd.xlane.f32.xlu1 %v1785_v53 }
 0x40d   : > { %1798 = vrot.lane.b32.xlu0 %v8443_v31, %s10954_s29 }
 0x410   : > { %1800 = vrot.lane.b32.xlu1 %v8427_v25, %s10954_s29 }
 0x41a   : > { %v826_v61 = vpop.xlane.xlu0 %825 }
 0x41b   : > { %7997 = vrcp.f32 %v826_v61 }
 0x41e   : > { %v829_v16 = vpop.xlane.xlu1 %828 }
 0x41f   : > { %7999 = vrcp.f32 %v829_v16 }
 0x422   : > { %v832_v15 = vpop.xlane.xlu0 %831 }
 0x423   : > { %8001 = vrcp.f32 %v832_v15 }
 0x426   : > { %v835_v58 = vpop.xlane.xlu1 %834 }
 0x427   : > { %8003 = vrcp.f32 %v835_v58 }
 0x428   : > { %v7998_v59 = vpop.eup %7997 }
 0x429   : > { %v844_v24 = vmul.f32 %v7998_v59, %v8779_v9 }
 0x42a   : > { %v838_v34 = vpop.xlane.xlu0 %837 }
 0x42b   : > { %8005 = vrcp.f32 %v838_v34  ;;  %7099 = vmatmul.mubr.msk.f32.vlgmr.msra.gmra.mxu1 %vm792_vm11, %v844_v24 }
 0x42c   : > { %v8000_v26 = vpop.eup %7999  ;;  %7139 = vmatpush3.msk.msra.mxu1 %vm878_vm5, %v8766_v41  ;;  %7101 = vmatprep.mubr.msk.f32.mxu1 %vm8275_vm2, %v8274_v3 }
 0x42d   : > { %7140 = vmatprep.subr.mxu1 %v8274_v3  ;;  %v845_v25 = vmul.f32 %v8000_v26, %v8784_v19 }
 0x42e   : > { %7141 = vmatpush3.msra.mxu1 %v8760_v37  ;;  %v1143_v31 = vpop.xlane.xlu0 %1142 }
 0x42f   : > { %7142 = vmatprep.subr.mxu1 %v8274_v3  ;;  %8007 = vrcp.f32 %v1143_v31  ;;  %7102 = vmatmul.mubr.msk.f32.gmra.mxu1 %vm792_vm11, %v845_v25 }
 0x430   : > { %v8002_v9 = vpop.eup %8001  ;;  %7143 = vmatpush3.msra.mxu1 %v8601_v2  ;;  %7104 = vmatprep.mubr.msk.f32.mxu1 %vm8275_vm2, %v8274_v3 }
 0x431   : > { %7144 = vmatprep.subr.mxu1 %v8274_v3  ;;  %v846_v41 = vmul.f32 %v8002_v9, %v8789_v33 }
 0x432   : > { %7145 = vmatpush3.msra.mxu1 %v8762_v38  ;;  %v1146_v19 = vpop.xlane.xlu1 %1145 }
 0x433   : > { %7146 = vmatprep.subr.mxu1 %v8274_v3  ;;  %8009 = vrcp.f32 %v1146_v19  ;;  %7105 = vmatmul.mubr.msk.f32.gmra.mxu1 %vm792_vm11, %v846_v41 }
 0x434   : > { %v8004_v37 = vpop.eup %8003  ;;  %7147 = vmatpush3.msra.mxu1 %v8764_v39  ;;  %7107 = vmatprep.mubr.msk.f32.mxu1 %vm8275_vm2, %v8274_v3 }
 0x435   : > { %v847_v2 = vmul.f32 %v8004_v37, %v8794_v48  ;;  %7188 = vmatprep.subr.mxu1 %v8274_v3 }
 0x436   : > { %v1149_v60 = vpop.xlane.xlu0 %1148 }
 0x437   : > { %8011 = vrcp.f32 %v1149_v60  ;;  %7108 = vmatmul.mubr.msk.f32.gmra.mxu1 %vm792_vm11, %v847_v2 }
 0x438   : > { %v8006_v38 = vpop.eup %8005  ;;  %7110 = vmatprep.mubr.msk.f32.mxu1 %vm8275_vm2, %v8274_v3 }
 0x439   : > { %v848_v33 = vmul.f32 %v8006_v38, %v8799_v28 }
 0x43a   : > { %v1152_v62 = vpop.xlane.xlu1 %1151 }
 0x43b   : > { %8013 = vrcp.f32 %v1152_v62  ;;  %7111 = vmatmul.mubr.msk.f32.gmra.mxu1 %vm792_vm11, %v848_v33 }
 0x43c   : > { %v8008_v39 = vpop.eup %8007  ;;  %7148 = vmatprep.mubr.msk.f32.mxu1 %vm8275_vm2, %v8274_v3 }
 0x43d   : > { %v1161_v48 = vmul.f32 %v8008_v39, %v8804_v1 }
 0x43e   : > { %v1155_v45 = vpop.xlane.xlu1 %1154 }
 0x43f   : > { %8015 = vrcp.f32 %v1155_v45  ;;  %7149 = vmatmul.mubr.msk.f32.vlgmr.msra.gmra.mxu1 %vm792_vm11, %v1161_v48 }
 0x440   : > { %v8010_v49 = vpop.eup %8009  ;;  %7189 = vmatpush3.msk.msra.mxu1 %vm878_vm5, %v8770_v43  ;;  %7151 = vmatprep.mubr.msk.f32.mxu1 %vm8275_vm2, %v8274_v3 }
 0x441   : > { %7190 = vmatprep.subr.mxu1 %v8274_v3  ;;  %v1162_v28 = vmul.f32 %v8010_v49, %v8809_v10 }
 0x442   : > { %7191 = vmatpush3.msra.mxu1 %v8768_v42  ;;  %v1459_v20 = vpop.xlane.xlu0 %1458 }
 0x443   : > { %8017 = vrcp.f32 %v1459_v20  ;;  %7192 = vmatprep.subr.mxu1 %v8274_v3  ;;  %7152 = vmatmul.mubr.msk.f32.gmra.mxu1 %vm792_vm11, %v1162_v28 }
 0x444   : > { %v8012_v1 = vpop.eup %8011  ;;  %7193 = vmatpush3.msra.mxu1 %v8608_v5  ;;  %7154 = vmatprep.mubr.msk.f32.mxu1 %vm8275_vm2, %v8274_v3 }
 0x445   : > { %7194 = vmatprep.subr.mxu1 %v8274_v3  ;;  %v1163_v43 = vmul.f32 %v8012_v1, %v8813_v7 }
 0x446   : > { %7195 = vmatpush3.msra.mxu1 %v8772_v44 }
 0x447   : > { %7196 = vmatprep.subr.mxu1 %v8274_v3  ;;  %7155 = vmatmul.mubr.msk.f32.gmra.mxu1 %vm792_vm11, %v1163_v43 }
 0x448   : > { %v8014_v42 = vpop.eup %8013  ;;  %7197 = vmatpush3.msra.mxu1 %v8835_v47  ;;  %7157 = vmatprep.mubr.msk.f32.mxu1 %vm8275_vm2, %v8274_v3 }
 0x449   : > { %v1164_v5 = vmul.f32 %v8014_v42, %v8817_v23  ;;  %7238 = vmatprep.subr.mxu1 %v8274_v3  ;;  %v1805_v23 = vpop.permute.xlu0 %1804 }
 0x44b   : > { %7158 = vmatmul.mubr.msk.f32.gmra.mxu1 %vm792_vm11, %v1164_v5 }
 0x44c   : > { %v8016_v10 = vpop.eup %8015  ;;  %7160 = vmatprep.mubr.msk.f32.mxu1 %vm8275_vm2, %v8274_v3 }
 0x44d   : > { %v1165_v44 = vmul.f32 %v8016_v10, %v8821_v17  ;;  %v1803_v17 = vpop.permute.xlu1 %1802 }
 0x44f   : > { %7161 = vmatmul.mubr.msk.f32.gmra.mxu1 %vm792_vm11, %v1165_v44 }
 0x450   : > { %v8018_v7 = vpop.eup %8017  ;;  %7198 = vmatprep.mubr.msk.f32.mxu1 %vm8275_vm2, %v8274_v3 }
 0x451   : > { %v1477_v47 = vmul.f32 %v8018_v7, %v8825_v40 }
 0x453   : > { %7199 = vmatmul.mubr.msk.f32.vlgmr.msra.gmra.mxu1 %vm792_vm11, %v1477_v47  ;;  %v544_v47 = vld [vmem:[%s10947_s5 + $0x18] sm:$0xff] }
 0x454   : > { %7239 = vmatpush3.msk.msra.mxu1 %vm878_vm5, %v8833_v46  ;;  %7201 = vmatprep.mubr.msk.f32.mxu1 %vm8275_vm2, %v8274_v3 }
 0x455   : > { %7240 = vmatprep.subr.mxu1 %v8274_v3  ;;  %7264 = vmatpush3.msra.mxu0 %v544_v47 }
 0x456   : > { %7241 = vmatpush3.msra.mxu1 %v1805_v23  ;;  %7265 = vmatprep.subr.mxu0 %v8274_v3  ;;  %v543_v23 = vld [vmem:[%s10947_s5 + $0x10] sm:$0xff] }
 0x457   : > { %7242 = vmatprep.subr.mxu1 %v8274_v3  ;;  %7266 = vmatpush3.msra.mxu0 %v543_v23 }
 0x458   : > { %7243 = vmatpush3.msra.mxu1 %v1803_v17  ;;  %v542_v17 = vld [vmem:[%s10947_s5 + $0x8] sm:$0xff]  ;;  %7267 = vmatprep.subr.mxu0 %v8274_v3 }
 0x459   : > { %7244 = vmatprep.subr.mxu1 %v8274_v3  ;;  %7268 = vmatpush3.msra.mxu0 %v542_v17 }
 0x45a   : > { %7269 = vmatprep.subr.mxu0 %v8274_v3 }
 0x473   : > { %v1462_v52 = vpop.xlane.xlu1 %1461 }
 0x474   : > { %8019 = vrcp.f32 %v1462_v52 }
 0x477   : > { %v1465_v40 = vpop.xlane.xlu0 %1464 }
 0x478   : > { %8021 = vrcp.f32 %v1465_v40  ;;  %v1468_v29 = vpop.xlane.xlu1 %1467 }
 0x479   : > { %8023 = vrcp.f32 %v1468_v29 }
 0x47c   : > { %v1471_v46 = vpop.xlane.xlu1 %1470  ;;  %v1775_v54 = vpop.xlane.xlu0 %1774 }
 0x47d   : > { %8025 = vrcp.f32 %v1471_v46  ;;  %v541_v46 = vld [vmem:[%s10947_s5] sm:$0xff] }
 0x47e   : > { %8027 = vrcp.f32 %v1775_v54  ;;  %7270 = vmatpush3.msra.mxu0 %v541_v46 }
 0x47f   : > { %7309 = vmatprep.subr.mxu0 %v8274_v3 }
 0x480   : > { %v1778_v56 = vpop.xlane.xlu1 %1777  ;;  %v1781_v15 = vpop.xlane.xlu0 %1780 }
 0x481   : > { %v8020_v55 = vpop.eup %8019  ;;  %8029 = vrcp.f32 %v1778_v56 }
 0x482   : > { %v1478_v6 = vmul.f32 %v8020_v55, %v8846_v35  ;;  %8031 = vrcp.f32 %v1781_v15 }
 0x484   : > { %v1784_v8 = vpop.xlane.xlu1 %1783  ;;  %7202 = vmatmul.mubr.msk.f32.gmra.mxu1 %vm792_vm11, %v1478_v6 }
 0x485   : > { %v8022_v53 = vpop.eup %8021  ;;  %7204 = vmatprep.mubr.msk.f32.mxu1 %vm8275_vm2, %v8274_v3  ;;  %8033 = vrcp.f32 %v1784_v8 }
 0x486   : > { %v1479_v61 = vmul.f32 %v8022_v53, %v8850_v21  ;;  %v8024_v16 = vpop.eup %8023  ;;  %v1799_v21 = vpop.permute.xlu0 %1798 }
 0x487   : > { %v1480_v35 = vmul.f32 %v8024_v16, %v8852_v51 }
 0x488   : > { %v1787_v58 = vpop.xlane.xlu1 %1786  ;;  %7205 = vmatmul.mubr.msk.f32.gmra.mxu1 %vm792_vm11, %v1479_v61 }
 0x489   : > { %7207 = vmatprep.mubr.msk.f32.mxu1 %vm8275_vm2, %v8274_v3  ;;  %8035 = vrcp.f32 %v1787_v58 }
 0x48a   : > { %v8026_v59 = vpop.eup %8025 }
 0x48b   : > { %v1481_v34 = vmul.f32 %v8026_v59, %v8858_v32  ;;  %v8028_v26 = vpop.eup %8027 }
 0x48c   : > { %v1801_v24 = vpop.permute.xlu1 %1800  ;;  %7208 = vmatmul.mubr.msk.f32.gmra.mxu1 %vm792_vm11, %v1480_v35  ;;  %v1793_v51 = vmul.f32 %v8028_v26, %v8860_v50 }
 0x48d   : > { %7245 = vmatpush3.msra.mxu1 %v1801_v24  ;;  %7210 = vmatprep.mubr.msk.f32.mxu1 %vm8275_vm2, %v8274_v3 }
 0x48e   : > { %7246 = vmatprep.subr.mxu1 %v8274_v3  ;;  %v8030_v25 = vpop.eup %8029 }
 0x48f   : > { %7247 = vmatpush3.msra.mxu1 %v1799_v21  ;;  %v1794_v32 = vmul.f32 %v8030_v25, %v8866_v63  ;;  %v8032_v31 = vpop.eup %8031 }
 0x490   : > { %7211 = vmatmul.mubr.msk.f32.gmra.mxu1 %vm792_vm11, %v1481_v34  ;;  %7286 = vmatprep.subr.mxu1 %v8274_v3  ;;  %v1795_v9 = vmul.f32 %v8032_v31, %v8868_v22 }
 0x491   : > { %7248 = vmatprep.mubr.msk.f32.mxu1 %vm8275_vm2, %v8274_v3 }
 0x492   : > { %v8034_v41 = vpop.eup %8033 }
 0x493   : > { %v1796_v50 = vmul.f32 %v8034_v41, %v8874_v30 }
 0x494   : > { %7249 = vmatmul.mubr.msk.f32.vlgmr.msra.gmra.mxu1 %vm792_vm11, %v1793_v51 }
 0x495   : > { %7251 = vmatprep.mubr.msk.f32.mxu1 %vm8275_vm2, %v8274_v3 }
 0x496   : > { %v8036_v19 = vpop.eup %8035 }
 0x497   : > { %v1797_v63 = vmul.f32 %v8036_v19, %v8878_v0 }
 0x498   : > { %7252 = vmatmul.mubr.msk.f32.gmra.mxu1 %vm792_vm11, %v1794_v32 }
 0x499   : > { %7254 = vmatprep.mubr.msk.f32.mxu1 %vm8275_vm2, %v8274_v3 }
 0x49c   : > { %7255 = vmatmul.mubr.msk.f32.gmra.mxu1 %vm792_vm11, %v1795_v9 }
 0x49d   : > { %7257 = vmatprep.mubr.msk.f32.mxu1 %vm8275_vm2, %v8274_v3 }
 0x4a0   : > { %7258 = vmatmul.mubr.msk.f32.gmra.mxu1 %vm792_vm11, %v1796_v50 }
 0x4a1   : > { %7260 = vmatprep.mubr.msk.f32.mxu1 %vm8275_vm2, %v8274_v3 }
 0x4a4   : > { %7261 = vmatmul.mubr.msk.f32.gmra.mxu1 %vm792_vm11, %v1797_v63 }
 0x4a5   : > { %7294 = vmatprep.mubr.msk.f32.mxu1 %vm8275_vm2, %v8274_v3 }
 0x4eb   : > { %v8995_v22 = vpop.f32.mrf.mxu1 }
 0x4ed   : > { %v7100_v37 = vpop.f32.mrf.mxu1 }
 0x4ef   : > { %v8997_v2 = vpop.f32.mrf.mxu1 }
 0x4f1   : > { %v7103_v60 = vpop.f32.mrf.mxu1 }
 0x4f3   : > { %v8999_v30 = vpop.f32.mrf.mxu1 }
 0x4f5   : > { %v7106_v38 = vpop.f32.mrf.mxu1 }
 0x4f7   : > { %v9001_v33 = vpop.f32.mrf.mxu1 }
 0x4f9   : > { %v7109_v62 = vpop.f32.mrf.mxu1 }
 0x4fb   : > { %v9003_v39 = vpop.f32.mrf.mxu1 }
 0x4fd   : > { %v7112_v0 = vpop.f32.mrf.mxu1 }
 0x4ff   : > { %v1263_v48 = vpop.f32.mrf.mxu1 }
 0x500   : > { %1924 = vrot.lane.b32.xlu1 %v1263_v48, %s10960_s30 }
 0x501   : > { %v7150_v45 = vpop.f32.mrf.mxu1 }
 0x503   : > { %v1268_v49 = vpop.f32.mrf.mxu1 }
 0x504   : > { %1926 = vrot.lane.b32.xlu0 %v1268_v49, %s10960_s30 }
 0x505   : > { %v7153_v28 = vpop.f32.mrf.mxu1 }
 0x507   : > { %v1273_v20 = vpop.f32.mrf.mxu1 }
 0x508   : > { %1928 = vrot.lane.b32.xlu1 %v1273_v20, %s10960_s30 }
 0x509   : > { %v7156_v1 = vpop.f32.mrf.mxu1 }
 0x50b   : > { %v1278_v43 = vpop.f32.mrf.mxu1 }
 0x50d   : > { %v7159_v42 = vpop.f32.mrf.mxu1 }
 0x50f   : > { %v1283_v5 = vpop.f32.mrf.mxu1 }
 0x511   : > { %v7162_v10 = vpop.f32.mrf.mxu1 }
 0x513   : > { %v1579_v44 = vpop.f32.mrf.mxu1 }
 0x514   : > { %1944 = vrot.lane.b32.xlu0 %v1579_v44, %s10958_s11 }
 0x515   : > { %v7200_v7 = vpop.f32.mrf.mxu1 }
 0x516   : > { %v6437_v7 = vld [vmem:[%s10944_s2 + $0x1] ss:$0 sm:$0xff] }
 0x544   : > { %v1584_v52 = vpop.f32.mrf.mxu1 }
 0x545   : > { %1946 = vrot.lane.b32.xlu1 %v1584_v52, %s10958_s11 }
 0x546   : > { %v7203_v40 = vpop.f32.mrf.mxu1 }
 0x548   : > { %v1589_v29 = vpop.f32.mrf.mxu1 }
 0x549   : > { %1948 = vrot.lane.b32.xlu0 %v1589_v29, %s10958_s11 }
 0x54a   : > { %v7206_v54 = vpop.f32.mrf.mxu1 }
 0x54c   : > { %v1594_v56 = vpop.f32.mrf.mxu1 }
 0x54e   : > { %v7209_v55 = vpop.f32.mrf.mxu1 }
 0x550   : > { %v1599_v6 = vpop.f32.mrf.mxu1 }
 0x552   : > { %v7212_v8 = vpop.f32.mrf.mxu1 }
 0x554   : > { %v1895_v53 = vpop.f32.mrf.mxu1 }
 0x555   : > { %1964 = vrot.lane.b32.xlu1 %v1895_v53, %s10956_s24 }
 0x556   : > { %v7250_v61 = vpop.f32.mrf.mxu1 }
 0x558   : > { %v1900_v16 = vpop.f32.mrf.mxu1 }
 0x559   : > { %1950 = vrot.lane.b32.xlu1 %v1594_v56, %s10958_s11  ;;  %1966 = vrot.lane.b32.xlu0 %v1900_v16, %s10956_s24 }
 0x55a   : > { %v7253_v15 = vpop.f32.mrf.mxu1 }
 0x55c   : > { %v1905_v58 = vpop.f32.mrf.mxu1 }
 0x55d   : > { %1930 = vrot.lane.b32.xlu0 %v1278_v43, %s10960_s30  ;;  %1968 = vrot.lane.b32.xlu1 %v1905_v58, %s10956_s24 }
 0x55e   : > { %v7256_v35 = vpop.f32.mrf.mxu1 }
 0x560   : > { %v1910_v59 = vpop.f32.mrf.mxu1 }
 0x561   : > { %1932 = vrot.lane.b32.xlu1 %v1283_v5, %s10960_s30  ;;  %1970 = vrot.lane.b32.xlu0 %v1910_v59, %s10956_s24  ;;  %s10972_s30 = smov 16  }
 0x562   : > { %v7259_v24 = vpop.f32.mrf.mxu1 }
 0x564   : > { %v1915_v21 = vpop.f32.mrf.mxu1 }
 0x565   : > { %1952 = vrot.lane.b32.xlu0 %v1599_v6, %s10958_s11  ;;  %1972 = vrot.lane.b32.xlu1 %v1915_v21, %s10956_s24 }
 0x566   : > { %v7262_v34 = vpop.f32.mrf.mxu1 }
 0x572   : > { %v1925_v26 = vpop.permute.xlu1 %1924 }
 0x573   : > { %v1979_v9 = vsel %vm671_vm4, %v8995_v22, %v1925_v26 }
 0x576   : > { %v1927_v51 = vpop.permute.xlu0 %1926 }
 0x577   : > { %v1980_v37 = vsel %vm671_vm4, %v8997_v2, %v1927_v51 }
 0x57a   : > { %v1929_v25 = vpop.permute.xlu1 %1928 }
 0x57b   : > { %v1981_v0 = vsel %vm671_vm4, %v8999_v30, %v1929_v25 }
 0x586   : > { %v1945_v32 = vpop.permute.xlu0 %1944 }
 0x587   : > { %v1985_v41 = vsel %vm1984_vm7, %v1979_v9, %v1945_v32 }
 0x5b7   : > { %v1947_v31 = vpop.permute.xlu1 %1946 }
 0x5b8   : > { %v1986_v60 = vsel %vm1984_vm7, %v1980_v37, %v1947_v31 }
 0x5bb   : > { %v1949_v50 = vpop.permute.xlu0 %1948 }
 0x5bc   : > { %v1987_v48 = vsel %vm1984_vm7, %v1981_v0, %v1949_v50 }
 0x5c7   : > { %v1965_v19 = vpop.permute.xlu1 %1964 }
 0x5c8   : > { %v1991_v63 = vsel %vm1990_vm8, %v1985_v41, %v1965_v19 }
 0x5c9   : > { %7272 = vmatmul.mubr.msk.f32.vlgmr.msra.gmra.mxu0 %vm550_vm3, %v1991_v63 }
 0x5ca   : > { %7274 = vmatprep.mubr.msk.f32.mxu0 %vm8275_vm2, %v8274_v3 }
 0x5cb   : > { %v1967_v38 = vpop.permute.xlu0 %1966  ;;  %v1951_v62 = vpop.permute.xlu1 %1950 }
 0x5cc   : > { %v1992_v22 = vsel %vm1990_vm8, %v1986_v60, %v1967_v38 }
 0x5cd   : > { %7275 = vmatmul.mubr.msk.f32.gmra.mxu0 %vm550_vm3, %v1992_v22 }
 0x5ce   : > { %7277 = vmatprep.mubr.msk.f32.mxu0 %vm8275_vm2, %v8274_v3 }
 0x5cf   : > { %v1931_v2 = vpop.permute.xlu0 %1930  ;;  %v1969_v45 = vpop.permute.xlu1 %1968 }
 0x5d0   : > { %v1982_v49 = vsel %vm671_vm4, %v9001_v33, %v1931_v2  ;;  %v1993_v28 = vsel %vm1990_vm8, %v1987_v48, %v1969_v45 }
 0x5d1   : > { %7278 = vmatmul.mubr.msk.f32.gmra.mxu0 %vm550_vm3, %v1993_v28  ;;  %v1988_v30 = vsel %vm1984_vm7, %v1982_v49, %v1951_v62 }
 0x5d2   : > { %7280 = vmatprep.mubr.msk.f32.mxu0 %vm8275_vm2, %v8274_v3 }
 0x5d3   : > { %v1971_v20 = vpop.permute.xlu0 %1970  ;;  %v1933_v1 = vpop.permute.xlu1 %1932 }
 0x5d4   : > { %v1994_v43 = vsel %vm1990_vm8, %v1988_v30, %v1971_v20  ;;  %v1983_v33 = vsel %vm671_vm4, %v9003_v39, %v1933_v1 }
 0x5d5   : > { %7281 = vmatmul.mubr.msk.f32.gmra.mxu0 %vm550_vm3, %v1994_v43  ;;  %v6448_v43 = vld [vmem:[%s10945_s3 + $0x38] sm:$0xff] }
 0x5d6   : > { %7283 = vmatprep.mubr.msk.f32.mxu0 %vm8275_vm2, %v8274_v3  ;;  %7287 = vmatpush3.msra.mxu1 %v6448_v43 }
 0x5d7   : > { %v1953_v42 = vpop.permute.xlu0 %1952  ;;  %v1973_v5 = vpop.permute.xlu1 %1972  ;;  %7288 = vmatprep.subr.mxu1 %v8274_v3 }
 0x5d8   : > { %v1989_v10 = vsel %vm1984_vm7, %v1983_v33, %v1953_v42  ;;  %v6447_v33 = vld [vmem:[%s10945_s3 + $0x30] sm:$0xff]  ;;  %v6446_v42 = vld [vmem:[%s10945_s3 + $0x28] sm:$0xff] }
 0x5d9   : > { %v1995_v44 = vsel %vm1990_vm8, %v1989_v10, %v1973_v5  ;;  %7289 = vmatpush3.msra.mxu1 %v6447_v33  ;;  %v6445_v5 = vld [vmem:[%s10945_s3 + $0x20] sm:$0xff] }
 0x5da   : > { %7284 = vmatmul.mubr.msk.f32.gmra.mxu0 %vm550_vm3, %v1995_v44  ;;  %7290 = vmatprep.subr.mxu1 %v8274_v3 }
 0x5db   : > { %7319 = vmatprep.mubr.msk.f32.mxu0 %vm8275_vm2, %v8274_v3  ;;  %7291 = vmatpush3.msra.mxu1 %v6446_v42 }
 0x5dc   : > { %7292 = vmatprep.subr.mxu1 %v8274_v3 }
 0x5dd   : > { %7293 = vmatpush3.msra.mxu1 %v6445_v5 }
 0x5de   : > { %7334 = vmatprep.subr.mxu1 %v8274_v3 }
 0x689   : > { %v2081_v47 = vpop.f32.mrf.mxu0 }
 0x68a   : > { %v2082_v23 = vadd.f32 %v6437_v7, %v2081_v47 }
 0x68b   : > { %v7273_v17 = vpop.f32.mrf.mxu0 }
 0x68c   : > { %v9075_v39 = vadd.f32 %v2082_v23, %v8392_v12 }
 0x68d   : > { %v2086_v52 = vpop.f32.mrf.mxu0 }
 0x68e   : > { %v2087_v40 = vadd.f32 %v6437_v7, %v2086_v52  ;;  %v2116_v29 = vsel %vm550_vm3, %v9075_v39, 0.0 }
 0x68f   : > { %2117 = vadd.xlane.f32.xlu0 %v2116_v29  ;;  %v7276_v46 = vpop.f32.mrf.mxu0 }
 0x690   : > { %v9080_v54 = vadd.f32 %v8390_v11, %v2087_v40 }
 0x691   : > { %v2091_v56 = vpop.f32.mrf.mxu0 }
 0x692   : > { %v2092_v55 = vadd.f32 %v6437_v7, %v2091_v56  ;;  %v2119_v6 = vsel %vm550_vm3, %v9080_v54, 0.0 }
 0x693   : > { %2120 = vadd.xlane.f32.xlu1 %v2119_v6  ;;  %v7279_v8 = vpop.f32.mrf.mxu0 }
 0x694   : > { %v9085_v12 = vadd.f32 %v2092_v55, %v8404_v14  ;;  %v8265_v14 = vld [vmem:[%s10944_s2] ss:$0 sm:$0xff] }
 0x695   : > { %v2096_v53 = vpop.f32.mrf.mxu0 }
 0x696   : > { %v2097_v61 = vadd.f32 %v6437_v7, %v2096_v53  ;;  %v2122_v16 = vsel %vm550_vm3, %v9085_v12, 0.0  ;;  %v6443_v53 = vld [vmem:[%s10944_s2 + $0x4] ss:$0 sm:$0xff] }
 0x697   : > { %2123 = vadd.xlane.f32.xlu0 %v2122_v16  ;;  %v7282_v15 = vpop.f32.mrf.mxu0 }
 0x698   : > { %v9090_v11 = vadd.f32 %v8398_v13, %v2097_v61 }
 0x69a   : > { %v2101_v58 = vpop.f32.mrf.mxu0  ;;  %v2125_v35 = vsel %vm550_vm3, %v9090_v11, 0.0 }
 0x69b   : > { %v2102_v59 = vadd.f32 %v6437_v7, %v2101_v58  ;;  %2126 = vadd.xlane.f32.xlu0 %v2125_v35  ;;  %v6444_v58 = vld [vmem:[%s10944_s2 + $0x5] ss:$0 sm:$0xff] }
 0x69c   : > { %v7285_v24 = vpop.f32.mrf.mxu0 }
 0x69d   : > { %v9097_v21 = vadd.f32 %v8265_v14, %v2102_v59 }
 0x69f   : > { %v2129_v34 = vsel %vm2128_vm9, %v9097_v21, 0.0 }
 0x6a0   : > { %2130 = vadd.xlane.f32.xlu1 %v2129_v34 }
 0x718   : > { %v2118_v13 = vpop.xlane.xlu0 %2117 }
 0x719   : > { %v2133_v26 = vmul.f32 0.03125, %v2118_v13 }
 0x71b   : > { %v2138_v51 = vsub.f32 %v9075_v39, %v2133_v26 }
 0x71c   : > { %v2121_v25 = vpop.xlane.xlu1 %2120 }
 0x71d   : > { %v2134_v32 = vmul.f32 0.03125, %v2121_v25  ;;  %v2143_v31 = vmul.f32 %v2138_v51, %v2138_v51 }
 0x71f   : > { %v9103_v9 = vsub.f32 %v9080_v54, %v2134_v32  ;;  %v2148_v41 = vsel %vm550_vm3, %v2143_v31, 0.0 }
 0x720   : > { %v2124_v50 = vpop.xlane.xlu0 %2123  ;;  %2149 = vadd.xlane.f32.xlu0 %v2148_v41 }
 0x721   : > { %v2135_v19 = vmul.f32 0.03125, %v2124_v50  ;;  %v2144_v63 = vmul.f32 %v9103_v9, %v9103_v9 }
 0x723   : > { %v9109_v37 = vsub.f32 %v9085_v12, %v2135_v19  ;;  %v2151_v60 = vsel %vm550_vm3, %v2144_v63, 0.0 }
 0x724   : > { %v2127_v38 = vpop.xlane.xlu0 %2126  ;;  %2152 = vadd.xlane.f32.xlu1 %v2151_v60 }
 0x725   : > { %v2136_v62 = vmul.f32 0.03125, %v2127_v38  ;;  %v2145_v22 = vmul.f32 %v9109_v37, %v9109_v37 }
 0x727   : > { %v9115_v0 = vsub.f32 %v9090_v11, %v2136_v62  ;;  %v2154_v48 = vsel %vm550_vm3, %v2145_v22, 0.0 }
 0x728   : > { %2155 = vadd.xlane.f32.xlu0 %v2154_v48 }
 0x729   : > { %v2131_v2 = vpop.xlane.xlu1 %2130  ;;  %v2146_v45 = vmul.f32 %v9115_v0, %v9115_v0 }
 0x72a   : > { %v2137_v49 = vmul.f32 0.03125, %v2131_v2 }
 0x72b   : > { %v2157_v28 = vsel %vm550_vm3, %v2146_v45, 0.0  ;;  %v6453_v45 = vld [vmem:[%s10946_s4 + $0x1] ss:$0 sm:$0xff] }
 0x72c   : > { %v2142_v20 = vsub.f32 %v9097_v21, %v2137_v49  ;;  %2158 = vadd.xlane.f32.xlu1 %v2157_v28 }
 0x72e   : > { %v2147_v30 = vmul.f32 %v2142_v20, %v2142_v20 }
 0x730   : > { %v2160_v1 = vsel %vm2128_vm9, %v2147_v30, 0.0 }
 0x731   : > { %2161 = vadd.xlane.f32.xlu0 %v2160_v1 }
 0x7a9   : > { %v2150_v10 = vpop.xlane.xlu0 %2149 }
 0x7aa   : > { %v2163_v44 = vmul.f32 0.03125, %v2150_v10 }
 0x7ac   : > { %v2168_v7 = vadd.f32 1e-05, %v2163_v44 }
 0x7ad   : > { %v2153_v47 = vpop.xlane.xlu1 %2152 }
 0x7ae   : > { %8037 = vrsqrt.f32 %v2168_v7  ;;  %v2164_v23 = vmul.f32 0.03125, %v2153_v47 }
 0x7b0   : > { %v2169_v17 = vadd.f32 1e-05, %v2164_v23 }
 0x7b1   : > { %v2156_v52 = vpop.xlane.xlu0 %2155 }
 0x7b2   : > { %8039 = vrsqrt.f32 %v2169_v17  ;;  %v2165_v40 = vmul.f32 0.03125, %v2156_v52 }
 0x7b4   : > { %v2170_v29 = vadd.f32 1e-05, %v2165_v40 }
 0x7b5   : > { %v2159_v46 = vpop.xlane.xlu1 %2158 }
 0x7b6   : > { %8041 = vrsqrt.f32 %v2170_v29  ;;  %v2166_v56 = vmul.f32 0.03125, %v2159_v46 }
 0x7b8   : > { %v2171_v55 = vadd.f32 1e-05, %v2166_v56 }
 0x7ba   : > { %8043 = vrsqrt.f32 %v2171_v55  ;;  %v2162_v6 = vpop.xlane.xlu0 %2161 }
 0x7bb   : > { %v8038_v8 = vpop.eup %8037  ;;  %v2167_v61 = vmul.f32 0.03125, %v2162_v6 }
 0x7bc   : > { %v2178_v16 = vmul.f32 %v8038_v8, %v2138_v51 }
 0x7bd   : > { %v2172_v15 = vadd.f32 1e-05, %v2167_v61 }
 0x7be   : > { %v2187_v35 = vmul.f32 %v6443_v53, %v2178_v16 }
 0x7bf   : > { %v8040_v59 = vpop.eup %8039  ;;  %8045 = vrsqrt.f32 %v2172_v15 }
 0x7c0   : > { %v2196_v24 = vadd.f32 %v6444_v58, %v2187_v35  ;;  %v2179_v14 = vmul.f32 %v8040_v59, %v9103_v9 }
 0x7c2   : > { %7295 = vmatmul.mubr.msk.f32.vlgmr.msra.gmra.mxu1 %vm550_vm3, %v2196_v24  ;;  %v2188_v34 = vmul.f32 %v6443_v53, %v2179_v14 }
 0x7c3   : > { %v8042_v13 = vpop.eup %8041  ;;  %7297 = vmatprep.mubr.msk.f32.mxu1 %vm8275_vm2, %v8274_v3 }
 0x7c4   : > { %v2197_v26 = vadd.f32 %v6444_v58, %v2188_v34  ;;  %v2180_v51 = vmul.f32 %v8042_v13, %v9109_v37 }
 0x7c6   : > { %7298 = vmatmul.mubr.msk.f32.gmra.mxu1 %vm550_vm3, %v2197_v26  ;;  %v2189_v25 = vmul.f32 %v6443_v53, %v2180_v51 }
 0x7c7   : > { %v8044_v32 = vpop.eup %8043  ;;  %7300 = vmatprep.mubr.msk.f32.mxu1 %vm8275_vm2, %v8274_v3 }
 0x7c8   : > { %v2198_v31 = vadd.f32 %v6444_v58, %v2189_v25  ;;  %v2181_v9 = vmul.f32 %v8044_v32, %v9115_v0 }
 0x7ca   : > { %7301 = vmatmul.mubr.msk.f32.gmra.mxu1 %vm550_vm3, %v2198_v31  ;;  %v2190_v41 = vmul.f32 %v6443_v53, %v2181_v9 }
 0x7cb   : > { %7303 = vmatprep.mubr.msk.f32.mxu1 %vm8275_vm2, %v8274_v3 }
 0x7cc   : > { %v8046_v50 = vpop.eup %8045  ;;  %v2199_v19 = vadd.f32 %v6444_v58, %v2190_v41 }
 0x7cd   : > { %v2182_v63 = vmul.f32 %v8046_v50, %v2142_v20 }
 0x7ce   : > { %7304 = vmatmul.mubr.msk.f32.gmra.mxu1 %vm550_vm3, %v2199_v19 }
 0x7cf   : > { %7306 = vmatprep.mubr.msk.f32.mxu1 %vm8275_vm2, %v8274_v3  ;;  %v2191_v37 = vmul.f32 %v6443_v53, %v2182_v63 }
 0x7d1   : > { %v2200_v60 = vadd.f32 %v6444_v58, %v2191_v37 }
 0x7d3   : > { %7307 = vmatmul.mubr.msk.f32.gmra.mxu1 %vm550_vm3, %v2200_v60 }
 0x7d4   : > { %7344 = vmatprep.mubr.msk.f32.mxu1 %vm8275_vm2, %v8274_v3 }
 0x882   : > { %v2297_v38 = vpop.f32.mrf.mxu1 }
 0x883   : > { %v9170_v30 = vadd.f32 %v6453_v45, %v2297_v38 }
 0x884   : > { %v7296_v62 = vpop.f32.mrf.mxu1 }
 0x886   : > { %v2302_v22 = vpop.f32.mrf.mxu1 }
 0x887   : > { %v9184_v5 = vadd.f32 %v6453_v45, %v2302_v22 }
 0x888   : > { %v7299_v0 = vpop.f32.mrf.mxu1 }
 0x88a   : > { %v2307_v48 = vpop.f32.mrf.mxu1 }
 0x88b   : > { %v9178_v42 = vadd.f32 %v6453_v45, %v2307_v48 }
 0x88c   : > { %v7302_v2 = vpop.f32.mrf.mxu1 }
 0x88e   : > { %v2312_v49 = vpop.f32.mrf.mxu1 }
 0x88f   : > { %v9166_v28 = vadd.f32 %v6453_v45, %v2312_v49 }
 0x890   : > { %v7305_v20 = vpop.f32.mrf.mxu1 }
 0x891   : > { %2332 = vrot.lane.b32.xlu0 %v9166_v28, %s8276_s17 }
 0x893   : > { %v2317_v1 = vpop.f32.mrf.mxu1 }
 0x894   : > { %v9172_v43 = vadd.f32 %v6453_v45, %v2317_v1 }
 0x895   : > { %2326 = vrot.lane.b32.xlu0 %v9170_v30, %s8276_s17  ;;  %v7308_v33 = vpop.f32.mrf.mxu1 }
 0x896   : > { %2334 = vrot.lane.b32.xlu1 %v9172_v43, %s8276_s17 }
 0x899   : > { %2648 = vrot.lane.b32.xlu0 %v9166_v28, %s8277_s18 }
 0x89a   : > { %2330 = vrot.lane.b32.xlu1 %v9178_v42, %s8276_s17 }
 0x89d   : > { %2644 = vrot.lane.b32.xlu0 %v9184_v5, %s8277_s18 }
 0x89e   : > { %2328 = vrot.lane.b32.xlu1 %v9184_v5, %s8276_s17 }
 0x8a1   : > { %2632 = vrot.lane.b32.xlu0 %v9170_v30, %s8279_s21 }
 0x8a2   : > { %2650 = vrot.lane.b32.xlu1 %v9172_v43, %s8277_s18 }
 0x8a5   : > { %2634 = vrot.lane.b32.xlu0 %v9184_v5, %s8279_s21 }
 0x8a6   : > { %2646 = vrot.lane.b32.xlu1 %v9178_v42, %s8277_s18 }
 0x8a9   : > { %2636 = vrot.lane.b32.xlu0 %v9178_v42, %s8279_s21 }
 0x8aa   : > { %2642 = vrot.lane.b32.xlu1 %v9170_v30, %s8277_s18 }
 0x8ad   : > { %2638 = vrot.lane.b32.xlu0 %v9166_v28, %s8279_s21 }
 0x8ae   : > { %2966 = vrot.lane.b32.xlu1 %v9172_v43, %s8278_s20 }
 0x8b1   : > { %2640 = vrot.lane.b32.xlu0 %v9172_v43, %s8279_s21 }
 0x8b2   : > { %2964 = vrot.lane.b32.xlu1 %v9166_v28, %s8278_s20 }
 0x8b5   : > { %2948 = vrot.lane.b32.xlu0 %v9170_v30, %s8281_s23 }
 0x8b6   : > { %2962 = vrot.lane.b32.xlu1 %v9178_v42, %s8278_s20 }
 0x8b9   : > { %2950 = vrot.lane.b32.xlu0 %v9184_v5, %s8281_s23 }
 0x8ba   : > { %2960 = vrot.lane.b32.xlu1 %v9184_v5, %s8278_s20 }
 0x8bd   : > { %2952 = vrot.lane.b32.xlu0 %v9178_v42, %s8281_s23 }
 0x8be   : > { %2958 = vrot.lane.b32.xlu1 %v9170_v30, %s8278_s20 }
 0x8c1   : > { %2954 = vrot.lane.b32.xlu0 %v9166_v28, %s8281_s23 }
 0x8c2   : > { %3282 = vrot.lane.b32.xlu1 %v9172_v43, %s8280_s22 }
 0x8c5   : > { %2956 = vrot.lane.b32.xlu0 %v9172_v43, %s8281_s23 }
 0x8c6   : > { %3280 = vrot.lane.b32.xlu1 %v9166_v28, %s8280_s22 }
 0x8c9   : > { %3264 = vrot.lane.b32.xlu0 %v9170_v30, %s10968_s25 }
 0x8ca   : > { %3278 = vrot.lane.b32.xlu1 %v9178_v42, %s8280_s22 }
 0x8cd   : > { %3268 = vrot.lane.b32.xlu0 %v9178_v42, %s10968_s25 }
 0x8ce   : > { %3276 = vrot.lane.b32.xlu1 %v9184_v5, %s8280_s22 }
 0x8d1   : > { %3272 = vrot.lane.b32.xlu0 %v9172_v43, %s10968_s25 }
 0x8d2   : > { %3274 = vrot.lane.b32.xlu1 %v9170_v30, %s8280_s22 }
 0x8d5   : > { %2517 = vrot.lane.b32.xlu0 %v9166_v28, %s10966_s26 }
 0x8d6   : > { %3266 = vrot.lane.b32.xlu1 %v9184_v5, %s10968_s25 }
 0x8d9   : > { %2513 = vrot.lane.b32.xlu0 %v9184_v5, %s10966_s26 }
 0x8da   : > { %3270 = vrot.lane.b32.xlu1 %v9166_v28, %s10968_s25 }
 0x8dd   : > { %2511 = vrot.lane.b32.xlu0 %v9170_v30, %s10966_s26 }
 0x8de   : > { %2515 = vrot.lane.b32.xlu1 %v9178_v42, %s10966_s26 }
 0x8e1   : > { %2833 = vrot.lane.b32.xlu0 %v9166_v28, %s10964_s27 }
 0x8e2   : > { %2831 = vrot.lane.b32.xlu1 %v9178_v42, %s10964_s27 }
 0x8e5   : > { %2829 = vrot.lane.b32.xlu0 %v9184_v5, %s10964_s27 }
 0x8e6   : > { %3147 = vrot.lane.b32.xlu1 %v9178_v42, %s10962_s28 }
 0x8e9   : > { %2827 = vrot.lane.b32.xlu0 %v9170_v30, %s10964_s27 }
 0x8ea   : > { %2519 = vrot.lane.b32.xlu1 %v9172_v43, %s10966_s26 }
 0x8ed   : > { %3149 = vrot.lane.b32.xlu0 %v9166_v28, %s10962_s28 }
 0x8ee   : > { %2835 = vrot.lane.b32.xlu1 %v9172_v43, %s10964_s27 }
 0x8f1   : > { %3145 = vrot.lane.b32.xlu0 %v9184_v5, %s10962_s28 }
 0x8f2   : > { %3151 = vrot.lane.b32.xlu1 %v9172_v43, %s10962_s28 }
 0x903   : > { %v2333_v10 = vpop.permute.xlu0 %2332 }
 0x907   : > { %v2327_v44 = vpop.permute.xlu0 %2326 }
 0x908   : > { %v2335_v7 = vpop.permute.xlu1 %2334 }
 0x909   : > { %7310 = vmatpush3.xpose.msk.msra.mxu0 %vm671_vm4, %v2335_v7 }
 0x90a   : > { %7311 = vmatprep.subr.mxu0 %v8274_v3 }
 0x90b   : > { %v2649_v47 = vpop.permute.xlu0 %2648 }
 0x90c   : > { %v2331_v23 = vpop.permute.xlu1 %2330 }
 0x90d   : > { %7312 = vmatpush3.xpose.msk.msra.mxu0 %vm671_vm4, %v2333_v10 }
 0x90e   : > { %7313 = vmatprep.subr.mxu0 %v8274_v3 }
 0x90f   : > { %v2645_v17 = vpop.permute.xlu0 %2644 }
 0x910   : > { %v2329_v52 = vpop.permute.xlu1 %2328 }
 0x911   : > { %7314 = vmatpush3.xpose.msk.msra.mxu0 %vm671_vm4, %v2331_v23 }
 0x912   : > { %7315 = vmatprep.subr.mxu0 %v8274_v3 }
 0x913   : > { %v2633_v40 = vpop.permute.xlu0 %2632 }
 0x914   : > { %v2651_v29 = vpop.permute.xlu1 %2650 }
 0x915   : > { %7316 = vmatpush3.xpose.msk.msra.mxu0 %vm671_vm4, %v2329_v52 }
 0x916   : > { %7317 = vmatprep.subr.mxu0 %v8274_v3 }
 0x917   : > { %v2635_v46 = vpop.permute.xlu0 %2634 }
 0x918   : > { %v2647_v56 = vpop.permute.xlu1 %2646 }
 0x919   : > { %7318 = vmatpush3.xpose.msk.msra.mxu0 %vm671_vm4, %v2327_v44 }
 0x91a   : > { %7359 = vmatprep.subr.mxu0 %v8274_v3 }
 0x91b   : > { %v2637_v55 = vpop.permute.xlu0 %2636 }
 0x91c   : > { %7320 = vmatmul.mubr.msk.f32.vlgmr.msra.gmra.mxu0 %vm671_vm4, %v9170_v30  ;;  %v2643_v6 = vpop.permute.xlu1 %2642 }
 0x91d   : > { %7360 = vmatpush3.xpose.msk.msra.mxu0 %vm671_vm4, %v2651_v29  ;;  %7322 = vmatprep.mubr.msk.f32.mxu0 %vm8275_vm2, %v8274_v3 }
 0x91e   : > { %7361 = vmatprep.subr.mxu0 %v8274_v3 }
 0x91f   : > { %v2639_v8 = vpop.permute.xlu0 %2638 }
 0x920   : > { %7323 = vmatmul.mubr.msk.f32.gmra.mxu0 %vm671_vm4, %v9184_v5  ;;  %v2967_v53 = vpop.permute.xlu1 %2966 }
 0x921   : > { %7362 = vmatpush3.xpose.msk.msra.mxu0 %vm671_vm4, %v2649_v47  ;;  %7325 = vmatprep.mubr.msk.f32.mxu0 %vm8275_vm2, %v8274_v3 }
 0x922   : > { %7363 = vmatprep.subr.mxu0 %v8274_v3 }
 0x923   : > { %v2641_v61 = vpop.permute.xlu0 %2640 }
 0x924   : > { %7326 = vmatmul.mubr.msk.f32.gmra.mxu0 %vm671_vm4, %v9178_v42  ;;  %v2965_v16 = vpop.permute.xlu1 %2964 }
 0x925   : > { %7364 = vmatpush3.xpose.msk.msra.mxu0 %vm671_vm4, %v2647_v56  ;;  %7328 = vmatprep.mubr.msk.f32.mxu0 %vm8275_vm2, %v8274_v3 }
 0x926   : > { %7365 = vmatprep.subr.mxu0 %v8274_v3 }
 0x927   : > { %v2949_v15 = vpop.permute.xlu0 %2948 }
 0x928   : > { %7329 = vmatmul.mubr.msk.f32.gmra.mxu0 %vm671_vm4, %v9166_v28  ;;  %v2963_v58 = vpop.permute.xlu1 %2962 }
 0x929   : > { %7366 = vmatpush3.xpose.msk.msra.mxu0 %vm671_vm4, %v2645_v17  ;;  %7331 = vmatprep.mubr.msk.f32.mxu0 %vm8275_vm2, %v8274_v3 }
 0x92a   : > { %7367 = vmatprep.subr.mxu0 %v8274_v3 }
 0x92b   : > { %v2951_v59 = vpop.permute.xlu0 %2950 }
 0x92c   : > { %7332 = vmatmul.mubr.msk.f32.gmra.mxu0 %vm671_vm4, %v9172_v43  ;;  %v2961_v35 = vpop.permute.xlu1 %2960 }
 0x92d   : > { %7368 = vmatpush3.xpose.msk.msra.mxu0 %vm671_vm4, %v2643_v6  ;;  %7369 = vmatprep.mubr.msk.f32.mxu0 %vm8275_vm2, %v8274_v3 }
 0x92e   : > { %7409 = vmatprep.subr.mxu0 %v8274_v3 }
 0x92f   : > { %v2953_v14 = vpop.permute.xlu0 %2952 }
 0x930   : > { %7370 = vmatmul.mubr.msk.f32.vlgmr.msra.gmra.mxu0 %vm671_vm4, %v2633_v40  ;;  %v2959_v24 = vpop.permute.xlu1 %2958 }
 0x931   : > { %7410 = vmatpush3.xpose.msk.msra.mxu0 %vm671_vm4, %v2967_v53  ;;  %7372 = vmatprep.mubr.msk.f32.mxu0 %vm8275_vm2, %v8274_v3 }
 0x932   : > { %7411 = vmatprep.subr.mxu0 %v8274_v3 }
 0x933   : > { %v2955_v26 = vpop.permute.xlu0 %2954 }
 0x934   : > { %7373 = vmatmul.mubr.msk.f32.gmra.mxu0 %vm671_vm4, %v2635_v46  ;;  %v3283_v34 = vpop.permute.xlu1 %3282 }
 0x935   : > { %7412 = vmatpush3.xpose.msk.msra.mxu0 %vm671_vm4, %v2965_v16  ;;  %7375 = vmatprep.mubr.msk.f32.mxu0 %vm8275_vm2, %v8274_v3 }
 0x936   : > { %7413 = vmatprep.subr.mxu0 %v8274_v3 }
 0x937   : > { %v2957_v25 = vpop.permute.xlu0 %2956 }
 0x938   : > { %7376 = vmatmul.mubr.msk.f32.gmra.mxu0 %vm671_vm4, %v2637_v55  ;;  %v3281_v13 = vpop.permute.xlu1 %3280 }
 0x939   : > { %7414 = vmatpush3.xpose.msk.msra.mxu0 %vm671_vm4, %v2963_v58  ;;  %7378 = vmatprep.mubr.msk.f32.mxu0 %vm8275_vm2, %v8274_v3 }
 0x93a   : > { %7415 = vmatprep.subr.mxu0 %v8274_v3 }
 0x93b   : > { %v3265_v9 = vpop.permute.xlu0 %3264 }
 0x93c   : > { %7379 = vmatmul.mubr.msk.f32.gmra.mxu0 %vm671_vm4, %v2639_v8  ;;  %v3279_v51 = vpop.permute.xlu1 %3278 }
 0x93d   : > { %7416 = vmatpush3.xpose.msk.msra.mxu0 %vm671_vm4, %v2961_v35  ;;  %7381 = vmatprep.mubr.msk.f32.mxu0 %vm8275_vm2, %v8274_v3 }
 0x93e   : > { %7417 = vmatprep.subr.mxu0 %v8274_v3 }
 0x93f   : > { %v3269_v50 = vpop.permute.xlu0 %3268 }
 0x940   : > { %7382 = vmatmul.mubr.msk.f32.gmra.mxu0 %vm671_vm4, %v2641_v61  ;;  %v3277_v32 = vpop.permute.xlu1 %3276 }
 0x941   : > { %7418 = vmatpush3.xpose.msk.msra.mxu0 %vm671_vm4, %v2959_v24  ;;  %7419 = vmatprep.mubr.msk.f32.mxu0 %vm8275_vm2, %v8274_v3 }
 0x942   : > { %7459 = vmatprep.subr.mxu0 %v8274_v3 }
 0x943   : > { %v3273_v37 = vpop.permute.xlu0 %3272 }
 0x944   : > { %7420 = vmatmul.mubr.msk.f32.vlgmr.msra.gmra.mxu0 %vm671_vm4, %v2949_v15  ;;  %v3275_v31 = vpop.permute.xlu1 %3274 }
 0x945   : > { %7460 = vmatpush3.xpose.msk.msra.mxu0 %vm671_vm4, %v3283_v34  ;;  %7422 = vmatprep.mubr.msk.f32.mxu0 %vm8275_vm2, %v8274_v3 }
 0x946   : > { %7461 = vmatprep.subr.mxu0 %v8274_v3 }
 0x947   : > { %v2518_v38 = vpop.permute.xlu0 %2517 }
 0x948   : > { %7423 = vmatmul.mubr.msk.f32.gmra.mxu0 %vm671_vm4, %v2951_v59  ;;  %v3267_v41 = vpop.permute.xlu1 %3266 }
 0x949   : > { %7462 = vmatpush3.xpose.msk.msra.mxu0 %vm671_vm4, %v3281_v13  ;;  %7425 = vmatprep.mubr.msk.f32.mxu0 %vm8275_vm2, %v8274_v3 }
 0x94a   : > { %7463 = vmatprep.subr.mxu0 %v8274_v3 }
 0x94b   : > { %v2514_v0 = vpop.permute.xlu0 %2513 }
 0x94c   : > { %7426 = vmatmul.mubr.msk.f32.gmra.mxu0 %vm671_vm4, %v2953_v14  ;;  %v3271_v19 = vpop.permute.xlu1 %3270 }
 0x94d   : > { %7464 = vmatpush3.xpose.msk.msra.mxu0 %vm671_vm4, %v3279_v51  ;;  %7428 = vmatprep.mubr.msk.f32.mxu0 %vm8275_vm2, %v8274_v3 }
 0x94e   : > { %7465 = vmatprep.subr.mxu0 %v8274_v3 }
 0x94f   : > { %v2512_v48 = vpop.permute.xlu0 %2511 }
 0x950   : > { %7429 = vmatmul.mubr.msk.f32.gmra.mxu0 %vm671_vm4, %v2955_v26  ;;  %v2516_v63 = vpop.permute.xlu1 %2515 }
 0x951   : > { %7466 = vmatpush3.xpose.msk.msra.mxu0 %vm671_vm4, %v3277_v32  ;;  %7431 = vmatprep.mubr.msk.f32.mxu0 %vm8275_vm2, %v8274_v3 }
 0x952   : > { %7467 = vmatprep.subr.mxu0 %v8274_v3 }
 0x954   : > { %7432 = vmatmul.mubr.msk.f32.gmra.mxu0 %vm671_vm4, %v2957_v25  ;;  %v9360_v60 = vpop.permute.xlu1 %2831 }
 0x955   : > { %7468 = vmatpush3.xpose.msk.msra.mxu0 %vm671_vm4, %v3275_v31  ;;  %7469 = vmatprep.mubr.msk.f32.mxu0 %vm8275_vm2, %v8274_v3 }
 0x956   : > { %7509 = vmatprep.subr.mxu0 %v8274_v3 }
 0x958   : > { %7470 = vmatmul.mubr.msk.f32.vlgmr.msra.gmra.mxu0 %vm671_vm4, %v3265_v9  ;;  %v9367_v62 = vpop.permute.xlu1 %3147 }
 0x959   : > { %7472 = vmatprep.mubr.msk.f32.mxu0 %vm8275_vm2, %v8274_v3 }
 0x95c   : > { %7473 = vmatmul.mubr.msk.f32.gmra.mxu0 %vm671_vm4, %v3267_v41  ;;  %v2520_v22 = vpop.permute.xlu1 %2519 }
 0x95d   : > { %7335 = vmatpush3.msk.msra.mxu1 %vm878_vm5, %v2520_v22  ;;  %7475 = vmatprep.mubr.msk.f32.mxu0 %vm8275_vm2, %v8274_v3 }
 0x95e   : > { %7336 = vmatprep.subr.mxu1 %v8274_v3 }
 0x95f   : > { %7337 = vmatpush3.msra.mxu1 %v2518_v38 }
 0x960   : > { %7338 = vmatprep.subr.mxu1 %v8274_v3  ;;  %7476 = vmatmul.mubr.msk.f32.gmra.mxu0 %vm671_vm4, %v3269_v50 }
 0x961   : > { %7339 = vmatpush3.msra.mxu1 %v2516_v63  ;;  %7478 = vmatprep.mubr.msk.f32.mxu0 %vm8275_vm2, %v8274_v3 }
 0x962   : > { %7340 = vmatprep.subr.mxu1 %v8274_v3 }
 0x963   : > { %7341 = vmatpush3.msra.mxu1 %v2514_v0 }
 0x964   : > { %7342 = vmatprep.subr.mxu1 %v8274_v3  ;;  %7479 = vmatmul.mubr.msk.f32.gmra.mxu0 %vm671_vm4, %v3271_v19 }
 0x965   : > { %7343 = vmatpush3.msra.mxu1 %v2512_v48  ;;  %7481 = vmatprep.mubr.msk.f32.mxu0 %vm8275_vm2, %v8274_v3 }
 0x966   : > { %7384 = vmatprep.subr.mxu1 %v8274_v3 }
 0x968   : > { %7482 = vmatmul.mubr.msk.f32.gmra.mxu0 %vm671_vm4, %v3273_v37 }
 0x969   : > { %7517 = vmatprep.mubr.msk.f32.mxu0 %vm8275_vm2, %v8274_v3 }
 0x9dc   : > { %v2422_v2 = vpop.f32.mrf.mxu0 }
 0x9dd   : > { %v2446_v45 = vmul.f32 0.35355338, %v2422_v2 }
 0x9de   : > { %v7321_v49 = vpop.f32.mrf.mxu0 }
 0x9df   : > { %v9390_v20 = vadd.f32 %v2446_v45, %v8646_v57 }
 0x9e0   : > { %v2427_v1 = vpop.f32.mrf.mxu0 }
 0x9e1   : > { %v2447_v33 = vmul.f32 0.35355338, %v2427_v1  ;;  %v2456_v10 = vsel %vm792_vm11, %v9390_v20, -inf }
 0x9e2   : > { %2457 = vmax.xlane.f32.xlu1 %v2456_v10  ;;  %v7324_v44 = vpop.f32.mrf.mxu0 }
 0x9e3   : > { %v9395_v7 = vadd.f32 %v2447_v33, %v8651_v4 }
 0x9e4   : > { %v2432_v47 = vpop.f32.mrf.mxu0 }
 0x9e5   : > { %v2448_v23 = vmul.f32 0.35355338, %v2432_v47  ;;  %v2459_v17 = vsel %vm792_vm11, %v9395_v7, -inf }
 0x9e6   : > { %2460 = vmax.xlane.f32.xlu0 %v2459_v17  ;;  %v7327_v52 = vpop.f32.mrf.mxu0 }
 0x9e7   : > { %v9400_v40 = vadd.f32 %v2448_v23, %v8658_v18 }
 0x9e8   : > { %v2437_v29 = vpop.f32.mrf.mxu0 }
 0x9e9   : > { %v2449_v46 = vmul.f32 0.35355338, %v2437_v29  ;;  %v2462_v56 = vsel %vm792_vm11, %v9400_v40, -inf }
 0x9ea   : > { %2463 = vmax.xlane.f32.xlu0 %v2462_v56  ;;  %v7330_v55 = vpop.f32.mrf.mxu0 }
 0x9eb   : > { %v9405_v6 = vadd.f32 %v2449_v46, %v8665_v27 }
 0x9ec   : > { %v2442_v8 = vpop.f32.mrf.mxu0 }
 0x9ed   : > { %v2450_v53 = vmul.f32 0.35355338, %v2442_v8  ;;  %v2465_v61 = vsel %vm792_vm11, %v9405_v6, -inf }
 0x9ee   : > { %2466 = vmax.xlane.f32.xlu1 %v2465_v61  ;;  %v7333_v16 = vpop.f32.mrf.mxu0 }
 0x9ef   : > { %v9410_v15 = vadd.f32 %v2450_v53, %v8672_v36 }
 0x9f0   : > { %v2738_v58 = vpop.f32.mrf.mxu0 }
 0x9f1   : > { %v2762_v35 = vmul.f32 0.35355338, %v2738_v58  ;;  %v2468_v59 = vsel %vm805_vm6, %v9410_v15, -inf }
 0x9f2   : > { %2469 = vmax.xlane.f32.xlu0 %v2468_v59  ;;  %v7371_v24 = vpop.f32.mrf.mxu0 }
 0x9f3   : > { %v9415_v14 = vadd.f32 %v2762_v35, %v8646_v57 }
 0x9f4   : > { %v2743_v34 = vpop.f32.mrf.mxu0 }
 0x9f5   : > { %v2763_v13 = vmul.f32 0.35355338, %v2743_v34  ;;  %v2772_v26 = vsel %vm792_vm11, %v9415_v14, -inf }
 0x9f6   : > { %2773 = vmax.xlane.f32.xlu1 %v2772_v26  ;;  %v7374_v51 = vpop.f32.mrf.mxu0 }
 0x9f7   : > { %v9420_v25 = vadd.f32 %v2763_v13, %v8651_v4 }
 0x9f8   : > { %v2748_v32 = vpop.f32.mrf.mxu0 }
 0x9f9   : > { %v2764_v31 = vmul.f32 0.35355338, %v2748_v32  ;;  %v2775_v9 = vsel %vm792_vm11, %v9420_v25, -inf }
 0x9fa   : > { %2776 = vmax.xlane.f32.xlu0 %v2775_v9  ;;  %v7377_v41 = vpop.f32.mrf.mxu0 }
 0x9fb   : > { %v9425_v50 = vadd.f32 %v2764_v31, %v8658_v18 }
 0x9fc   : > { %v2753_v19 = vpop.f32.mrf.mxu0 }
 0x9fd   : > { %v2765_v63 = vmul.f32 0.35355338, %v2753_v19  ;;  %v2778_v37 = vsel %vm792_vm11, %v9425_v50, -inf }
 0x9fe   : > { %2779 = vmax.xlane.f32.xlu1 %v2778_v37  ;;  %v7380_v38 = vpop.f32.mrf.mxu0 }
 0x9ff   : > { %v9430_v22 = vadd.f32 %v2765_v63, %v8665_v27 }
 0xa00   : > { %v2758_v0 = vpop.f32.mrf.mxu0 }
 0xa01   : > { %v2766_v48 = vmul.f32 0.35355338, %v2758_v0  ;;  %v2781_v2 = vsel %vm792_vm11, %v9430_v22, -inf }
 0xa02   : > { %2782 = vmax.xlane.f32.xlu0 %v2781_v2  ;;  %v7383_v45 = vpop.f32.mrf.mxu0 }
 0xa03   : > { %v9435_v49 = vadd.f32 %v2766_v48, %v8672_v36 }
 0xa04   : > { %v3054_v1 = vpop.f32.mrf.mxu0 }
 0xa05   : > { %v3078_v33 = vmul.f32 0.35355338, %v3054_v1  ;;  %v2784_v10 = vsel %vm805_vm6, %v9435_v49, -inf }
 0xa06   : > { %2785 = vmax.xlane.f32.xlu1 %v2784_v10  ;;  %v7421_v44 = vpop.f32.mrf.mxu0 }
 0xa07   : > { %v9440_v47 = vadd.f32 %v3078_v33, %v8646_v57 }
 0xa08   : > { %v3059_v23 = vpop.f32.mrf.mxu0 }
 0xa09   : > { %v3088_v17 = vsel %vm792_vm11, %v9440_v47, -inf  ;;  %v3079_v32 = vmul.f32 0.35355338, %v3059_v23 }
 0xa0a   : > { %3089 = vmax.xlane.f32.xlu0 %v3088_v17  ;;  %v7424_v52 = vpop.f32.mrf.mxu0 }
 0xa0b   : > { %v9449_v31 = vadd.f32 %v3079_v32, %v8651_v4 }
 0xa0c   : > { %v3064_v29 = vpop.f32.mrf.mxu0 }
 0xa0d   : > { %v3080_v9 = vmul.f32 0.35355338, %v3064_v29  ;;  %v3091_v38 = vsel %vm792_vm11, %v9449_v31, -inf }
 0xa0e   : > { %v7427_v46 = vpop.f32.mrf.mxu0 }
 0xa0f   : > { %v9452_v63 = vadd.f32 %v3080_v9, %v8658_v18 }
 0xa10   : > { %v3069_v56 = vpop.f32.mrf.mxu0 }
 0xa11   : > { %v3081_v41 = vmul.f32 0.35355338, %v3069_v56  ;;  %v3094_v1 = vsel %vm792_vm11, %v9452_v63, -inf }
 0xa12   : > { %v7430_v55 = vpop.f32.mrf.mxu0 }
 0xa13   : > { %v9455_v37 = vadd.f32 %v3081_v41, %v8665_v27 }
 0xa14   : > { %v3074_v8 = vpop.f32.mrf.mxu0 }
 0xa15   : > { %v3097_v33 = vsel %vm792_vm11, %v9455_v37, -inf }
 0xa16   : > { %v7433_v53 = vpop.f32.mrf.mxu0 }
 0xa17   : > { %3467 = vrot.lane.b32.xlu1 %v9172_v43, %s10970_s16  ;;  %v3082_v43 = vmul.f32 0.35355338, %v3074_v8 }
 0xa18   : > { %v3370_v61 = vpop.f32.mrf.mxu0 }
 0xa19   : > { %v3394_v19 = vmul.f32 0.35355338, %v3370_v61  ;;  %v9460_v0 = vadd.f32 %v3082_v43, %v8672_v36 }
 0xa1a   : > { %v7471_v16 = vpop.f32.mrf.mxu0 }
 0xa1b   : > { %v9463_v48 = vadd.f32 %v3394_v19, %v8646_v57  ;;  %v3100_v10 = vsel %vm805_vm6, %v9460_v0, -inf  ;;  %v9493_v16 = vpop.permute.xlu0 %2833 }
 0xa1c   : > { %v3375_v58 = vpop.f32.mrf.mxu0 }
 0xa1d   : > { %v3395_v2 = vmul.f32 0.35355338, %v3375_v58  ;;  %v3404_v44 = vsel %vm792_vm11, %v9463_v48, -inf }
 0xa1e   : > { %v7474_v35 = vpop.f32.mrf.mxu0 }
 0xa1f   : > { %v9474_v23 = vadd.f32 %v3395_v2, %v8651_v4  ;;  %v9495_v58 = vpop.permute.xlu0 %2829 }
 0xa20   : > { %3143 = vrot.lane.b32.xlu0 %v9170_v30, %s10962_s28  ;;  %v3380_v59 = vpop.f32.mrf.mxu0  ;;  %s10973_s28 = smov 24  }
 0xa21   : > { %v3396_v45 = vmul.f32 0.35355338, %v3380_v59  ;;  %v3407_v55 = vsel %vm792_vm11, %v9474_v23, -inf  ;;  %v9499_v59 = vpop.permute.xlu1 %2835 }
 0xa22   : > { %v7477_v24 = vpop.f32.mrf.mxu0 }
 0xa23   : > { %v9477_v17 = vadd.f32 %v3396_v45, %v8658_v18  ;;  %v9497_v35 = vpop.permute.xlu0 %2827 }
 0xa24   : > { %v3385_v34 = vpop.f32.mrf.mxu0 }
 0xa25   : > { %v3397_v52 = vmul.f32 0.35355338, %v3385_v34  ;;  %v3410_v8 = vsel %vm792_vm11, %v9477_v17, -inf  ;;  %v9503_v34 = vpop.permute.xlu1 %3151 }
 0xa26   : > { %v7480_v13 = vpop.f32.mrf.mxu0 }
 0xa27   : > { %v9480_v46 = vadd.f32 %v3397_v52, %v8665_v27  ;;  %v9501_v24 = vpop.permute.xlu0 %3149 }
 0xa28   : > { %v3390_v26 = vpop.f32.mrf.mxu0 }
 0xa29   : > { %v3398_v29 = vmul.f32 0.35355338, %v3390_v26  ;;  %v3413_v53 = vsel %vm792_vm11, %v9480_v46, -inf }
 0xa2a   : > { %v7483_v51 = vpop.f32.mrf.mxu0 }
 0xa2b   : > { %v9483_v56 = vadd.f32 %v3398_v29, %v8672_v36  ;;  %v9505_v13 = vpop.permute.xlu0 %3145 }
 0xa2d   : > { %v3416_v61 = vsel %vm805_vm6, %v9483_v56, -inf }
 0xa3b   : > { %3092 = vmax.xlane.f32.xlu1 %v3091_v38 }
 0xa3f   : > { %3095 = vmax.xlane.f32.xlu0 %v3094_v1  ;;  %3098 = vmax.xlane.f32.xlu1 %v3097_v33 }
 0xa43   : > { %3101 = vmax.xlane.f32.xlu0 %v3100_v10  ;;  %3405 = vmax.xlane.f32.xlu1 %v3404_v44 }
 0xa47   : > { %3408 = vmax.xlane.f32.xlu0 %v3407_v55  ;;  %3411 = vmax.xlane.f32.xlu1 %v3410_v8 }
 0xa4b   : > { %3414 = vmax.xlane.f32.xlu0 %v3413_v53  ;;  %3417 = vmax.xlane.f32.xlu1 %v3416_v61 }
 0xa6b   : > { %v2458_v26 = vpop.xlane.xlu1 %2457 }
 0xa6c   : > { %v2471_v51 = vsub.f32 %v9390_v20, %v2458_v26 }
 0xa6e   : > { %v2476_v32 = vmul.f32 1.442695, %v2471_v51 }
 0xa6f   : > { %v2461_v9 = vpop.xlane.xlu0 %2460 }
 0xa70   : > { %8047 = vpow2.f32 %v2476_v32  ;;  %v2472_v41 = vsub.f32 %v9395_v7, %v2461_v9 }
 0xa72   : > { %v2478_v43 = vmul.f32 1.442695, %v2472_v41 }
 0xa73   : > { %v2464_v19 = vpop.xlane.xlu0 %2463 }
 0xa74   : > { %8049 = vpow2.f32 %v2478_v43  ;;  %v2473_v38 = vsub.f32 %v9400_v40, %v2464_v19 }
 0xa76   : > { %v2480_v2 = vmul.f32 1.442695, %v2473_v38 }
 0xa77   : > { %v2467_v45 = vpop.xlane.xlu1 %2466 }
 0xa78   : > { %8051 = vpow2.f32 %v2480_v2  ;;  %v2474_v1 = vsub.f32 %v9405_v6, %v2467_v45 }
 0xa7a   : > { %v2482_v33 = vmul.f32 1.442695, %v2474_v1 }
 0xa7b   : > { %v2470_v10 = vpop.xlane.xlu0 %2469 }
 0xa7c   : > { %8053 = vpow2.f32 %v2482_v33  ;;  %v2475_v20 = vsub.f32 %v9410_v15, %v2470_v10 }
 0xa7d   : > { %v9512_v44 = vpop.eup %8047 }
 0xa7e   : > { %v2484_v52 = vmul.f32 1.442695, %v2475_v20  ;;  %v2486_v7 = vsel %vm792_vm11, %v9512_v44, 0.0 }
 0xa7f   : > { %v2774_v29 = vpop.xlane.xlu1 %2773  ;;  %2487 = vadd.xlane.f32.xlu0 %v2486_v7 }
 0xa80   : > { %8055 = vpow2.f32 %v2484_v52  ;;  %v2787_v40 = vsub.f32 %v9415_v14, %v2774_v29 }
 0xa81   : > { %v9517_v55 = vpop.eup %8049 }
 0xa82   : > { %v2792_v8 = vmul.f32 1.442695, %v2787_v40  ;;  %v2489_v6 = vsel %vm792_vm11, %v9517_v55, 0.0 }
 0xa83   : > { %v2777_v53 = vpop.xlane.xlu0 %2776  ;;  %2490 = vadd.xlane.f32.xlu1 %v2489_v6 }
 0xa84   : > { %8057 = vpow2.f32 %v2792_v8  ;;  %v2788_v15 = vsub.f32 %v9420_v25, %v2777_v53 }
 0xa85   : > { %v9522_v61 = vpop.eup %8051 }
 0xa86   : > { %v2794_v26 = vmul.f32 1.442695, %v2788_v15  ;;  %v2492_v51 = vsel %vm792_vm11, %v9522_v61, 0.0 }
 0xa87   : > { %v2780_v32 = vpop.xlane.xlu1 %2779  ;;  %2493 = vadd.xlane.f32.xlu0 %v2492_v51 }
 0xa88   : > { %8059 = vpow2.f32 %v2794_v26  ;;  %v2789_v14 = vsub.f32 %v9425_v50, %v2780_v32 }
 0xa89   : > { %v9527_v9 = vpop.eup %8053 }
 0xa8a   : > { %v2796_v41 = vmul.f32 1.442695, %v2789_v14  ;;  %v2495_v43 = vsel %vm792_vm11, %v9527_v9, 0.0 }
 0xa8b   : > { %v2783_v19 = vpop.xlane.xlu0 %2782  ;;  %2496 = vadd.xlane.f32.xlu1 %v2495_v43 }
 0xa8c   : > { %8061 = vpow2.f32 %v2796_v41  ;;  %v2790_v25 = vsub.f32 %v9430_v22, %v2783_v19 }
 0xa8d   : > { %v9532_v38 = vpop.eup %8055 }
 0xa8e   : > { %v2798_v2 = vmul.f32 1.442695, %v2790_v25  ;;  %v2498_v45 = vsel %vm805_vm6, %v9532_v38, 0.0 }
 0xa8f   : > { %v2786_v1 = vpop.xlane.xlu1 %2785  ;;  %2499 = vadd.xlane.f32.xlu0 %v2498_v45 }
 0xa90   : > { %8063 = vpow2.f32 %v2798_v2  ;;  %v2791_v50 = vsub.f32 %v9435_v49, %v2786_v1 }
 0xa91   : > { %v9537_v33 = vpop.eup %8057 }
 0xa92   : > { %v2800_v10 = vmul.f32 1.442695, %v2791_v50  ;;  %v2802_v20 = vsel %vm792_vm11, %v9537_v33, 0.0 }
 0xa93   : > { %v3090_v52 = vpop.xlane.xlu0 %3089  ;;  %2803 = vadd.xlane.f32.xlu0 %v2802_v20  ;;  %v9566_v32 = vpop.permute.xlu1 %3467 }
 0xa94   : > { %8065 = vpow2.f32 %v2800_v10  ;;  %v3103_v22 = vsub.f32 %v9440_v47, %v3090_v52 }
 0xa95   : > { %v9542_v7 = vpop.eup %8059 }
 0xa96   : > { %v3108_v29 = vmul.f32 1.442695, %v3103_v22  ;;  %v2805_v40 = vsel %vm792_vm11, %v9542_v7, 0.0 }
 0xa97   : > { %2806 = vadd.xlane.f32.xlu1 %v2805_v40  ;;  %v9568_v14 = vpop.permute.xlu0 %3143 }
 0xa98   : > { %8067 = vpow2.f32 %v3108_v29 }
 0xa99   : > { %v9546_v49 = vpop.eup %8061 }
 0xa9a   : > { %v2808_v8 = vsel %vm792_vm11, %v9546_v49, 0.0 }
 0xa9b   : > { %2809 = vadd.xlane.f32.xlu0 %v2808_v8 }
 0xa9d   : > { %v9550_v6 = vpop.eup %8063 }
 0xa9e   : > { %v2811_v53 = vsel %vm792_vm11, %v9550_v6, 0.0 }
 0xa9f   : > { %2812 = vadd.xlane.f32.xlu1 %v2811_v53 }
 0xaa1   : > { %v9554_v47 = vpop.eup %8065 }
 0xaa2   : > { %v2814_v15 = vsel %vm805_vm6, %v9554_v47, 0.0 }
 0xaa3   : > { %2815 = vadd.xlane.f32.xlu1 %v2814_v15 }
 0xaa5   : > { %v9558_v26 = vpop.eup %8067 }
 0xaa6   : > { %v3118_v51 = vsel %vm792_vm11, %v9558_v26, 0.0 }
 0xaa7   : > { %3119 = vadd.xlane.f32.xlu0 %v3118_v51 }
 0xab4   : > { %3463 = vrot.lane.b32.xlu1 %v9178_v42, %s10970_s16 }
 0xabd   : > { %3465 = vrot.lane.b32.xlu0 %v9166_v28, %s10970_s16 }
 0xac4   : > { %v3093_v41 = vpop.xlane.xlu1 %3092 }
 0xac5   : > { %v3104_v43 = vsub.f32 %v9449_v31, %v3093_v41 }
 0xac7   : > { %v3110_v19 = vmul.f32 1.442695, %v3104_v43 }
 0xac8   : > { %v3096_v25 = vpop.xlane.xlu0 %3095  ;;  %v3099_v2 = vpop.xlane.xlu1 %3098 }
 0xac9   : > { %8069 = vpow2.f32 %v3110_v19  ;;  %v3105_v45 = vsub.f32 %v9452_v63, %v3096_v25  ;;  %v3106_v1 = vsub.f32 %v9455_v37, %v3099_v2 }
 0xacb   : > { %v3112_v50 = vmul.f32 1.442695, %v3105_v45  ;;  %v3114_v42 = vmul.f32 1.442695, %v3106_v1 }
 0xacc   : > { %v3102_v10 = vpop.xlane.xlu0 %3101  ;;  %v3406_v20 = vpop.xlane.xlu1 %3405 }
 0xacd   : > { %8071 = vpow2.f32 %v3112_v50  ;;  %v3107_v28 = vsub.f32 %v9460_v0, %v3102_v10  ;;  %v3419_v52 = vsub.f32 %v9463_v48, %v3406_v20 }
 0xace   : > { %8073 = vpow2.f32 %v3114_v42 }
 0xacf   : > { %v3116_v22 = vmul.f32 1.442695, %v3107_v28  ;;  %v3424_v31 = vmul.f32 1.442695, %v3419_v52 }
 0xad0   : > { %v3409_v29 = vpop.xlane.xlu0 %3408  ;;  %v3412_v40 = vpop.xlane.xlu1 %3411 }
 0xad1   : > { %8075 = vpow2.f32 %v3116_v22  ;;  %v3420_v8 = vsub.f32 %v9474_v23, %v3409_v29  ;;  %v3421_v63 = vsub.f32 %v9477_v17, %v3412_v40 }
 0xad2   : > { %8077 = vpow2.f32 %v3424_v31 }
 0xad3   : > { %v3426_v37 = vmul.f32 1.442695, %v3420_v8  ;;  %v3428_v53 = vmul.f32 1.442695, %v3421_v63 }
 0xad4   : > { %v3415_v15 = vpop.xlane.xlu0 %3414  ;;  %v3418_v51 = vpop.xlane.xlu1 %3417 }
 0xad5   : > { %8079 = vpow2.f32 %v3426_v37  ;;  %v3422_v0 = vsub.f32 %v9480_v46, %v3415_v15  ;;  %v3423_v48 = vsub.f32 %v9483_v56, %v3418_v51 }
 0xad6   : > { %v9579_v41 = vpop.eup %8069  ;;  %8081 = vpow2.f32 %v3428_v53 }
 0xad7   : > { %v3430_v43 = vmul.f32 1.442695, %v3422_v0  ;;  %v3121_v19 = vsel %vm792_vm11, %v9579_v41, 0.0  ;;  %v3432_v23 = vmul.f32 1.442695, %v3423_v48 }
 0xad8   : > { %3122 = vadd.xlane.f32.xlu1 %v3121_v19 }
 0xad9   : > { %8083 = vpow2.f32 %v3430_v43 }
 0xada   : > { %v9583_v17 = vpop.eup %8071  ;;  %8085 = vpow2.f32 %v3432_v23 }
 0xadb   : > { %v9585_v25 = vpop.eup %8073  ;;  %v3124_v2 = vsel %vm792_vm11, %v9583_v17, 0.0 }
 0xadc   : > { %3125 = vadd.xlane.f32.xlu0 %v3124_v2  ;;  %v3127_v46 = vsel %vm792_vm11, %v9585_v25, 0.0 }
 0xadd   : > { %3128 = vadd.xlane.f32.xlu1 %v3127_v46 }
 0xade   : > { %v9591_v56 = vpop.eup %8075 }
 0xadf   : > { %v9593_v45 = vpop.eup %8077  ;;  %v3130_v1 = vsel %vm805_vm6, %v9591_v56, 0.0 }
 0xae0   : > { %v3434_v50 = vsel %vm792_vm11, %v9593_v45, 0.0 }
 0xae1   : > { %3435 = vadd.xlane.f32.xlu0 %v3434_v50  ;;  %3131 = vadd.xlane.f32.xlu1 %v3130_v1 }
 0xae2   : > { %v9599_v42 = vpop.eup %8079 }
 0xae3   : > { %v9601_v10 = vpop.eup %8081  ;;  %v3437_v20 = vsel %vm792_vm11, %v9599_v42, 0.0 }
 0xae4   : > { %v3440_v28 = vsel %vm792_vm11, %v9601_v10, 0.0 }
 0xae5   : > { %3441 = vadd.xlane.f32.xlu0 %v3440_v28  ;;  %3438 = vadd.xlane.f32.xlu1 %v3437_v20 }
 0xae6   : > { %v9607_v52 = vpop.eup %8083 }
 0xae7   : > { %v3443_v22 = vsel %vm792_vm11, %v9607_v52, 0.0  ;;  %v9611_v31 = vpop.eup %8085 }
 0xae8   : > { %v3446_v29 = vsel %vm805_vm6, %v9611_v31, 0.0 }
 0xae9   : > { %3444 = vadd.xlane.f32.xlu1 %v3443_v22 }
 0xaed   : > { %3447 = vadd.xlane.f32.xlu1 %v3446_v29 }
 0xafb   : > { %3459 = vrot.lane.b32.xlu0 %v9170_v30, %s10970_s16 }
 0xafe   : > { %3461 = vrot.lane.b32.xlu1 %v9184_v5, %s10970_s16 }
 0xb08   : > { %v2488_v40 = vpop.xlane.xlu0 %2487 }
 0xb09   : > { %8087 = vrcp.f32 %v2488_v40 }
 0xb0c   : > { %v2491_v8 = vpop.xlane.xlu1 %2490 }
 0xb0d   : > { %8089 = vrcp.f32 %v2491_v8 }
 0xb10   : > { %v2494_v63 = vpop.xlane.xlu0 %2493 }
 0xb11   : > { %8091 = vrcp.f32 %v2494_v63 }
 0xb14   : > { %v2497_v37 = vpop.xlane.xlu1 %2496 }
 0xb15   : > { %8093 = vrcp.f32 %v2497_v37 }
 0xb16   : > { %v8088_v53 = vpop.eup %8087 }
 0xb17   : > { %v2506_v15 = vmul.f32 %v8088_v53, %v9512_v44 }
 0xb18   : > { %v2500_v51 = vpop.xlane.xlu0 %2499 }
 0xb19   : > { %8095 = vrcp.f32 %v2500_v51  ;;  %7345 = vmatmul.mubr.msk.f32.vlgmr.msra.gmra.mxu1 %vm792_vm11, %v2506_v15 }
 0xb1a   : > { %v8090_v0 = vpop.eup %8089  ;;  %7385 = vmatpush3.msk.msra.mxu1 %vm878_vm5, %v9499_v59  ;;  %7347 = vmatprep.mubr.msk.f32.mxu1 %vm8275_vm2, %v8274_v3 }
 0xb1b   : > { %7386 = vmatprep.subr.mxu1 %v8274_v3  ;;  %v2507_v30 = vmul.f32 %v8090_v0, %v9517_v55 }
 0xb1c   : > { %7387 = vmatpush3.msra.mxu1 %v9493_v16  ;;  %v2804_v5 = vpop.xlane.xlu0 %2803 }
 0xb1d   : > { %7388 = vmatprep.subr.mxu1 %v8274_v3  ;;  %8097 = vrcp.f32 %v2804_v5  ;;  %7348 = vmatmul.mubr.msk.f32.gmra.mxu1 %vm792_vm11, %v2507_v30 }
 0xb1e   : > { %v8092_v44 = vpop.eup %8091  ;;  %7389 = vmatpush3.msra.mxu1 %v9360_v60  ;;  %7350 = vmatprep.mubr.msk.f32.mxu1 %vm8275_vm2, %v8274_v3 }
 0xb1f   : > { %7390 = vmatprep.subr.mxu1 %v8274_v3  ;;  %v2508_v59 = vmul.f32 %v8092_v44, %v9522_v61 }
 0xb20   : > { %7391 = vmatpush3.msra.mxu1 %v9495_v58  ;;  %v2807_v55 = vpop.xlane.xlu1 %2806 }
 0xb21   : > { %7392 = vmatprep.subr.mxu1 %v8274_v3  ;;  %8099 = vrcp.f32 %v2807_v55  ;;  %7351 = vmatmul.mubr.msk.f32.gmra.mxu1 %vm792_vm11, %v2508_v59 }
 0xb22   : > { %v8094_v16 = vpop.eup %8093  ;;  %7393 = vmatpush3.msra.mxu1 %v9497_v35  ;;  %7353 = vmatprep.mubr.msk.f32.mxu1 %vm8275_vm2, %v8274_v3 }
 0xb23   : > { %v2509_v60 = vmul.f32 %v8094_v16, %v9527_v9  ;;  %7434 = vmatprep.subr.mxu1 %v8274_v3 }
 0xb24   : > { %v2810_v48 = vpop.xlane.xlu0 %2809 }
 0xb25   : > { %8101 = vrcp.f32 %v2810_v48  ;;  %7354 = vmatmul.mubr.msk.f32.gmra.mxu1 %vm792_vm11, %v2509_v60 }
 0xb26   : > { %v8096_v58 = vpop.eup %8095  ;;  %7356 = vmatprep.mubr.msk.f32.mxu1 %vm8275_vm2, %v8274_v3 }
 0xb27   : > { %v2510_v61 = vmul.f32 %v8096_v58, %v9532_v38 }
 0xb28   : > { %v2813_v43 = vpop.xlane.xlu1 %2812 }
 0xb29   : > { %8103 = vrcp.f32 %v2813_v43  ;;  %7357 = vmatmul.mubr.msk.f32.gmra.mxu1 %vm792_vm11, %v2510_v61 }
 0xb2a   : > { %v8098_v35 = vpop.eup %8097  ;;  %7394 = vmatprep.mubr.msk.f32.mxu1 %vm8275_vm2, %v8274_v3 }
 0xb2b   : > { %v2822_v9 = vmul.f32 %v8098_v35, %v9537_v33 }
 0xb2c   : > { %v2816_v19 = vpop.xlane.xlu1 %2815 }
 0xb2d   : > { %8105 = vrcp.f32 %v2816_v19  ;;  %7395 = vmatmul.mubr.msk.f32.vlgmr.msra.gmra.mxu1 %vm792_vm11, %v2822_v9 }
 0xb2e   : > { %v8100_v23 = vpop.eup %8099  ;;  %7435 = vmatpush3.msk.msra.mxu1 %vm878_vm5, %v9503_v34  ;;  %7397 = vmatprep.mubr.msk.f32.mxu1 %vm8275_vm2, %v8274_v3 }
 0xb2f   : > { %7436 = vmatprep.subr.mxu1 %v8274_v3  ;;  %v2823_v38 = vmul.f32 %v8100_v23, %v9542_v7 }
 0xb30   : > { %7437 = vmatpush3.msra.mxu1 %v9501_v24  ;;  %v3120_v2 = vpop.xlane.xlu0 %3119 }
 0xb31   : > { %8107 = vrcp.f32 %v3120_v2  ;;  %7438 = vmatprep.subr.mxu1 %v8274_v3  ;;  %7398 = vmatmul.mubr.msk.f32.gmra.mxu1 %vm792_vm11, %v2823_v38 }
 0xb32   : > { %v8102_v33 = vpop.eup %8101  ;;  %7439 = vmatpush3.msra.mxu1 %v9367_v62  ;;  %7400 = vmatprep.mubr.msk.f32.mxu1 %vm8275_vm2, %v8274_v3 }
 0xb33   : > { %7440 = vmatprep.subr.mxu1 %v8274_v3  ;;  %v2824_v34 = vmul.f32 %v8102_v33, %v9546_v49 }
 0xb34   : > { %7441 = vmatpush3.msra.mxu1 %v9505_v13 }
 0xb35   : > { %7442 = vmatprep.subr.mxu1 %v8274_v3  ;;  %7401 = vmatmul.mubr.msk.f32.gmra.mxu1 %vm792_vm11, %v2824_v34 }
 0xb36   : > { %v8104_v24 = vpop.eup %8103  ;;  %7443 = vmatpush3.msra.mxu1 %v9568_v14  ;;  %7403 = vmatprep.mubr.msk.f32.mxu1 %vm8275_vm2, %v8274_v3 }
 0xb37   : > { %v2825_v62 = vmul.f32 %v8104_v24, %v9550_v6  ;;  %7484 = vmatprep.subr.mxu1 %v8274_v3  ;;  %v3466_v6 = vpop.permute.xlu0 %3465 }
 0xb39   : > { %7404 = vmatmul.mubr.msk.f32.gmra.mxu1 %vm792_vm11, %v2825_v62 }
 0xb3a   : > { %v8106_v7 = vpop.eup %8105  ;;  %7406 = vmatprep.mubr.msk.f32.mxu1 %vm8275_vm2, %v8274_v3 }
 0xb3b   : > { %v2826_v13 = vmul.f32 %v8106_v7, %v9554_v47  ;;  %v3464_v47 = vpop.permute.xlu1 %3463 }
 0xb3d   : > { %7407 = vmatmul.mubr.msk.f32.gmra.mxu1 %vm792_vm11, %v2826_v13 }
 0xb3e   : > { %v8108_v49 = vpop.eup %8107  ;;  %7444 = vmatprep.mubr.msk.f32.mxu1 %vm8275_vm2, %v8274_v3 }
 0xb3f   : > { %v3138_v14 = vmul.f32 %v8108_v49, %v9558_v26 }
 0xb41   : > { %7445 = vmatmul.mubr.msk.f32.vlgmr.msra.gmra.mxu1 %vm792_vm11, %v3138_v14 }
 0xb42   : > { %7485 = vmatpush3.msk.msra.mxu1 %vm878_vm5, %v9566_v32  ;;  %7447 = vmatprep.mubr.msk.f32.mxu1 %vm8275_vm2, %v8274_v3 }
 0xb43   : > { %7486 = vmatprep.subr.mxu1 %v8274_v3 }
 0xb44   : > { %7487 = vmatpush3.msra.mxu1 %v3466_v6  ;;  %v6452_v6 = vld [vmem:[%s10947_s5 + $0x38] sm:$0xff] }
 0xb45   : > { %7488 = vmatprep.subr.mxu1 %v8274_v3  ;;  %7510 = vmatpush3.msra.mxu0 %v6452_v6  ;;  %v6523_v6 = vld [vmem:[%s10944_s2 + $0x6] ss:$0 sm:$0xff] }
 0xb46   : > { %7489 = vmatpush3.msra.mxu1 %v3464_v47  ;;  %7511 = vmatprep.subr.mxu0 %v8274_v3  ;;  %v6451_v47 = vld [vmem:[%s10947_s5 + $0x30] sm:$0xff] }
 0xb47   : > { %7490 = vmatprep.subr.mxu1 %v8274_v3  ;;  %7512 = vmatpush3.msra.mxu0 %v6451_v47 }
 0xb48   : > { %7513 = vmatprep.subr.mxu0 %v8274_v3 }
 0xb61   : > { %v3123_v46 = vpop.xlane.xlu1 %3122 }
 0xb62   : > { %8109 = vrcp.f32 %v3123_v46  ;;  %v6450_v46 = vld [vmem:[%s10947_s5 + $0x28] sm:$0xff] }
 0xb63   : > { %7514 = vmatpush3.msra.mxu0 %v6450_v46 }
 0xb64   : > { %7515 = vmatprep.subr.mxu0 %v8274_v3 }
 0xb65   : > { %v3126_v26 = vpop.xlane.xlu0 %3125 }
 0xb66   : > { %8111 = vrcp.f32 %v3126_v26  ;;  %v3129_v1 = vpop.xlane.xlu1 %3128 }
 0xb67   : > { %8113 = vrcp.f32 %v3129_v1 }
 0xb6a   : > { %v3132_v32 = vpop.xlane.xlu1 %3131  ;;  %v3436_v50 = vpop.xlane.xlu0 %3435 }
 0xb6b   : > { %8115 = vrcp.f32 %v3132_v32 }
 0xb6c   : > { %8117 = vrcp.f32 %v3436_v50  ;;  %v6449_v50 = vld [vmem:[%s10947_s5 + $0x20] sm:$0xff] }
 0xb6d   : > { %7516 = vmatpush3.msra.mxu0 %v6449_v50 }
 0xb6e   : > { %v3439_v20 = vpop.xlane.xlu1 %3438  ;;  %v3442_v37 = vpop.xlane.xlu0 %3441  ;;  %7555 = vmatprep.subr.mxu0 %v8274_v3 }
 0xb6f   : > { %v8110_v28 = vpop.eup %8109  ;;  %8119 = vrcp.f32 %v3439_v20 }
 0xb70   : > { %v3139_v22 = vmul.f32 %v8110_v28, %v9579_v41  ;;  %8121 = vrcp.f32 %v3442_v37 }
 0xb72   : > { %v3445_v29 = vpop.xlane.xlu1 %3444  ;;  %7448 = vmatmul.mubr.msk.f32.gmra.mxu1 %vm792_vm11, %v3139_v22 }
 0xb73   : > { %v8112_v40 = vpop.eup %8111  ;;  %7450 = vmatprep.mubr.msk.f32.mxu1 %vm8275_vm2, %v8274_v3  ;;  %8123 = vrcp.f32 %v3445_v29 }
 0xb74   : > { %v3140_v8 = vmul.f32 %v8112_v40, %v9583_v17  ;;  %v8114_v63 = vpop.eup %8113  ;;  %v3460_v17 = vpop.permute.xlu0 %3459 }
 0xb75   : > { %v3141_v41 = vmul.f32 %v8114_v63, %v9585_v25 }
 0xb76   : > { %v3448_v53 = vpop.xlane.xlu1 %3447  ;;  %7451 = vmatmul.mubr.msk.f32.gmra.mxu1 %vm792_vm11, %v3140_v8 }
 0xb77   : > { %7453 = vmatprep.mubr.msk.f32.mxu1 %vm8275_vm2, %v8274_v3  ;;  %8125 = vrcp.f32 %v3448_v53 }
 0xb78   : > { %v8116_v15 = vpop.eup %8115 }
 0xb79   : > { %v3142_v0 = vmul.f32 %v8116_v15, %v9591_v56  ;;  %v8118_v30 = vpop.eup %8117 }
 0xb7a   : > { %v3462_v51 = vpop.permute.xlu1 %3461  ;;  %7454 = vmatmul.mubr.msk.f32.gmra.mxu1 %vm792_vm11, %v3141_v41  ;;  %v3454_v25 = vmul.f32 %v8118_v30, %v9593_v45 }
 0xb7b   : > { %7491 = vmatpush3.msra.mxu1 %v3462_v51  ;;  %7456 = vmatprep.mubr.msk.f32.mxu1 %vm8275_vm2, %v8274_v3 }
 0xb7c   : > { %7492 = vmatprep.subr.mxu1 %v8274_v3  ;;  %v8120_v5 = vpop.eup %8119 }
 0xb7d   : > { %7493 = vmatpush3.msra.mxu1 %v3460_v17  ;;  %v3455_v56 = vmul.f32 %v8120_v5, %v9599_v42  ;;  %v8122_v44 = vpop.eup %8121 }
 0xb7e   : > { %7457 = vmatmul.mubr.msk.f32.gmra.mxu1 %vm792_vm11, %v3142_v0  ;;  %7532 = vmatprep.subr.mxu1 %v8274_v3  ;;  %v3456_v59 = vmul.f32 %v8122_v44, %v9601_v10 }
 0xb7f   : > { %7494 = vmatprep.mubr.msk.f32.mxu1 %vm8275_vm2, %v8274_v3 }
 0xb80   : > { %v8124_v55 = vpop.eup %8123 }
 0xb81   : > { %v3457_v45 = vmul.f32 %v8124_v55, %v9607_v52 }
 0xb82   : > { %7495 = vmatmul.mubr.msk.f32.vlgmr.msra.gmra.mxu1 %vm792_vm11, %v3454_v25 }
 0xb83   : > { %7497 = vmatprep.mubr.msk.f32.mxu1 %vm8275_vm2, %v8274_v3 }
 0xb84   : > { %v8126_v16 = vpop.eup %8125 }
 0xb85   : > { %v3458_v42 = vmul.f32 %v8126_v16, %v9611_v31 }
 0xb86   : > { %7498 = vmatmul.mubr.msk.f32.gmra.mxu1 %vm792_vm11, %v3455_v56 }
 0xb87   : > { %7500 = vmatprep.mubr.msk.f32.mxu1 %vm8275_vm2, %v8274_v3 }
 0xb8a   : > { %7501 = vmatmul.mubr.msk.f32.gmra.mxu1 %vm792_vm11, %v3456_v59 }
 0xb8b   : > { %7503 = vmatprep.mubr.msk.f32.mxu1 %vm8275_vm2, %v8274_v3 }
 0xb8e   : > { %7504 = vmatmul.mubr.msk.f32.gmra.mxu1 %vm792_vm11, %v3457_v45 }
 0xb8f   : > { %7506 = vmatprep.mubr.msk.f32.mxu1 %vm8275_vm2, %v8274_v3 }
 0xb92   : > { %7507 = vmatmul.mubr.msk.f32.gmra.mxu1 %vm792_vm11, %v3458_v42 }
 0xb93   : > { %7540 = vmatprep.mubr.msk.f32.mxu1 %vm8275_vm2, %v8274_v3 }
 0xbd9   : > { %v9728_v10 = vpop.f32.mrf.mxu1 }
 0xbdb   : > { %v7346_v60 = vpop.f32.mrf.mxu1 }
 0xbdd   : > { %v9730_v48 = vpop.f32.mrf.mxu1 }
 0xbdf   : > { %v7349_v58 = vpop.f32.mrf.mxu1 }
 0xbe1   : > { %v9732_v52 = vpop.f32.mrf.mxu1 }
 0xbe3   : > { %v7352_v61 = vpop.f32.mrf.mxu1 }
 0xbe5   : > { %v9734_v43 = vpop.f32.mrf.mxu1 }
 0xbe7   : > { %v7355_v35 = vpop.f32.mrf.mxu1 }
 0xbe9   : > { %v9736_v9 = vpop.f32.mrf.mxu1 }
 0xbeb   : > { %v7358_v31 = vpop.f32.mrf.mxu1 }
 0xbed   : > { %v2924_v19 = vpop.f32.mrf.mxu1 }
 0xbee   : > { %3585 = vrot.lane.b32.xlu1 %v2924_v19, %s10971_s12 }
 0xbef   : > { %v7396_v23 = vpop.f32.mrf.mxu1 }
 0xbf1   : > { %v2929_v38 = vpop.f32.mrf.mxu1 }
 0xbf2   : > { %3587 = vrot.lane.b32.xlu0 %v2929_v38, %s10971_s12 }
 0xbf3   : > { %v7399_v2 = vpop.f32.mrf.mxu1 }
 0xbf5   : > { %v2934_v33 = vpop.f32.mrf.mxu1 }
 0xbf6   : > { %3589 = vrot.lane.b32.xlu1 %v2934_v33, %s10971_s12 }
 0xbf7   : > { %v7402_v34 = vpop.f32.mrf.mxu1 }
 0xbf9   : > { %v2939_v24 = vpop.f32.mrf.mxu1 }
 0xbfb   : > { %v7405_v62 = vpop.f32.mrf.mxu1 }
 0xbfd   : > { %v2944_v7 = vpop.f32.mrf.mxu1 }
 0xbff   : > { %v7408_v13 = vpop.f32.mrf.mxu1 }
 0xc01   : > { %v3240_v49 = vpop.f32.mrf.mxu1 }
 0xc02   : > { %3605 = vrot.lane.b32.xlu0 %v3240_v49, %s10972_s30 }
 0xc03   : > { %v7446_v14 = vpop.f32.mrf.mxu1 }
 0xc32   : > { %v3245_v26 = vpop.f32.mrf.mxu1 }
 0xc33   : > { %3607 = vrot.lane.b32.xlu1 %v3245_v26, %s10972_s30 }
 0xc34   : > { %v7449_v1 = vpop.f32.mrf.mxu1 }
 0xc36   : > { %v3250_v32 = vpop.f32.mrf.mxu1 }
 0xc37   : > { %3609 = vrot.lane.b32.xlu0 %v3250_v32, %s10972_s30 }
 0xc38   : > { %v7452_v20 = vpop.f32.mrf.mxu1 }
 0xc3a   : > { %v3255_v28 = vpop.f32.mrf.mxu1 }
 0xc3c   : > { %v7455_v22 = vpop.f32.mrf.mxu1 }
 0xc3e   : > { %v3260_v29 = vpop.f32.mrf.mxu1 }
 0xc40   : > { %v7458_v40 = vpop.f32.mrf.mxu1 }
 0xc42   : > { %v3556_v8 = vpop.f32.mrf.mxu1 }
 0xc43   : > { %3625 = vrot.lane.b32.xlu1 %v3556_v8, %s10973_s28 }
 0xc44   : > { %v7496_v63 = vpop.f32.mrf.mxu1 }
 0xc46   : > { %v3561_v37 = vpop.f32.mrf.mxu1 }
 0xc47   : > { %3611 = vrot.lane.b32.xlu1 %v3255_v28, %s10972_s30  ;;  %3627 = vrot.lane.b32.xlu0 %v3561_v37, %s10973_s28 }
 0xc48   : > { %v7499_v53 = vpop.f32.mrf.mxu1 }
 0xc4a   : > { %v3566_v41 = vpop.f32.mrf.mxu1 }
 0xc4b   : > { %3591 = vrot.lane.b32.xlu0 %v2939_v24, %s10971_s12  ;;  %3629 = vrot.lane.b32.xlu1 %v3566_v41, %s10973_s28 }
 0xc4c   : > { %v7502_v15 = vpop.f32.mrf.mxu1 }
 0xc4e   : > { %v3571_v51 = vpop.f32.mrf.mxu1 }
 0xc4f   : > { %3593 = vrot.lane.b32.xlu1 %v2944_v7, %s10971_s12  ;;  %3631 = vrot.lane.b32.xlu0 %v3571_v51, %s10973_s28 }
 0xc50   : > { %v7505_v17 = vpop.f32.mrf.mxu1 }
 0xc52   : > { %v3576_v0 = vpop.f32.mrf.mxu1 }
 0xc53   : > { %3613 = vrot.lane.b32.xlu0 %v3260_v29, %s10972_s30  ;;  %3633 = vrot.lane.b32.xlu1 %v3576_v0, %s10973_s28 }
 0xc54   : > { %v7508_v30 = vpop.f32.mrf.mxu1 }
 0xc60   : > { %v3586_v25 = vpop.permute.xlu1 %3585 }
 0xc61   : > { %v3640_v55 = vsel %vm671_vm4, %v9728_v10, %v3586_v25 }
 0xc64   : > { %v3588_v5 = vpop.permute.xlu0 %3587 }
 0xc65   : > { %v3641_v58 = vsel %vm671_vm4, %v9730_v48, %v3588_v5 }
 0xc68   : > { %v3590_v56 = vpop.permute.xlu1 %3589 }
 0xc69   : > { %v3642_v19 = vsel %vm671_vm4, %v9732_v52, %v3590_v56 }
 0xc74   : > { %v3606_v44 = vpop.permute.xlu0 %3605 }
 0xc75   : > { %v3645_v45 = vsel %vm1984_vm7, %v3640_v55, %v3606_v44 }
 0xca5   : > { %v3608_v59 = vpop.permute.xlu1 %3607 }
 0xca6   : > { %v3646_v61 = vsel %vm1984_vm7, %v3641_v58, %v3608_v59 }
 0xca9   : > { %v3610_v16 = vpop.permute.xlu0 %3609 }
 0xcaa   : > { %v3647_v23 = vsel %vm1984_vm7, %v3642_v19, %v3610_v16 }
 0xcb5   : > { %v3626_v42 = vpop.permute.xlu1 %3625 }
 0xcb6   : > { %v3650_v60 = vsel %vm1990_vm8, %v3645_v45, %v3626_v42 }
 0xcb7   : > { %7518 = vmatmul.mubr.msk.f32.vlgmr.msra.gmra.mxu0 %vm550_vm3, %v3650_v60 }
 0xcb8   : > { %7520 = vmatprep.mubr.msk.f32.mxu0 %vm8275_vm2, %v8274_v3 }
 0xcb9   : > { %v3628_v35 = vpop.permute.xlu0 %3627  ;;  %v3612_v31 = vpop.permute.xlu1 %3611 }
 0xcba   : > { %v3651_v10 = vsel %vm1990_vm8, %v3646_v61, %v3628_v35 }
 0xcbb   : > { %7521 = vmatmul.mubr.msk.f32.gmra.mxu0 %vm550_vm3, %v3651_v10 }
 0xcbc   : > { %7523 = vmatprep.mubr.msk.f32.mxu0 %vm8275_vm2, %v8274_v3 }
 0xcbd   : > { %v3592_v48 = vpop.permute.xlu0 %3591  ;;  %v3630_v38 = vpop.permute.xlu1 %3629 }
 0xcbe   : > { %v3643_v2 = vsel %vm671_vm4, %v9734_v43, %v3592_v48  ;;  %v3652_v33 = vsel %vm1990_vm8, %v3647_v23, %v3630_v38 }
 0xcbf   : > { %7524 = vmatmul.mubr.msk.f32.gmra.mxu0 %vm550_vm3, %v3652_v33  ;;  %v3648_v52 = vsel %vm1984_vm7, %v3643_v2, %v3612_v31 }
 0xcc0   : > { %7526 = vmatprep.mubr.msk.f32.mxu0 %vm8275_vm2, %v8274_v3 }
 0xcc1   : > { %v3632_v34 = vpop.permute.xlu0 %3631  ;;  %v3594_v24 = vpop.permute.xlu1 %3593 }
 0xcc2   : > { %v3653_v62 = vsel %vm1990_vm8, %v3648_v52, %v3632_v34  ;;  %v3644_v43 = vsel %vm671_vm4, %v9736_v9, %v3594_v24  ;;  %v3855_v24 = vld [vmem:[%s10948_s6 + $0x18] sm:$0xff] }
 0xcc3   : > { %7527 = vmatmul.mubr.msk.f32.gmra.mxu0 %vm550_vm3, %v3653_v62  ;;  %7533 = vmatpush3.msra.mxu1 %v3855_v24  ;;  %v3854_v62 = vld [vmem:[%s10948_s6 + $0x10] sm:$0xff]  ;;  %v3994_v24 = vld [vmem:[%s10950_s8 + $0x18] sm:$0xff] }
 0xcc4   : > { %7529 = vmatprep.mubr.msk.f32.mxu0 %vm8275_vm2, %v8274_v3  ;;  %7534 = vmatprep.subr.mxu1 %v8274_v3 }
 0xcc5   : > { %v3614_v7 = vpop.permute.xlu0 %3613  ;;  %v3634_v13 = vpop.permute.xlu1 %3633  ;;  %7535 = vmatpush3.msra.mxu1 %v3854_v62  ;;  %v3993_v62 = vld [vmem:[%s10950_s8 + $0x10] sm:$0xff] }
 0xcc6   : > { %v3649_v49 = vsel %vm1984_vm7, %v3644_v43, %v3614_v7  ;;  %v3853_v43 = vld [vmem:[%s10948_s6 + $0x8] sm:$0xff]  ;;  %7536 = vmatprep.subr.mxu1 %v8274_v3  ;;  %v3852_v7 = vld [vmem:[%s10948_s6] sm:$0xff] }
 0xcc7   : > { %v3654_v14 = vsel %vm1990_vm8, %v3649_v49, %v3634_v13  ;;  %7537 = vmatpush3.msra.mxu1 %v3853_v43  ;;  %v4006_v13 = vld [vmem:[%s10950_s8 + $0x78] sm:$0xff]  ;;  %v4005_v49 = vld [vmem:[%s10950_s8 + $0x70] sm:$0xff]  ;;  %v3992_v43 = vld [vmem:[%s10950_s8 + $0x8] sm:$0xff] }
 0xcc8   : > { %7530 = vmatmul.mubr.msk.f32.gmra.mxu0 %vm550_vm3, %v3654_v14  ;;  %7538 = vmatprep.subr.mxu1 %v8274_v3  ;;  %v4004_v14 = vld [vmem:[%s10950_s8 + $0x68] sm:$0xff] }
 0xcc9   : > { %7587 = vmatprep.mubr.msk.f32.mxu0 %vm8275_vm2, %v8274_v3  ;;  %7539 = vmatpush3.msra.mxu1 %v3852_v7  ;;  %v3991_v7 = vld [vmem:[%s10950_s8] sm:$0xff] }
 0xcca   : > { %7602 = vmatprep.subr.mxu1 %v8274_v3  ;;  %7556 = vmatpush3.msra.mxu0 %v4006_v13  ;;  %v6531_v13 = vld [vmem:[%s10949_s7] ss:$0 sm:$0xff] }
 0xccb   : > { %7557 = vmatprep.subr.mxu0 %v8274_v3 }
 0xccc   : > { %7558 = vmatpush3.msra.mxu0 %v4005_v49 }
 0xccd   : > { %7559 = vmatprep.subr.mxu0 %v8274_v3 }
 0xcce   : > { %7560 = vmatpush3.msra.mxu0 %v4004_v14 }
 0xccf   : > { %7561 = vmatprep.subr.mxu0 %v8274_v3 }
 0xd77   : > { %v3740_v47 = vpop.f32.mrf.mxu0 }
 0xd78   : > { %v3741_v46 = vadd.f32 %v6523_v6, %v3740_v47 }
 0xd79   : > { %v7519_v26 = vpop.f32.mrf.mxu0 }
 0xd7a   : > { %v9808_v9 = vadd.f32 %v3741_v46, %v9075_v39 }
 0xd7b   : > { %v3745_v1 = vpop.f32.mrf.mxu0 }
 0xd7c   : > { %v3746_v32 = vadd.f32 %v6523_v6, %v3745_v1  ;;  %v3769_v50 = vsel %vm550_vm3, %v9808_v9, 0.0 }
 0xd7d   : > { %3770 = vadd.xlane.f32.xlu0 %v3769_v50  ;;  %v7522_v20 = vpop.f32.mrf.mxu0 }
 0xd7e   : > { %v9813_v28 = vadd.f32 %v3746_v32, %v9080_v54 }
 0xd7f   : > { %v3750_v22 = vpop.f32.mrf.mxu0 }
 0xd80   : > { %v3751_v29 = vadd.f32 %v6523_v6, %v3750_v22  ;;  %v3772_v40 = vsel %vm550_vm3, %v9813_v28, 0.0 }
 0xd81   : > { %3773 = vadd.xlane.f32.xlu1 %v3772_v40  ;;  %v7525_v8 = vpop.f32.mrf.mxu0 }
 0xd82   : > { %v9818_v39 = vadd.f32 %v3751_v29, %v9085_v12 }
 0xd83   : > { %v3755_v63 = vpop.f32.mrf.mxu0 }
 0xd84   : > { %v3756_v37 = vadd.f32 %v6523_v6, %v3755_v63  ;;  %v3775_v53 = vsel %vm550_vm3, %v9818_v39, 0.0 }
 0xd85   : > { %3776 = vadd.xlane.f32.xlu0 %v3775_v53  ;;  %v7528_v41 = vpop.f32.mrf.mxu0 }
 0xd86   : > { %v9823_v54 = vadd.f32 %v3756_v37, %v9090_v11  ;;  %v6529_v41 = vld [vmem:[%s10944_s2 + $0x7] ss:$0 sm:$0xff] }
 0xd88   : > { %v3760_v15 = vpop.f32.mrf.mxu0  ;;  %v3778_v51 = vsel %vm550_vm3, %v9823_v54, 0.0 }
 0xd89   : > { %v3761_v17 = vadd.f32 %v6523_v6, %v3760_v15  ;;  %3779 = vadd.xlane.f32.xlu0 %v3778_v51  ;;  %v4003_v6 = vld [vmem:[%s10950_s8 + $0x60] sm:$0xff] }
 0xd8a   : > { %v7531_v0 = vpop.f32.mrf.mxu0  ;;  %7562 = vmatpush3.msra.mxu0 %v4003_v6 }
 0xd8b   : > { %v9828_v12 = vadd.f32 %v3761_v17, %v9097_v21  ;;  %7563 = vmatprep.subr.mxu0 %v8274_v3  ;;  %v6530_v0 = vld [vmem:[%s10944_s2 + $0x8] ss:$0 sm:$0xff] }
 0xd8d   : > { %v3781_v30 = vsel %vm2128_vm9, %v9828_v12, 0.0 }
 0xd8e   : > { %3782 = vadd.xlane.f32.xlu1 %v3781_v30 }
 0xe06   : > { %v3771_v25 = vpop.xlane.xlu0 %3770 }
 0xe07   : > { %v3784_v5 = vmul.f32 0.03125, %v3771_v25 }
 0xe09   : > { %v9833_v56 = vsub.f32 %v9808_v9, %v3784_v5 }
 0xe0a   : > { %v3774_v11 = vpop.xlane.xlu1 %3773 }
 0xe0b   : > { %v3785_v44 = vmul.f32 0.03125, %v3774_v11  ;;  %v3794_v59 = vmul.f32 %v9833_v56, %v9833_v56 }
 0xe0d   : > { %v9838_v55 = vsub.f32 %v9813_v28, %v3785_v44  ;;  %v3799_v21 = vsel %vm550_vm3, %v3794_v59, 0.0 }
 0xe0e   : > { %v3777_v45 = vpop.xlane.xlu0 %3776  ;;  %3800 = vadd.xlane.f32.xlu0 %v3799_v21 }
 0xe0f   : > { %v3786_v16 = vmul.f32 0.03125, %v3777_v45  ;;  %v3795_v42 = vmul.f32 %v9838_v55, %v9838_v55 }
 0xe11   : > { %v9844_v60 = vsub.f32 %v9818_v39, %v3786_v16  ;;  %v3802_v58 = vsel %vm550_vm3, %v3795_v42, 0.0 }
 0xe12   : > { %v3780_v61 = vpop.xlane.xlu0 %3779  ;;  %3803 = vadd.xlane.f32.xlu1 %v3802_v58 }
 0xe13   : > { %v3787_v35 = vmul.f32 0.03125, %v3780_v61  ;;  %v3796_v31 = vmul.f32 %v9844_v60, %v9844_v60 }
 0xe15   : > { %v9850_v10 = vsub.f32 %v9823_v54, %v3787_v35  ;;  %v3805_v19 = vsel %vm550_vm3, %v3796_v31, 0.0 }
 0xe16   : > { %3806 = vadd.xlane.f32.xlu0 %v3805_v19 }
 0xe17   : > { %v3783_v23 = vpop.xlane.xlu1 %3782  ;;  %v3797_v48 = vmul.f32 %v9850_v10, %v9850_v10 }
 0xe18   : > { %v3788_v38 = vmul.f32 0.03125, %v3783_v23  ;;  %v4001_v23 = vld [vmem:[%s10950_s8 + $0x50] sm:$0xff] }
 0xe19   : > { %v3808_v2 = vsel %vm550_vm3, %v3797_v48, 0.0  ;;  %v4000_v48 = vld [vmem:[%s10950_s8 + $0x48] sm:$0xff] }
 0xe1a   : > { %v9857_v33 = vsub.f32 %v9828_v12, %v3788_v38  ;;  %3809 = vadd.xlane.f32.xlu1 %v3808_v2  ;;  %v3999_v38 = vld [vmem:[%s10950_s8 + $0x40] sm:$0xff]  ;;  %v3998_v2 = vld [vmem:[%s10950_s8 + $0x38] sm:$0xff] }
 0xe1c   : > { %v3798_v34 = vmul.f32 %v9857_v33, %v9857_v33 }
 0xe1e   : > { %v3811_v52 = vsel %vm2128_vm9, %v3798_v34, 0.0  ;;  %v3996_v34 = vld [vmem:[%s10950_s8 + $0x28] sm:$0xff] }
 0xe1f   : > { %3812 = vadd.xlane.f32.xlu0 %v3811_v52  ;;  %v3995_v52 = vld [vmem:[%s10950_s8 + $0x20] sm:$0xff] }
 0xe97   : > { %v3801_v47 = vpop.xlane.xlu0 %3800 }
 0xe98   : > { %v3814_v46 = vmul.f32 0.03125, %v3801_v47 }
 0xe9a   : > { %v3819_v26 = vadd.f32 1e-05, %v3814_v46 }
 0xe9b   : > { %v3804_v1 = vpop.xlane.xlu1 %3803 }
 0xe9c   : > { %8127 = vrsqrt.f32 %v3819_v26  ;;  %v3815_v32 = vmul.f32 0.03125, %v3804_v1 }
 0xe9e   : > { %v3820_v50 = vadd.f32 1e-05, %v3815_v32 }
 0xe9f   : > { %v3807_v20 = vpop.xlane.xlu0 %3806 }
 0xea0   : > { %8129 = vrsqrt.f32 %v3820_v50  ;;  %v3816_v22 = vmul.f32 0.03125, %v3807_v20 }
 0xea2   : > { %v3821_v29 = vadd.f32 1e-05, %v3816_v22 }
 0xea3   : > { %v3810_v40 = vpop.xlane.xlu1 %3809 }
 0xea4   : > { %8131 = vrsqrt.f32 %v3821_v29  ;;  %v3817_v8 = vmul.f32 0.03125, %v3810_v40 }
 0xea6   : > { %v3822_v63 = vadd.f32 1e-05, %v3817_v8 }
 0xea8   : > { %8133 = vrsqrt.f32 %v3822_v63  ;;  %v3813_v37 = vpop.xlane.xlu0 %3812 }
 0xea9   : > { %v8128_v53 = vpop.eup %8127  ;;  %v3818_v15 = vmul.f32 0.03125, %v3813_v37 }
 0xeaa   : > { %v3829_v51 = vmul.f32 %v8128_v53, %v9833_v56 }
 0xeab   : > { %v3823_v17 = vadd.f32 1e-05, %v3818_v15 }
 0xeac   : > { %v3838_v30 = vmul.f32 %v6529_v41, %v3829_v51 }
 0xead   : > { %v8130_v25 = vpop.eup %8129  ;;  %8135 = vrsqrt.f32 %v3823_v17 }
 0xeae   : > { %v3847_v5 = vadd.f32 %v6530_v0, %v3838_v30  ;;  %v3830_v11 = vmul.f32 %v8130_v25, %v9838_v55 }
 0xeb0   : > { %7541 = vmatmul.mubr.msk.f32.vlgmr.msra.gmra.mxu1 %vm550_vm3, %v3847_v5  ;;  %v3839_v44 = vmul.f32 %v6529_v41, %v3830_v11 }
 0xeb1   : > { %v8132_v59 = vpop.eup %8131  ;;  %7543 = vmatprep.mubr.msk.f32.mxu1 %vm8275_vm2, %v8274_v3 }
 0xeb2   : > { %v3848_v21 = vadd.f32 %v6530_v0, %v3839_v44  ;;  %v3831_v56 = vmul.f32 %v8132_v59, %v9844_v60 }
 0xeb4   : > { %7544 = vmatmul.mubr.msk.f32.gmra.mxu1 %vm550_vm3, %v3848_v21  ;;  %v3840_v45 = vmul.f32 %v6529_v41, %v3831_v56 }
 0xeb5   : > { %v8134_v16 = vpop.eup %8133  ;;  %7546 = vmatprep.mubr.msk.f32.mxu1 %vm8275_vm2, %v8274_v3 }
 0xeb6   : > { %v3849_v42 = vadd.f32 %v6530_v0, %v3840_v45  ;;  %v3832_v55 = vmul.f32 %v8134_v16, %v9850_v10  ;;  %v4002_v10 = vld [vmem:[%s10950_s8 + $0x58] sm:$0xff] }
 0xeb7   : > { %7564 = vmatpush3.msra.mxu0 %v4002_v10  ;;  %v6537_v10 = vld [vmem:[%s10944_s2 + $0x9] ss:$0 sm:$0xff] }
 0xeb8   : > { %7547 = vmatmul.mubr.msk.f32.gmra.mxu1 %vm550_vm3, %v3849_v42  ;;  %v3841_v58 = vmul.f32 %v6529_v41, %v3832_v55  ;;  %7565 = vmatprep.subr.mxu0 %v8274_v3 }
 0xeb9   : > { %7549 = vmatprep.mubr.msk.f32.mxu1 %vm8275_vm2, %v8274_v3  ;;  %7566 = vmatpush3.msra.mxu0 %v4001_v23 }
 0xeba   : > { %v8136_v61 = vpop.eup %8135  ;;  %v3850_v35 = vadd.f32 %v6530_v0, %v3841_v58  ;;  %7567 = vmatprep.subr.mxu0 %v8274_v3 }
 0xebb   : > { %v3833_v60 = vmul.f32 %v8136_v61, %v9857_v33  ;;  %7568 = vmatpush3.msra.mxu0 %v4000_v48  ;;  %v3997_v33 = vld [vmem:[%s10950_s8 + $0x30] sm:$0xff] }
 0xebc   : > { %7550 = vmatmul.mubr.msk.f32.gmra.mxu1 %vm550_vm3, %v3850_v35  ;;  %7569 = vmatprep.subr.mxu0 %v8274_v3 }
 0xebd   : > { %7552 = vmatprep.mubr.msk.f32.mxu1 %vm8275_vm2, %v8274_v3  ;;  %v3842_v31 = vmul.f32 %v6529_v41, %v3833_v60  ;;  %7570 = vmatpush3.msra.mxu0 %v3999_v38 }
 0xebe   : > { %7571 = vmatprep.subr.mxu0 %v8274_v3 }
 0xebf   : > { %v3851_v19 = vadd.f32 %v6530_v0, %v3842_v31  ;;  %7572 = vmatpush3.msra.mxu0 %v3998_v2 }
 0xec0   : > { %7573 = vmatprep.subr.mxu0 %v8274_v3 }
 0xec1   : > { %7553 = vmatmul.mubr.msk.f32.gmra.mxu1 %vm550_vm3, %v3851_v19  ;;  %7574 = vmatpush3.msra.mxu0 %v3997_v33 }
 0xec2   : > { %7610 = vmatprep.mubr.msk.f32.mxu1 %vm8275_vm2, %v8274_v3  ;;  %7575 = vmatprep.subr.mxu0 %v8274_v3 }
 0xec3   : > { %7576 = vmatpush3.msra.mxu0 %v3996_v34 }
 0xec4   : > { %7577 = vmatprep.subr.mxu0 %v8274_v3 }
 0xec5   : > { %7578 = vmatpush3.msra.mxu0 %v3995_v52 }
 0xec6   : > { %7579 = vmatprep.subr.mxu0 %v8274_v3 }
 0xec7   : > { %7580 = vmatpush3.msra.mxu0 %v3994_v24 }
 0xec8   : > { %7581 = vmatprep.subr.mxu0 %v8274_v3 }
 0xec9   : > { %7582 = vmatpush3.msra.mxu0 %v3993_v62 }
 0xeca   : > { %7583 = vmatprep.subr.mxu0 %v8274_v3 }
 0xecb   : > { %7584 = vmatpush3.msra.mxu0 %v3992_v43 }
 0xecc   : > { %7585 = vmatprep.subr.mxu0 %v8274_v3 }
 0xecd   : > { %7586 = vmatpush3.msra.mxu0 %v3991_v7 }
 0xece   : > { %7650 = vmatprep.subr.mxu0 %v8274_v3 }
 0xf70   : > { %v3942_v49 = vpop.f32.mrf.mxu1 }
 0xf71   : > { %v3943_v14 = vadd.f32 %v6531_v13, %v3942_v49 }
 0xf72   : > { %v7542_v6 = vpop.f32.mrf.mxu1 }
 0xf73   : > { %v3971_v47 = vmul.f32 0.70710677, %v3943_v14  ;;  %v3966_v51 = vmul.f32 0.5, %v3943_v14 }
 0xf74   : > { %v3947_v46 = vpop.f32.mrf.mxu1 }
 0xf75   : > { %8137 = verf.f32 %v3971_v47  ;;  %v3948_v26 = vadd.f32 %v6531_v13, %v3947_v46 }
 0xf76   : > { %v7545_v1 = vpop.f32.mrf.mxu1 }
 0xf77   : > { %v3972_v32 = vmul.f32 0.70710677, %v3948_v26  ;;  %v3967_v11 = vmul.f32 0.5, %v3948_v26 }
 0xf78   : > { %v3952_v50 = vpop.f32.mrf.mxu1 }
 0xf79   : > { %8139 = verf.f32 %v3972_v32  ;;  %v3953_v20 = vadd.f32 %v6531_v13, %v3952_v50 }
 0xf7a   : > { %v7548_v22 = vpop.f32.mrf.mxu1 }
 0xf7b   : > { %v3973_v29 = vmul.f32 0.70710677, %v3953_v20  ;;  %v3968_v56 = vmul.f32 0.5, %v3953_v20 }
 0xf7c   : > { %v3957_v40 = vpop.f32.mrf.mxu1 }
 0xf7d   : > { %8141 = verf.f32 %v3973_v29  ;;  %v3958_v8 = vadd.f32 %v6531_v13, %v3957_v40 }
 0xf7e   : > { %v7551_v63 = vpop.f32.mrf.mxu1 }
 0xf7f   : > { %v3974_v37 = vmul.f32 0.70710677, %v3958_v8  ;;  %v3969_v55 = vmul.f32 0.5, %v3958_v8 }
 0xf81   : > { %8143 = verf.f32 %v3974_v37  ;;  %v3962_v53 = vpop.f32.mrf.mxu1 }
 0xf82   : > { %v8138_v41 = vpop.eup %8137  ;;  %v3963_v15 = vadd.f32 %v6531_v13, %v3962_v53 }
 0xf83   : > { %v3981_v17 = vadd.f32 1.0, %v8138_v41  ;;  %v7554_v0 = vpop.f32.mrf.mxu1 }
 0xf84   : > { %v3975_v30 = vmul.f32 0.70710677, %v3963_v15  ;;  %v3970_v60 = vmul.f32 0.5, %v3963_v15 }
 0xf85   : > { %v3986_v25 = vmul.f32 %v3981_v17, %v3966_v51 }
 0xf86   : > { %v8140_v5 = vpop.eup %8139  ;;  %8145 = verf.f32 %v3975_v30 }
 0xf87   : > { %v3982_v44 = vadd.f32 1.0, %v8140_v5  ;;  %7588 = vmatmul.mubr.f32.vlgmr.msra.gmra.mxu0 %v3986_v25 }
 0xf88   : > { %7590 = vmatprep.mubr.msk.f32.mxu0 %vm8275_vm2, %v8274_v3 }
 0xf89   : > { %v3987_v59 = vmul.f32 %v3982_v44, %v3967_v11 }
 0xf8a   : > { %v8142_v21 = vpop.eup %8141 }
 0xf8b   : > { %v3983_v45 = vadd.f32 1.0, %v8142_v21  ;;  %7591 = vmatmul.mubr.f32.gmra.mxu0 %v3987_v59 }
 0xf8c   : > { %7593 = vmatprep.mubr.msk.f32.mxu0 %vm8275_vm2, %v8274_v3 }
 0xf8d   : > { %v3988_v16 = vmul.f32 %v3983_v45, %v3968_v56 }
 0xf8e   : > { %v8144_v42 = vpop.eup %8143 }
 0xf8f   : > { %v3984_v58 = vadd.f32 1.0, %v8144_v42  ;;  %7594 = vmatmul.mubr.f32.gmra.mxu0 %v3988_v16 }
 0xf90   : > { %7596 = vmatprep.mubr.msk.f32.mxu0 %vm8275_vm2, %v8274_v3 }
 0xf91   : > { %v3989_v61 = vmul.f32 %v3984_v58, %v3969_v55  ;;  %v6543_v55 = vld [vmem:[%s10945_s3 + $0x58] sm:$0xff]  ;;  %v6542_v58 = vld [vmem:[%s10945_s3 + $0x50] sm:$0xff] }
 0xf92   : > { %7603 = vmatpush3.msra.mxu1 %v6543_v55 }
 0xf93   : > { %v8146_v35 = vpop.eup %8145  ;;  %7597 = vmatmul.mubr.f32.gmra.mxu0 %v3989_v61  ;;  %7604 = vmatprep.subr.mxu1 %v8274_v3  ;;  %v6541_v61 = vld [vmem:[%s10945_s3 + $0x48] sm:$0xff] }
 0xf94   : > { %v3985_v31 = vadd.f32 1.0, %v8146_v35  ;;  %7599 = vmatprep.mubr.msk.f32.mxu0 %vm8275_vm2, %v8274_v3  ;;  %7605 = vmatpush3.msra.mxu1 %v6542_v58  ;;  %v6540_v35 = vld [vmem:[%s10945_s3 + $0x40] sm:$0xff] }
 0xf95   : > { %7606 = vmatprep.subr.mxu1 %v8274_v3 }
 0xf96   : > { %v3990_v19 = vmul.f32 %v3985_v31, %v3970_v60  ;;  %7607 = vmatpush3.msra.mxu1 %v6541_v61 }
 0xf97   : > { %7608 = vmatprep.subr.mxu1 %v8274_v3 }
 0xf98   : > { %7600 = vmatmul.mubr.f32.gmra.mxu0 %v3990_v19  ;;  %7609 = vmatpush3.msra.mxu1 %v6540_v35 }
 0xf99   : > { %7660 = vmatprep.mubr.msk.f32.mxu0 %vm8275_vm2, %v8274_v3  ;;  %7625 = vmatprep.subr.mxu1 %v8274_v3 }
0x1047   : > { %v4073_v23 = vpop.f32.mrf.mxu0 }
0x1048   : > { %v4097_v48 = vadd.f32 %v4073_v23, %v9808_v9 }
0x1049   : > { %v7589_v38 = vpop.f32.mrf.mxu0 }
0x104a   : > { %v9985_v2 = vadd.f32 %v6537_v10, %v4097_v48 }
0x104b   : > { %v4078_v33 = vpop.f32.mrf.mxu0 }
0x104c   : > { %v4098_v34 = vadd.f32 %v4078_v33, %v9813_v28  ;;  %v4117_v52 = vsel %vm550_vm3, %v9985_v2, 0.0 }
0x104d   : > { %4118 = vadd.xlane.f32.xlu1 %v4117_v52  ;;  %v7592_v24 = vpop.f32.mrf.mxu0 }
0x104e   : > { %v9990_v62 = vadd.f32 %v6537_v10, %v4098_v34 }
0x104f   : > { %v4083_v43 = vpop.f32.mrf.mxu0 }
0x1050   : > { %v4099_v7 = vadd.f32 %v4083_v43, %v9818_v39  ;;  %v4120_v13 = vsel %vm550_vm3, %v9990_v62, 0.0 }
0x1051   : > { %4121 = vadd.xlane.f32.xlu0 %v4120_v13  ;;  %v7595_v9 = vpop.f32.mrf.mxu0 }
0x1052   : > { %v9995_v49 = vadd.f32 %v6537_v10, %v4099_v7  ;;  %v6538_v9 = vld [vmem:[%s10944_s2 + $0xa] ss:$0 sm:$0xff] }
0x1053   : > { %v4088_v14 = vpop.f32.mrf.mxu0 }
0x1054   : > { %v4100_v28 = vadd.f32 %v4088_v14, %v9823_v54  ;;  %v4123_v6 = vsel %vm550_vm3, %v9995_v49, 0.0 }
0x1055   : > { %4124 = vadd.xlane.f32.xlu1 %v4123_v6  ;;  %v7598_v47 = vpop.f32.mrf.mxu0 }
0x1056   : > { %v10000_v46 = vadd.f32 %v6537_v10, %v4100_v28  ;;  %v6539_v47 = vld [vmem:[%s10944_s2 + $0xb] ss:$0 sm:$0xff] }
0x1058   : > { %v4093_v26 = vpop.f32.mrf.mxu0  ;;  %v4126_v39 = vsel %vm550_vm3, %v10000_v46, 0.0 }
0x1059   : > { %v4101_v1 = vadd.f32 %v4093_v26, %v9828_v12  ;;  %4127 = vadd.xlane.f32.xlu0 %v4126_v39 }
0x105a   : > { %v7601_v32 = vpop.f32.mrf.mxu0 }
0x105b   : > { %v10005_v50 = vadd.f32 %v6537_v10, %v4101_v1 }
0x105d   : > { %v4129_v54 = vsel %vm2128_vm9, %v10005_v50, 0.0 }
0x105e   : > { %4130 = vadd.xlane.f32.xlu1 %v4129_v54 }
0x10d6   : > { %v4119_v20 = vpop.xlane.xlu1 %4118 }
0x10d7   : > { %v4132_v22 = vmul.f32 0.03125, %v4119_v20 }
0x10d9   : > { %v4137_v29 = vsub.f32 %v9985_v2, %v4132_v22 }
0x10da   : > { %v4122_v40 = vpop.xlane.xlu0 %4121 }
0x10db   : > { %v4133_v8 = vmul.f32 0.03125, %v4122_v40  ;;  %v4142_v63 = vmul.f32 %v4137_v29, %v4137_v29 }
0x10dd   : > { %v10011_v37 = vsub.f32 %v9990_v62, %v4133_v8  ;;  %v4147_v12 = vsel %vm550_vm3, %v4142_v63, 0.0 }
0x10de   : > { %v4125_v53 = vpop.xlane.xlu1 %4124  ;;  %4148 = vadd.xlane.f32.xlu0 %v4147_v12 }
0x10df   : > { %v4134_v41 = vmul.f32 0.03125, %v4125_v53  ;;  %v4143_v15 = vmul.f32 %v10011_v37, %v10011_v37 }
0x10e1   : > { %v10017_v51 = vsub.f32 %v9995_v49, %v4134_v41  ;;  %v4150_v17 = vsel %vm550_vm3, %v4143_v15, 0.0 }
0x10e2   : > { %v4128_v0 = vpop.xlane.xlu0 %4127  ;;  %4151 = vadd.xlane.f32.xlu1 %v4150_v17 }
0x10e3   : > { %v4135_v30 = vmul.f32 0.03125, %v4128_v0  ;;  %v4144_v25 = vmul.f32 %v10017_v51, %v10017_v51 }
0x10e5   : > { %v10023_v5 = vsub.f32 %v10000_v46, %v4135_v30  ;;  %v4153_v11 = vsel %vm550_vm3, %v4144_v25, 0.0 }
0x10e6   : > { %4154 = vadd.xlane.f32.xlu0 %v4153_v11 }
0x10e7   : > { %v4131_v44 = vpop.xlane.xlu1 %4130  ;;  %v4145_v59 = vmul.f32 %v10023_v5, %v10023_v5 }
0x10e8   : > { %v4136_v21 = vmul.f32 0.03125, %v4131_v44 }
0x10e9   : > { %v4156_v56 = vsel %vm550_vm3, %v4145_v59, 0.0  ;;  %v6548_v59 = vld [vmem:[%s10946_s4 + $0x2] ss:$0 sm:$0xff] }
0x10ea   : > { %v4141_v45 = vsub.f32 %v10005_v50, %v4136_v21  ;;  %4157 = vadd.xlane.f32.xlu1 %v4156_v56 }
0x10ec   : > { %v4146_v16 = vmul.f32 %v4141_v45, %v4141_v45 }
0x10ee   : > { %v4159_v42 = vsel %vm2128_vm9, %v4146_v16, 0.0 }
0x10ef   : > { %4160 = vadd.xlane.f32.xlu0 %v4159_v42 }
0x1167   : > { %v4149_v60 = vpop.xlane.xlu0 %4148 }
0x1168   : > { %v4162_v31 = vmul.f32 0.03125, %v4149_v60 }
0x116a   : > { %v4167_v19 = vadd.f32 1e-05, %v4162_v31 }
0x116b   : > { %v4152_v10 = vpop.xlane.xlu1 %4151 }
0x116c   : > { %8147 = vrsqrt.f32 %v4167_v19  ;;  %v4163_v23 = vmul.f32 0.03125, %v4152_v10 }
0x116e   : > { %v4168_v48 = vadd.f32 1e-05, %v4163_v23 }
0x116f   : > { %v4155_v38 = vpop.xlane.xlu0 %4154 }
0x1170   : > { %8149 = vrsqrt.f32 %v4168_v48  ;;  %v4164_v33 = vmul.f32 0.03125, %v4155_v38 }
0x1172   : > { %v4169_v34 = vadd.f32 1e-05, %v4164_v33 }
0x1173   : > { %v4158_v52 = vpop.xlane.xlu1 %4157 }
0x1174   : > { %8151 = vrsqrt.f32 %v4169_v34  ;;  %v4165_v24 = vmul.f32 0.03125, %v4158_v52 }
0x1176   : > { %v4170_v43 = vadd.f32 1e-05, %v4165_v24 }
0x1178   : > { %8153 = vrsqrt.f32 %v4170_v43  ;;  %v4161_v7 = vpop.xlane.xlu0 %4160 }
0x1179   : > { %v8148_v13 = vpop.eup %8147  ;;  %v4166_v14 = vmul.f32 0.03125, %v4161_v7 }
0x117a   : > { %v4177_v28 = vmul.f32 %v8148_v13, %v4137_v29 }
0x117b   : > { %v4171_v6 = vadd.f32 1e-05, %v4166_v14 }
0x117c   : > { %v4186_v26 = vmul.f32 %v6538_v9, %v4177_v28 }
0x117d   : > { %v8150_v39 = vpop.eup %8149  ;;  %8155 = vrsqrt.f32 %v4171_v6 }
0x117e   : > { %v4195_v1 = vadd.f32 %v6539_v47, %v4186_v26  ;;  %v4178_v32 = vmul.f32 %v8150_v39, %v10011_v37 }
0x1180   : > { %7611 = vmatmul.mubr.msk.f32.vlgmr.msra.gmra.mxu1 %vm550_vm3, %v4195_v1  ;;  %v4187_v54 = vmul.f32 %v6538_v9, %v4178_v32 }
0x1181   : > { %v8152_v20 = vpop.eup %8151  ;;  %7613 = vmatprep.mubr.msk.f32.mxu1 %vm8275_vm2, %v8274_v3 }
0x1182   : > { %v4196_v22 = vadd.f32 %v6539_v47, %v4187_v54  ;;  %v4179_v29 = vmul.f32 %v8152_v20, %v10017_v51 }
0x1184   : > { %7614 = vmatmul.mubr.msk.f32.gmra.mxu1 %vm550_vm3, %v4196_v22  ;;  %v4188_v40 = vmul.f32 %v6538_v9, %v4179_v29 }
0x1185   : > { %v8154_v8 = vpop.eup %8153  ;;  %7616 = vmatprep.mubr.msk.f32.mxu1 %vm8275_vm2, %v8274_v3 }
0x1186   : > { %v4197_v63 = vadd.f32 %v6539_v47, %v4188_v40  ;;  %v4180_v37 = vmul.f32 %v8154_v8, %v10023_v5 }
0x1188   : > { %7617 = vmatmul.mubr.msk.f32.gmra.mxu1 %vm550_vm3, %v4197_v63  ;;  %v4189_v12 = vmul.f32 %v6538_v9, %v4180_v37 }
0x1189   : > { %7619 = vmatprep.mubr.msk.f32.mxu1 %vm8275_vm2, %v8274_v3 }
0x118a   : > { %v8156_v53 = vpop.eup %8155  ;;  %v4198_v41 = vadd.f32 %v6539_v47, %v4189_v12 }
0x118b   : > { %v4181_v15 = vmul.f32 %v8156_v53, %v4141_v45 }
0x118c   : > { %7620 = vmatmul.mubr.msk.f32.gmra.mxu1 %vm550_vm3, %v4198_v41 }
0x118d   : > { %7622 = vmatprep.mubr.msk.f32.mxu1 %vm8275_vm2, %v8274_v3  ;;  %v4190_v51 = vmul.f32 %v6538_v9, %v4181_v15 }
0x118f   : > { %v4199_v17 = vadd.f32 %v6539_v47, %v4190_v51 }
0x1191   : > { %7623 = vmatmul.mubr.msk.f32.gmra.mxu1 %vm550_vm3, %v4199_v17 }
0x1192   : > { %7635 = vmatprep.mubr.msk.f32.mxu1 %vm8275_vm2, %v8274_v3 }
0x1240   : > { %v4296_v0 = vpop.f32.mrf.mxu1 }
0x1241   : > { %v10078_v16 = vadd.f32 %v6548_v59, %v4296_v0 }
0x1242   : > { %v7612_v30 = vpop.f32.mrf.mxu1 }
0x1244   : > { %v4301_v25 = vpop.f32.mrf.mxu1 }
0x1245   : > { %v10092_v35 = vadd.f32 %v6548_v59, %v4301_v25 }
0x1246   : > { %v7615_v5 = vpop.f32.mrf.mxu1 }
0x1248   : > { %v4306_v11 = vpop.f32.mrf.mxu1 }
0x1249   : > { %v10086_v61 = vadd.f32 %v6548_v59, %v4306_v11 }
0x124a   : > { %v7618_v44 = vpop.f32.mrf.mxu1 }
0x124c   : > { %v4311_v21 = vpop.f32.mrf.mxu1 }
0x124d   : > { %v10074_v56 = vadd.f32 %v6548_v59, %v4311_v21 }
0x124e   : > { %v7621_v45 = vpop.f32.mrf.mxu1 }
0x124f   : > { %4331 = vrot.lane.b32.xlu0 %v10074_v56, %s8276_s17 }
0x1251   : > { %v4316_v42 = vpop.f32.mrf.mxu1 }
0x1252   : > { %v10080_v55 = vadd.f32 %v6548_v59, %v4316_v42 }
0x1253   : > { %4325 = vrot.lane.b32.xlu0 %v10078_v16, %s8276_s17  ;;  %v7624_v58 = vpop.f32.mrf.mxu1 }
0x1254   : > { %4333 = vrot.lane.b32.xlu1 %v10080_v55, %s8276_s17 }
0x1257   : > { %4647 = vrot.lane.b32.xlu0 %v10074_v56, %s8277_s18 }
0x1258   : > { %4329 = vrot.lane.b32.xlu1 %v10086_v61, %s8276_s17 }
0x125b   : > { %4643 = vrot.lane.b32.xlu0 %v10092_v35, %s8277_s18 }
0x125c   : > { %4327 = vrot.lane.b32.xlu1 %v10092_v35, %s8276_s17  ;;  %s10974_s17 = smov 104  }
0x125f   : > { %4631 = vrot.lane.b32.xlu0 %v10078_v16, %s8279_s21 }
0x1260   : > { %4649 = vrot.lane.b32.xlu1 %v10080_v55, %s8277_s18 }
0x1263   : > { %4633 = vrot.lane.b32.xlu0 %v10092_v35, %s8279_s21 }
0x1264   : > { %4645 = vrot.lane.b32.xlu1 %v10086_v61, %s8277_s18 }
0x1267   : > { %4635 = vrot.lane.b32.xlu0 %v10086_v61, %s8279_s21 }
0x1268   : > { %4641 = vrot.lane.b32.xlu1 %v10078_v16, %s8277_s18  ;;  %s10975_s18 = smov 64  }
0x126b   : > { %4637 = vrot.lane.b32.xlu0 %v10074_v56, %s8279_s21 }
0x126c   : > { %4965 = vrot.lane.b32.xlu1 %v10080_v55, %s8278_s20 }
0x126f   : > { %4639 = vrot.lane.b32.xlu0 %v10080_v55, %s8279_s21  ;;  %s10977_s21 = smov 48  }
0x1270   : > { %4963 = vrot.lane.b32.xlu1 %v10074_v56, %s8278_s20 }
0x1273   : > { %4947 = vrot.lane.b32.xlu0 %v10078_v16, %s8281_s23 }
0x1274   : > { %4961 = vrot.lane.b32.xlu1 %v10086_v61, %s8278_s20 }
0x1277   : > { %4949 = vrot.lane.b32.xlu0 %v10092_v35, %s8281_s23 }
0x1278   : > { %4959 = vrot.lane.b32.xlu1 %v10092_v35, %s8278_s20 }
0x127b   : > { %4951 = vrot.lane.b32.xlu0 %v10086_v61, %s8281_s23 }
0x127c   : > { %4957 = vrot.lane.b32.xlu1 %v10078_v16, %s8278_s20  ;;  %s10976_s20 = smov 56  }
0x127f   : > { %4953 = vrot.lane.b32.xlu0 %v10074_v56, %s8281_s23 }
0x1280   : > { %5281 = vrot.lane.b32.xlu1 %v10080_v55, %s8280_s22 }
0x1283   : > { %4955 = vrot.lane.b32.xlu0 %v10080_v55, %s8281_s23 }
0x1284   : > { %5279 = vrot.lane.b32.xlu1 %v10074_v56, %s8280_s22 }
0x1287   : > { %5263 = vrot.lane.b32.xlu0 %v10078_v16, %s10974_s17 }
0x1288   : > { %5277 = vrot.lane.b32.xlu1 %v10086_v61, %s8280_s22 }
0x128b   : > { %5267 = vrot.lane.b32.xlu0 %v10086_v61, %s10974_s17 }
0x128c   : > { %5275 = vrot.lane.b32.xlu1 %v10092_v35, %s8280_s22 }
0x128f   : > { %4516 = vrot.lane.b32.xlu0 %v10074_v56, %s10975_s18 }
0x1290   : > { %5273 = vrot.lane.b32.xlu1 %v10078_v16, %s8280_s22 }
0x1293   : > { %4512 = vrot.lane.b32.xlu0 %v10092_v35, %s10975_s18 }
0x1294   : > { %5265 = vrot.lane.b32.xlu1 %v10092_v35, %s10974_s17 }
0x1297   : > { %4510 = vrot.lane.b32.xlu0 %v10078_v16, %s10975_s18 }
0x1298   : > { %5269 = vrot.lane.b32.xlu1 %v10074_v56, %s10974_s17 }
0x129b   : > { %4832 = vrot.lane.b32.xlu0 %v10074_v56, %s10976_s20 }
0x129c   : > { %4514 = vrot.lane.b32.xlu1 %v10086_v61, %s10975_s18 }
0x129f   : > { %4828 = vrot.lane.b32.xlu0 %v10092_v35, %s10976_s20 }
0x12a0   : > { %4830 = vrot.lane.b32.xlu1 %v10086_v61, %s10976_s20 }
0x12a3   : > { %4826 = vrot.lane.b32.xlu0 %v10078_v16, %s10976_s20 }
0x12a4   : > { %5146 = vrot.lane.b32.xlu1 %v10086_v61, %s10977_s21 }
0x12a7   : > { %5148 = vrot.lane.b32.xlu0 %v10074_v56, %s10977_s21 }
0x12a8   : > { %4518 = vrot.lane.b32.xlu1 %v10080_v55, %s10975_s18 }
0x12ac   : > { %4834 = vrot.lane.b32.xlu1 %v10080_v55, %s10976_s20 }
0x12b0   : > { %5150 = vrot.lane.b32.xlu1 %v10080_v55, %s10977_s21 }
0x12c1   : > { %v4332_v60 = vpop.permute.xlu0 %4331 }
0x12c5   : > { %v4326_v31 = vpop.permute.xlu0 %4325 }
0x12c6   : > { %v4334_v19 = vpop.permute.xlu1 %4333 }
0x12c7   : > { %7626 = vmatpush3.xpose.msk.msra.mxu1 %vm671_vm4, %v4334_v19 }
0x12c8   : > { %7627 = vmatprep.subr.mxu1 %v8274_v3 }
0x12c9   : > { %v4648_v10 = vpop.permute.xlu0 %4647 }
0x12ca   : > { %v4330_v23 = vpop.permute.xlu1 %4329 }
0x12cb   : > { %7628 = vmatpush3.xpose.msk.msra.mxu1 %vm671_vm4, %v4332_v60 }
0x12cc   : > { %7629 = vmatprep.subr.mxu1 %v8274_v3 }
0x12cd   : > { %v4644_v48 = vpop.permute.xlu0 %4643 }
0x12ce   : > { %v4328_v38 = vpop.permute.xlu1 %4327 }
0x12cf   : > { %7630 = vmatpush3.xpose.msk.msra.mxu1 %vm671_vm4, %v4330_v23 }
0x12d0   : > { %7631 = vmatprep.subr.mxu1 %v8274_v3 }
0x12d1   : > { %v4632_v33 = vpop.permute.xlu0 %4631 }
0x12d2   : > { %v4650_v34 = vpop.permute.xlu1 %4649 }
0x12d3   : > { %7632 = vmatpush3.xpose.msk.msra.mxu1 %vm671_vm4, %v4328_v38 }
0x12d4   : > { %7633 = vmatprep.subr.mxu1 %v8274_v3 }
0x12d5   : > { %v4634_v52 = vpop.permute.xlu0 %4633 }
0x12d6   : > { %v4646_v24 = vpop.permute.xlu1 %4645 }
0x12d7   : > { %7634 = vmatpush3.xpose.msk.msra.mxu1 %vm671_vm4, %v4326_v31 }
0x12d8   : > { %7675 = vmatprep.subr.mxu1 %v8274_v3 }
0x12d9   : > { %v4636_v43 = vpop.permute.xlu0 %4635 }
0x12da   : > { %7636 = vmatmul.mubr.msk.f32.vlgmr.msra.gmra.mxu1 %vm671_vm4, %v10078_v16  ;;  %v4642_v7 = vpop.permute.xlu1 %4641 }
0x12db   : > { %7676 = vmatpush3.xpose.msk.msra.mxu1 %vm671_vm4, %v4650_v34  ;;  %7638 = vmatprep.mubr.msk.f32.mxu1 %vm8275_vm2, %v8274_v3 }
0x12dc   : > { %7677 = vmatprep.subr.mxu1 %v8274_v3 }
0x12dd   : > { %v4638_v9 = vpop.permute.xlu0 %4637 }
0x12de   : > { %7639 = vmatmul.mubr.msk.f32.gmra.mxu1 %vm671_vm4, %v10092_v35  ;;  %v4966_v13 = vpop.permute.xlu1 %4965 }
0x12df   : > { %7678 = vmatpush3.xpose.msk.msra.mxu1 %vm671_vm4, %v4648_v10  ;;  %7641 = vmatprep.mubr.msk.f32.mxu1 %vm8275_vm2, %v8274_v3 }
0x12e0   : > { %7679 = vmatprep.subr.mxu1 %v8274_v3 }
0x12e1   : > { %v4640_v28 = vpop.permute.xlu0 %4639 }
0x12e2   : > { %7642 = vmatmul.mubr.msk.f32.gmra.mxu1 %vm671_vm4, %v10086_v61  ;;  %v4964_v14 = vpop.permute.xlu1 %4963 }
0x12e3   : > { %7680 = vmatpush3.xpose.msk.msra.mxu1 %vm671_vm4, %v4646_v24  ;;  %7644 = vmatprep.mubr.msk.f32.mxu1 %vm8275_vm2, %v8274_v3 }
0x12e4   : > { %7681 = vmatprep.subr.mxu1 %v8274_v3 }
0x12e5   : > { %v4948_v26 = vpop.permute.xlu0 %4947 }
0x12e6   : > { %7645 = vmatmul.mubr.msk.f32.gmra.mxu1 %vm671_vm4, %v10074_v56  ;;  %v4962_v6 = vpop.permute.xlu1 %4961 }
0x12e7   : > { %7682 = vmatpush3.xpose.msk.msra.mxu1 %vm671_vm4, %v4644_v48  ;;  %7647 = vmatprep.mubr.msk.f32.mxu1 %vm8275_vm2, %v8274_v3 }
0x12e8   : > { %7683 = vmatprep.subr.mxu1 %v8274_v3 }
0x12e9   : > { %v4950_v1 = vpop.permute.xlu0 %4949 }
0x12ea   : > { %7648 = vmatmul.mubr.msk.f32.gmra.mxu1 %vm671_vm4, %v10080_v55  ;;  %v4960_v47 = vpop.permute.xlu1 %4959 }
0x12eb   : > { %7684 = vmatpush3.xpose.msk.msra.mxu1 %vm671_vm4, %v4642_v7  ;;  %7685 = vmatprep.mubr.msk.f32.mxu1 %vm8275_vm2, %v8274_v3 }
0x12ec   : > { %7725 = vmatprep.subr.mxu1 %v8274_v3 }
0x12ed   : > { %v4952_v20 = vpop.permute.xlu0 %4951 }
0x12ee   : > { %7686 = vmatmul.mubr.msk.f32.vlgmr.msra.gmra.mxu1 %vm671_vm4, %v4632_v33  ;;  %v4958_v39 = vpop.permute.xlu1 %4957 }
0x12ef   : > { %7726 = vmatpush3.xpose.msk.msra.mxu1 %vm671_vm4, %v4966_v13  ;;  %7688 = vmatprep.mubr.msk.f32.mxu1 %vm8275_vm2, %v8274_v3 }
0x12f0   : > { %7727 = vmatprep.subr.mxu1 %v8274_v3 }
0x12f1   : > { %v4954_v29 = vpop.permute.xlu0 %4953 }
0x12f2   : > { %7689 = vmatmul.mubr.msk.f32.gmra.mxu1 %vm671_vm4, %v4634_v52  ;;  %v5282_v32 = vpop.permute.xlu1 %5281 }
0x12f3   : > { %7728 = vmatpush3.xpose.msk.msra.mxu1 %vm671_vm4, %v4964_v14  ;;  %7691 = vmatprep.mubr.msk.f32.mxu1 %vm8275_vm2, %v8274_v3 }
0x12f4   : > { %7729 = vmatprep.subr.mxu1 %v8274_v3 }
0x12f5   : > { %v4956_v63 = vpop.permute.xlu0 %4955 }
0x12f6   : > { %7692 = vmatmul.mubr.msk.f32.gmra.mxu1 %vm671_vm4, %v4636_v43  ;;  %v5280_v54 = vpop.permute.xlu1 %5279 }
0x12f7   : > { %7730 = vmatpush3.xpose.msk.msra.mxu1 %vm671_vm4, %v4962_v6  ;;  %7694 = vmatprep.mubr.msk.f32.mxu1 %vm8275_vm2, %v8274_v3 }
0x12f8   : > { %7731 = vmatprep.subr.mxu1 %v8274_v3 }
0x12f9   : > { %v5264_v12 = vpop.permute.xlu0 %5263 }
0x12fa   : > { %7695 = vmatmul.mubr.msk.f32.gmra.mxu1 %vm671_vm4, %v4638_v9  ;;  %v5278_v22 = vpop.permute.xlu1 %5277 }
0x12fb   : > { %7732 = vmatpush3.xpose.msk.msra.mxu1 %vm671_vm4, %v4960_v47  ;;  %7697 = vmatprep.mubr.msk.f32.mxu1 %vm8275_vm2, %v8274_v3 }
0x12fc   : > { %7733 = vmatprep.subr.mxu1 %v8274_v3 }
0x12fd   : > { %v5268_v15 = vpop.permute.xlu0 %5267 }
0x12fe   : > { %7698 = vmatmul.mubr.msk.f32.gmra.mxu1 %vm671_vm4, %v4640_v28  ;;  %v5276_v40 = vpop.permute.xlu1 %5275 }
0x12ff   : > { %7734 = vmatpush3.xpose.msk.msra.mxu1 %vm671_vm4, %v4958_v39  ;;  %7735 = vmatprep.mubr.msk.f32.mxu1 %vm8275_vm2, %v8274_v3 }
0x1300   : > { %7775 = vmatprep.subr.mxu1 %v8274_v3 }
0x1301   : > { %v4517_v17 = vpop.permute.xlu0 %4516 }
0x1302   : > { %7736 = vmatmul.mubr.msk.f32.vlgmr.msra.gmra.mxu1 %vm671_vm4, %v4948_v26  ;;  %v5274_v8 = vpop.permute.xlu1 %5273 }
0x1303   : > { %7776 = vmatpush3.xpose.msk.msra.mxu1 %vm671_vm4, %v5282_v32  ;;  %7738 = vmatprep.mubr.msk.f32.mxu1 %vm8275_vm2, %v8274_v3 }
0x1304   : > { %7777 = vmatprep.subr.mxu1 %v8274_v3 }
0x1305   : > { %v4513_v25 = vpop.permute.xlu0 %4512 }
0x1306   : > { %7739 = vmatmul.mubr.msk.f32.gmra.mxu1 %vm671_vm4, %v4950_v1  ;;  %v5266_v37 = vpop.permute.xlu1 %5265 }
0x1307   : > { %7778 = vmatpush3.xpose.msk.msra.mxu1 %vm671_vm4, %v5280_v54  ;;  %7741 = vmatprep.mubr.msk.f32.mxu1 %vm8275_vm2, %v8274_v3 }
0x1308   : > { %7779 = vmatprep.subr.mxu1 %v8274_v3 }
0x1309   : > { %v4511_v5 = vpop.permute.xlu0 %4510 }
0x130a   : > { %7742 = vmatmul.mubr.msk.f32.gmra.mxu1 %vm671_vm4, %v4952_v20  ;;  %v5270_v53 = vpop.permute.xlu1 %5269 }
0x130b   : > { %7780 = vmatpush3.xpose.msk.msra.mxu1 %vm671_vm4, %v5278_v22  ;;  %7744 = vmatprep.mubr.msk.f32.mxu1 %vm8275_vm2, %v8274_v3 }
0x130c   : > { %7781 = vmatprep.subr.mxu1 %v8274_v3 }
0x130e   : > { %7745 = vmatmul.mubr.msk.f32.gmra.mxu1 %vm671_vm4, %v4954_v29  ;;  %v4515_v41 = vpop.permute.xlu1 %4514 }
0x130f   : > { %7782 = vmatpush3.xpose.msk.msra.mxu1 %vm671_vm4, %v5276_v40  ;;  %7747 = vmatprep.mubr.msk.f32.mxu1 %vm8275_vm2, %v8274_v3 }
0x1310   : > { %7783 = vmatprep.subr.mxu1 %v8274_v3 }
0x1312   : > { %7748 = vmatmul.mubr.msk.f32.gmra.mxu1 %vm671_vm4, %v4956_v63  ;;  %v10264_v51 = vpop.permute.xlu1 %4830 }
0x1313   : > { %7784 = vmatpush3.xpose.msk.msra.mxu1 %vm671_vm4, %v5274_v8  ;;  %7785 = vmatprep.mubr.msk.f32.mxu1 %vm8275_vm2, %v8274_v3 }
0x1314   : > { %7825 = vmatprep.subr.mxu1 %v8274_v3 }
0x1316   : > { %7786 = vmatmul.mubr.msk.f32.vlgmr.msra.gmra.mxu1 %vm671_vm4, %v5264_v12  ;;  %v10271_v0 = vpop.permute.xlu1 %5146 }
0x1317   : > { %7788 = vmatprep.mubr.msk.f32.mxu1 %vm8275_vm2, %v8274_v3 }
0x131a   : > { %7789 = vmatmul.mubr.msk.f32.gmra.mxu1 %vm671_vm4, %v5266_v37  ;;  %v4519_v30 = vpop.permute.xlu1 %4518 }
0x131b   : > { %7651 = vmatpush3.msk.msra.mxu0 %vm878_vm5, %v4519_v30  ;;  %7791 = vmatprep.mubr.msk.f32.mxu1 %vm8275_vm2, %v8274_v3 }
0x131c   : > { %7652 = vmatprep.subr.mxu0 %v8274_v3 }
0x131d   : > { %7653 = vmatpush3.msra.mxu0 %v4517_v17 }
0x131e   : > { %7654 = vmatprep.subr.mxu0 %v8274_v3  ;;  %7792 = vmatmul.mubr.msk.f32.gmra.mxu1 %vm671_vm4, %v5268_v15 }
0x131f   : > { %7655 = vmatpush3.msra.mxu0 %v4515_v41  ;;  %7794 = vmatprep.mubr.msk.f32.mxu1 %vm8275_vm2, %v8274_v3 }
0x1320   : > { %7656 = vmatprep.subr.mxu0 %v8274_v3 }
0x1321   : > { %7657 = vmatpush3.msra.mxu0 %v4513_v25 }
0x1322   : > { %7658 = vmatprep.subr.mxu0 %v8274_v3  ;;  %7795 = vmatmul.mubr.msk.f32.gmra.mxu1 %vm671_vm4, %v5270_v53 }
0x1323   : > { %7659 = vmatpush3.msra.mxu0 %v4511_v5  ;;  %7797 = vmatprep.mubr.msk.f32.mxu1 %vm8275_vm2, %v8274_v3 }
0x1324   : > { %7700 = vmatprep.subr.mxu0 %v8274_v3 }
0x139a   : > { %v4421_v11 = vpop.f32.mrf.mxu1 }
0x139b   : > { %v4445_v44 = vmul.f32 0.35355338, %v4421_v11 }
0x139c   : > { %v7637_v59 = vpop.f32.mrf.mxu1 }
0x139d   : > { %v10291_v21 = vadd.f32 %v4445_v44, %v8646_v57 }
0x139e   : > { %v4426_v45 = vpop.f32.mrf.mxu1 }
0x139f   : > { %v4446_v42 = vmul.f32 0.35355338, %v4426_v45  ;;  %v4455_v58 = vsel %vm792_vm11, %v10291_v21, -inf }
0x13a0   : > { %4456 = vmax.xlane.f32.xlu0 %v4455_v58  ;;  %v7640_v60 = vpop.f32.mrf.mxu1 }
0x13a1   : > { %v10296_v31 = vadd.f32 %v4446_v42, %v8651_v4 }
0x13a2   : > { %v4431_v19 = vpop.f32.mrf.mxu1 }
0x13a3   : > { %v4447_v10 = vmul.f32 0.35355338, %v4431_v19  ;;  %v4458_v23 = vsel %vm792_vm11, %v10296_v31, -inf }
0x13a4   : > { %4459 = vmax.xlane.f32.xlu1 %v4458_v23  ;;  %v7643_v48 = vpop.f32.mrf.mxu1 }
0x13a5   : > { %v10301_v38 = vadd.f32 %v4447_v10, %v8658_v18 }
0x13a6   : > { %v4436_v33 = vpop.f32.mrf.mxu1 }
0x13a7   : > { %v4448_v34 = vmul.f32 0.35355338, %v4436_v33  ;;  %v4461_v52 = vsel %vm792_vm11, %v10301_v38, -inf }
0x13a8   : > { %4462 = vmax.xlane.f32.xlu0 %v4461_v52  ;;  %v7646_v24 = vpop.f32.mrf.mxu1 }
0x13a9   : > { %v10306_v43 = vadd.f32 %v4448_v34, %v8665_v27 }
0x13aa   : > { %v4441_v7 = vpop.f32.mrf.mxu1 }
0x13ab   : > { %v4449_v13 = vmul.f32 0.35355338, %v4441_v7  ;;  %v4464_v9 = vsel %vm792_vm11, %v10306_v43, -inf }
0x13ac   : > { %4465 = vmax.xlane.f32.xlu0 %v4464_v9  ;;  %v7649_v14 = vpop.f32.mrf.mxu1 }
0x13ad   : > { %v10311_v28 = vadd.f32 %v4449_v13, %v8672_v36 }
0x13ae   : > { %v4737_v6 = vpop.f32.mrf.mxu1 }
0x13af   : > { %v4761_v47 = vmul.f32 0.35355338, %v4737_v6  ;;  %v4467_v26 = vsel %vm805_vm6, %v10311_v28, -inf }
0x13b0   : > { %4468 = vmax.xlane.f32.xlu1 %v4467_v26  ;;  %v7687_v39 = vpop.f32.mrf.mxu1 }
0x13b1   : > { %v10316_v1 = vadd.f32 %v4761_v47, %v8646_v57 }
0x13b2   : > { %v4742_v32 = vpop.f32.mrf.mxu1 }
0x13b3   : > { %v4762_v54 = vmul.f32 0.35355338, %v4742_v32  ;;  %v4771_v20 = vsel %vm792_vm11, %v10316_v1, -inf }
0x13b4   : > { %4772 = vmax.xlane.f32.xlu0 %v4771_v20  ;;  %v7690_v22 = vpop.f32.mrf.mxu1 }
0x13b5   : > { %v10321_v29 = vadd.f32 %v4762_v54, %v8651_v4 }
0x13b6   : > { %v4747_v40 = vpop.f32.mrf.mxu1 }
0x13b7   : > { %v4763_v8 = vmul.f32 0.35355338, %v4747_v40  ;;  %v4774_v63 = vsel %vm792_vm11, %v10321_v29, -inf }
0x13b8   : > { %4775 = vmax.xlane.f32.xlu1 %v4774_v63  ;;  %v7693_v37 = vpop.f32.mrf.mxu1 }
0x13b9   : > { %v10326_v12 = vadd.f32 %v4763_v8, %v8658_v18 }
0x13ba   : > { %v4752_v53 = vpop.f32.mrf.mxu1 }
0x13bb   : > { %v4764_v41 = vmul.f32 0.35355338, %v4752_v53  ;;  %v4777_v15 = vsel %vm792_vm11, %v10326_v12, -inf }
0x13bc   : > { %4778 = vmax.xlane.f32.xlu0 %v4777_v15  ;;  %v7696_v17 = vpop.f32.mrf.mxu1 }
0x13bd   : > { %v10331_v30 = vadd.f32 %v4764_v41, %v8665_v27 }
0x13be   : > { %v4757_v25 = vpop.f32.mrf.mxu1 }
0x13bf   : > { %v4765_v5 = vmul.f32 0.35355338, %v4757_v25  ;;  %v4780_v11 = vsel %vm792_vm11, %v10331_v30, -inf }
0x13c0   : > { %4781 = vmax.xlane.f32.xlu1 %v4780_v11  ;;  %v7699_v44 = vpop.f32.mrf.mxu1 }
0x13c1   : > { %v10336_v59 = vadd.f32 %v4765_v5, %v8672_v36 }
0x13c2   : > { %v5053_v45 = vpop.f32.mrf.mxu1 }
0x13c3   : > { %v5077_v42 = vmul.f32 0.35355338, %v5053_v45  ;;  %v4783_v58 = vsel %vm805_vm6, %v10336_v59, -inf }
0x13c4   : > { %4784 = vmax.xlane.f32.xlu0 %v4783_v58  ;;  %v7737_v60 = vpop.f32.mrf.mxu1 }
0x13c5   : > { %v10341_v19 = vadd.f32 %v5077_v42, %v8646_v57 }
0x13c6   : > { %v5058_v10 = vpop.f32.mrf.mxu1 }
0x13c7   : > { %v5087_v23 = vsel %vm792_vm11, %v10341_v19, -inf  ;;  %v5078_v11 = vmul.f32 0.35355338, %v5058_v10 }
0x13c8   : > { %5088 = vmax.xlane.f32.xlu1 %v5087_v23  ;;  %v7740_v48 = vpop.f32.mrf.mxu1 }
0x13c9   : > { %v10368_v44 = vadd.f32 %v5078_v11, %v8651_v4 }
0x13ca   : > { %v5063_v33 = vpop.f32.mrf.mxu1 }
0x13cb   : > { %v5079_v34 = vmul.f32 0.35355338, %v5063_v33  ;;  %v5090_v60 = vsel %vm792_vm11, %v10368_v44, -inf }
0x13cc   : > { %v7743_v52 = vpop.f32.mrf.mxu1 }
0x13cd   : > { %v10346_v24 = vadd.f32 %v5079_v34, %v8658_v18  ;;  %v10387_v34 = vpop.permute.xlu0 %4832 }
0x13ce   : > { %v5068_v7 = vpop.f32.mrf.mxu1 }
0x13cf   : > { %v5093_v13 = vsel %vm792_vm11, %v10346_v24, -inf  ;;  %v5080_v45 = vmul.f32 0.35355338, %v5068_v7  ;;  %v10393_v7 = vpop.permute.xlu1 %4834 }
0x13d0   : > { %5094 = vmax.xlane.f32.xlu1 %v5093_v13  ;;  %v7746_v9 = vpop.f32.mrf.mxu1 }
0x13d1   : > { %v10371_v42 = vadd.f32 %v5080_v45, %v8665_v27 }
0x13d2   : > { %v5073_v14 = vpop.f32.mrf.mxu1 }
0x13d3   : > { %v5081_v6 = vmul.f32 0.35355338, %v5073_v14  ;;  %v5096_v33 = vsel %vm792_vm11, %v10371_v42, -inf }
0x13d4   : > { %v7749_v47 = vpop.f32.mrf.mxu1 }
0x13d5   : > { %v10351_v26 = vadd.f32 %v5081_v6, %v8672_v36 }
0x13d6   : > { %v5369_v39 = vpop.f32.mrf.mxu1 }
0x13d7   : > { %v5099_v32 = vsel %vm805_vm6, %v10351_v26, -inf  ;;  %v5393_v58 = vmul.f32 0.35355338, %v5369_v39 }
0x13d8   : > { %5100 = vmax.xlane.f32.xlu1 %v5099_v32  ;;  %v7787_v54 = vpop.f32.mrf.mxu1 }
0x13d9   : > { %v10376_v23 = vadd.f32 %v5393_v58, %v8646_v57  ;;  %v10389_v57 = vpop.permute.xlu0 %4828 }
0x13da   : > { %5144 = vrot.lane.b32.xlu0 %v10092_v35, %s10977_s21  ;;  %v5374_v20 = vpop.f32.mrf.mxu1 }
0x13db   : > { %v5394_v22 = vmul.f32 0.35355338, %v5374_v20 }
0x13dc   : > { %v7790_v40 = vpop.f32.mrf.mxu1 }
0x13dd   : > { %v10358_v8 = vadd.f32 %v5394_v22, %v8651_v4  ;;  %v10391_v52 = vpop.permute.xlu0 %4826 }
0x13de   : > { %v5379_v63 = vpop.f32.mrf.mxu1 }
0x13df   : > { %v5406_v37 = vsel %vm792_vm11, %v10358_v8, -inf  ;;  %v5395_v48 = vmul.f32 0.35355338, %v5379_v63 }
0x13e0   : > { %5407 = vmax.xlane.f32.xlu1 %v5406_v37  ;;  %v7793_v53 = vpop.f32.mrf.mxu1 }
0x13e1   : > { %v10381_v4 = vadd.f32 %v5395_v48, %v8658_v18  ;;  %v10395_v13 = vpop.permute.xlu0 %5148  ;;  %v10397_v18 = vpop.permute.xlu1 %5150 }
0x13e2   : > { %v5384_v41 = vpop.f32.mrf.mxu1 }
0x13e3   : > { %v5396_v15 = vmul.f32 0.35355338, %v5384_v41  ;;  %v5409_v10 = vsel %vm792_vm11, %v10381_v4, -inf }
0x13e4   : > { %v7796_v17 = vpop.f32.mrf.mxu1 }
0x13e5   : > { %v10363_v25 = vadd.f32 %v5396_v15, %v8665_v27  ;;  %v5403_v27 = vsel %vm792_vm11, %v10376_v23, -inf }
0x13e7   : > { %v5412_v5 = vsel %vm792_vm11, %v10363_v25, -inf }
0x13e8   : > { %5413 = vmax.xlane.f32.xlu1 %v5412_v5 }
0x13f9   : > { %5091 = vmax.xlane.f32.xlu0 %v5090_v60 }
0x13fd   : > { %5097 = vmax.xlane.f32.xlu0 %v5096_v33 }
0x1401   : > { %5404 = vmax.xlane.f32.xlu0 %v5403_v27 }
0x1405   : > { %5410 = vmax.xlane.f32.xlu0 %v5409_v10 }
0x1429   : > { %v4457_v9 = vpop.xlane.xlu0 %4456 }
0x142a   : > { %v4470_v14 = vsub.f32 %v10291_v21, %v4457_v9 }
0x142c   : > { %v4475_v6 = vmul.f32 1.442695, %v4470_v14 }
0x142d   : > { %v4460_v47 = vpop.xlane.xlu1 %4459 }
0x142e   : > { %8157 = vpow2.f32 %v4475_v6  ;;  %v4471_v39 = vsub.f32 %v10296_v31, %v4460_v47 }
0x1430   : > { %v4477_v32 = vmul.f32 1.442695, %v4471_v39 }
0x1431   : > { %v4463_v54 = vpop.xlane.xlu0 %4462 }
0x1432   : > { %8159 = vpow2.f32 %v4477_v32  ;;  %v4472_v20 = vsub.f32 %v10301_v38, %v4463_v54 }
0x1434   : > { %v4479_v22 = vmul.f32 1.442695, %v4472_v20 }
0x1435   : > { %v4466_v40 = vpop.xlane.xlu0 %4465 }
0x1436   : > { %8161 = vpow2.f32 %v4479_v22  ;;  %v4473_v63 = vsub.f32 %v10306_v43, %v4466_v40 }
0x1438   : > { %v4481_v37 = vmul.f32 1.442695, %v4473_v63 }
0x1439   : > { %v4469_v53 = vpop.xlane.xlu1 %4468 }
0x143a   : > { %8163 = vpow2.f32 %v4481_v37  ;;  %v4474_v21 = vsub.f32 %v10311_v28, %v4469_v53 }
0x143b   : > { %v10404_v41 = vpop.eup %8157 }
0x143c   : > { %v4483_v15 = vmul.f32 1.442695, %v4474_v21  ;;  %v4485_v31 = vsel %vm792_vm11, %v10404_v41, 0.0 }
0x143d   : > { %v4773_v17 = vpop.xlane.xlu0 %4772  ;;  %4486 = vadd.xlane.f32.xlu0 %v4485_v31 }
0x143e   : > { %8165 = vpow2.f32 %v4483_v15  ;;  %v4786_v38 = vsub.f32 %v10316_v1, %v4773_v17 }
0x143f   : > { %v10409_v5 = vpop.eup %8159 }
0x1440   : > { %v4791_v11 = vmul.f32 1.442695, %v4786_v38  ;;  %v4488_v43 = vsel %vm792_vm11, %v10409_v5, 0.0 }
0x1441   : > { %v4776_v45 = vpop.xlane.xlu1 %4775  ;;  %4489 = vadd.xlane.f32.xlu1 %v4488_v43 }
0x1442   : > { %8167 = vpow2.f32 %v4791_v11  ;;  %v4787_v28 = vsub.f32 %v10321_v29, %v4776_v45 }
0x1443   : > { %v10414_v58 = vpop.eup %8161 }
0x1444   : > { %v4793_v60 = vmul.f32 1.442695, %v4787_v28  ;;  %v4491_v48 = vsel %vm792_vm11, %v10414_v58, 0.0 }
0x1445   : > { %v4779_v33 = vpop.xlane.xlu0 %4778  ;;  %4492 = vadd.xlane.f32.xlu0 %v4491_v48 }
0x1446   : > { %8169 = vpow2.f32 %v4793_v60  ;;  %v4788_v1 = vsub.f32 %v10326_v12, %v4779_v33 }
0x1447   : > { %v10419_v27 = vpop.eup %8163 }
0x1448   : > { %v4795_v10 = vmul.f32 1.442695, %v4788_v1  ;;  %v4494_v9 = vsel %vm792_vm11, %v10419_v27, 0.0 }
0x1449   : > { %4495 = vadd.xlane.f32.xlu1 %v4494_v9  ;;  %v4782_v20 = vpop.xlane.xlu1 %4781 }
0x144a   : > { %8171 = vpow2.f32 %v4795_v10  ;;  %v4789_v22 = vsub.f32 %v10331_v30, %v4782_v20 }
0x144b   : > { %v10423_v29 = vpop.eup %8165 }
0x144c   : > { %v4497_v14 = vsel %vm805_vm6, %v10423_v29, 0.0  ;;  %v4797_v53 = vmul.f32 1.442695, %v4789_v22 }
0x144d   : > { %4498 = vadd.xlane.f32.xlu0 %v4497_v14  ;;  %v4785_v40 = vpop.xlane.xlu0 %4784 }
0x144e   : > { %v4790_v37 = vsub.f32 %v10336_v59, %v4785_v40  ;;  %8173 = vpow2.f32 %v4797_v53 }
0x144f   : > { %v10427_v6 = vpop.eup %8167 }
0x1450   : > { %v4801_v47 = vsel %vm792_vm11, %v10427_v6, 0.0  ;;  %v4799_v31 = vmul.f32 1.442695, %v4790_v37 }
0x1451   : > { %4802 = vadd.xlane.f32.xlu0 %v4801_v47  ;;  %v5089_v63 = vpop.xlane.xlu1 %5088  ;;  %v10447_v43 = vpop.permute.xlu0 %5144 }
0x1452   : > { %v5102_v21 = vsub.f32 %v10341_v19, %v5089_v63  ;;  %8175 = vpow2.f32 %v4799_v31 }
0x1453   : > { %v10431_v12 = vpop.eup %8169 }
0x1454   : > { %v4804_v39 = vsel %vm792_vm11, %v10431_v12, 0.0  ;;  %v5107_v17 = vmul.f32 1.442695, %v5102_v21 }
0x1455   : > { %4805 = vadd.xlane.f32.xlu1 %v4804_v39 }
0x1456   : > { %8177 = vpow2.f32 %v5107_v17 }
0x1457   : > { %v10435_v32 = vpop.eup %8171 }
0x1458   : > { %v4807_v54 = vsel %vm792_vm11, %v10435_v32, 0.0 }
0x1459   : > { %4808 = vadd.xlane.f32.xlu0 %v4807_v54  ;;  %v5095_v15 = vpop.xlane.xlu1 %5094 }
0x145a   : > { %v5104_v38 = vsub.f32 %v10346_v24, %v5095_v15 }
0x145b   : > { %v10451_v19 = vpop.eup %8173 }
0x145c   : > { %v5111_v11 = vmul.f32 1.442695, %v5104_v38  ;;  %v4810_v47 = vsel %vm792_vm11, %v10451_v19, 0.0 }
0x145e   : > { %8179 = vpow2.f32 %v5111_v11 }
0x145f   : > { %v10454_v1 = vpop.eup %8175 }
0x1460   : > { %v4813_v54 = vsel %vm805_vm6, %v10454_v1, 0.0 }
0x1461   : > { %v5101_v30 = vpop.xlane.xlu1 %5100 }
0x1462   : > { %v5106_v59 = vsub.f32 %v10351_v26, %v5101_v30 }
0x1464   : > { %v5115_v10 = vmul.f32 1.442695, %v5106_v59 }
0x1466   : > { %5466 = vrot.lane.b32.xlu1 %v10080_v55, %s10970_s16 }
0x1469   : > { %v5408_v48 = vpop.xlane.xlu1 %5407 }
0x146a   : > { %v5419_v9 = vsub.f32 %v10358_v8, %v5408_v48 }
0x146f   : > { %5142 = vrot.lane.b32.xlu0 %v10078_v16, %s10977_s21 }
0x1482   : > { %v5092_v45 = vpop.xlane.xlu0 %5091 }
0x1483   : > { %v5103_v28 = vsub.f32 %v10368_v44, %v5092_v45  ;;  %v10459_v44 = vpop.eup %8177 }
0x1484   : > { %v5117_v8 = vsel %vm792_vm11, %v10459_v44, 0.0  ;;  %v10466_v22 = vpop.eup %8179 }
0x1485   : > { %v5109_v60 = vmul.f32 1.442695, %v5103_v28 }
0x1486   : > { %v5098_v33 = vpop.xlane.xlu0 %5097 }
0x1487   : > { %8181 = vpow2.f32 %v5109_v60  ;;  %v5105_v24 = vsub.f32 %v10371_v42, %v5098_v33  ;;  %v5425_v42 = vmul.f32 1.442695, %v5419_v9  ;;  %v5414_v60 = vpop.xlane.xlu1 %5413 }
0x1488   : > { %v5421_v48 = vsub.f32 %v10363_v25, %v5414_v60 }
0x1489   : > { %v5113_v14 = vmul.f32 1.442695, %v5105_v24 }
0x148a   : > { %v5405_v26 = vpop.xlane.xlu0 %5404  ;;  %4811 = vadd.xlane.f32.xlu1 %v4810_v47  ;;  %v5429_v33 = vmul.f32 1.442695, %v5421_v48 }
0x148b   : > { %8183 = vpow2.f32 %v5113_v14  ;;  %v5418_v39 = vsub.f32 %v10376_v23, %v5405_v26  ;;  %v5123_v23 = vsel %vm792_vm11, %v10466_v22, 0.0 }
0x148c   : > { %8185 = vpow2.f32 %v5115_v10 }
0x148d   : > { %v5423_v20 = vmul.f32 1.442695, %v5418_v39 }
0x148e   : > { %5118 = vadd.xlane.f32.xlu0 %v5117_v8  ;;  %v5411_v40 = vpop.xlane.xlu0 %5410  ;;  %4814 = vadd.xlane.f32.xlu1 %v4813_v54 }
0x148f   : > { %8187 = vpow2.f32 %v5423_v20  ;;  %v5420_v63 = vsub.f32 %v10381_v4, %v5411_v40 }
0x1490   : > { %8189 = vpow2.f32 %v5425_v42 }
0x1491   : > { %v5427_v37 = vmul.f32 1.442695, %v5420_v63 }
0x1492   : > { %5124 = vadd.xlane.f32.xlu0 %v5123_v23 }
0x1493   : > { %8191 = vpow2.f32 %v5427_v37 }
0x1494   : > { %v10471_v53 = vpop.eup %8181 }
0x1495   : > { %v5120_v21 = vsel %vm792_vm11, %v10471_v53, 0.0 }
0x1496   : > { %5121 = vadd.xlane.f32.xlu1 %v5120_v21 }
0x1498   : > { %v10475_v15 = vpop.eup %8183 }
0x1499   : > { %v5126_v31 = vsel %vm792_vm11, %v10475_v15, 0.0  ;;  %v10479_v17 = vpop.eup %8185 }
0x149a   : > { %5127 = vadd.xlane.f32.xlu1 %v5126_v31  ;;  %v5129_v11 = vsel %vm805_vm6, %v10479_v17, 0.0 }
0x149c   : > { %v10481_v4 = vpop.eup %8187 }
0x149d   : > { %v5433_v38 = vsel %vm792_vm11, %v10481_v4, 0.0  ;;  %v10487_v30 = vpop.eup %8189 }
0x149e   : > { %5434 = vadd.xlane.f32.xlu0 %v5433_v38  ;;  %5130 = vadd.xlane.f32.xlu1 %v5129_v11  ;;  %v5436_v59 = vsel %vm792_vm11, %v10487_v30, 0.0 }
0x14a0   : > { %v10489_v45 = vpop.eup %8191 }
0x14a1   : > { %v5439_v28 = vsel %vm792_vm11, %v10489_v45, 0.0 }
0x14a2   : > { %5440 = vadd.xlane.f32.xlu0 %v5439_v28  ;;  %5437 = vadd.xlane.f32.xlu1 %v5436_v59 }
0x14b3   : > { %5462 = vrot.lane.b32.xlu1 %v10086_v61, %s10970_s16 }
0x14b7   : > { %5460 = vrot.lane.b32.xlu1 %v10092_v35, %s10970_s16 }
0x14b8   : > { %5464 = vrot.lane.b32.xlu0 %v10074_v56, %s10970_s16 }
0x14bc   : > { %5271 = vrot.lane.b32.xlu0 %v10080_v55, %s10974_s17 }
0x14c6   : > { %v4487_v24 = vpop.xlane.xlu0 %4486 }
0x14c7   : > { %8193 = vrcp.f32 %v4487_v24 }
0x14c8   : > { %8195 = vpow2.f32 %v5429_v33 }
0x14ca   : > { %v4490_v10 = vpop.xlane.xlu1 %4489 }
0x14cb   : > { %8197 = vrcp.f32 %v4490_v10 }
0x14ce   : > { %v4493_v9 = vpop.xlane.xlu0 %4492 }
0x14cf   : > { %8199 = vrcp.f32 %v4493_v9 }
0x14d2   : > { %v4496_v61 = vpop.xlane.xlu1 %4495 }
0x14d3   : > { %8201 = vrcp.f32 %v4496_v61 }
0x14d4   : > { %v8194_v35 = vpop.eup %8193 }
0x14d5   : > { %v4505_v14 = vmul.f32 %v8194_v35, %v10404_v41  ;;  %v10505_v47 = vpop.eup %8195 }
0x14d6   : > { %v4499_v56 = vpop.xlane.xlu0 %4498  ;;  %v5442_v26 = vsel %vm792_vm11, %v10505_v47, 0.0 }
0x14d7   : > { %8203 = vrcp.f32 %v4499_v56  ;;  %7661 = vmatmul.mubr.msk.f32.vlgmr.msra.gmra.mxu0 %vm792_vm11, %v4505_v14 }
0x14d8   : > { %v8198_v55 = vpop.eup %8197  ;;  %7701 = vmatpush3.msk.msra.mxu0 %vm878_vm5, %v10393_v7  ;;  %7663 = vmatprep.mubr.msk.f32.mxu0 %vm8275_vm2, %v8274_v3 }
0x14d9   : > { %7702 = vmatprep.subr.mxu0 %v8274_v3  ;;  %v4506_v25 = vmul.f32 %v8198_v55, %v10409_v5 }
0x14da   : > { %7703 = vmatpush3.msra.mxu0 %v10387_v34  ;;  %v4803_v41 = vpop.xlane.xlu0 %4802 }
0x14db   : > { %7704 = vmatprep.subr.mxu0 %v8274_v3  ;;  %8205 = vrcp.f32 %v4803_v41  ;;  %5443 = vadd.xlane.f32.xlu1 %v5442_v26 }
0x14dc   : > { %v8200_v39 = vpop.eup %8199  ;;  %7705 = vmatpush3.msra.mxu0 %v10264_v51 }
0x14dd   : > { %7664 = vmatmul.mubr.msk.f32.gmra.mxu0 %vm792_vm11, %v4506_v25  ;;  %7706 = vmatprep.subr.mxu0 %v8274_v3  ;;  %v4507_v7 = vmul.f32 %v8200_v39, %v10414_v58 }
0x14de   : > { %7707 = vmatpush3.msra.mxu0 %v10389_v57  ;;  %7666 = vmatprep.mubr.msk.f32.mxu0 %vm8275_vm2, %v8274_v3  ;;  %v4806_v34 = vpop.xlane.xlu1 %4805 }
0x14df   : > { %7708 = vmatprep.subr.mxu0 %v8274_v3  ;;  %8207 = vrcp.f32 %v4806_v34 }
0x14e0   : > { %v8202_v5 = vpop.eup %8201  ;;  %7709 = vmatpush3.msra.mxu0 %v10391_v52 }
0x14e1   : > { %7667 = vmatmul.mubr.msk.f32.gmra.mxu0 %vm792_vm11, %v4507_v7  ;;  %v4508_v51 = vmul.f32 %v8202_v5, %v10419_v27  ;;  %7750 = vmatprep.subr.mxu0 %v8274_v3 }
0x14e2   : > { %v4809_v54 = vpop.xlane.xlu0 %4808  ;;  %7669 = vmatprep.mubr.msk.f32.mxu0 %vm8275_vm2, %v8274_v3 }
0x14e3   : > { %8209 = vrcp.f32 %v4809_v54 }
0x14e4   : > { %v8204_v57 = vpop.eup %8203 }
0x14e5   : > { %7670 = vmatmul.mubr.msk.f32.gmra.mxu0 %vm792_vm11, %v4508_v51  ;;  %v4509_v58 = vmul.f32 %v8204_v57, %v10423_v29 }
0x14e6   : > { %7672 = vmatprep.mubr.msk.f32.mxu0 %vm8275_vm2, %v8274_v3 }
0x14e8   : > { %v8206_v52 = vpop.eup %8205 }
0x14e9   : > { %v4821_v42 = vmul.f32 %v8206_v52, %v10427_v6  ;;  %7673 = vmatmul.mubr.msk.f32.gmra.mxu0 %vm792_vm11, %v4509_v58 }
0x14ea   : > { %7710 = vmatprep.mubr.msk.f32.mxu0 %vm8275_vm2, %v8274_v3 }
0x14ec   : > { %v8208_v27 = vpop.eup %8207  ;;  %5458 = vrot.lane.b32.xlu1 %v10078_v16, %s10970_s16 }
0x14ed   : > { %7711 = vmatmul.mubr.msk.f32.vlgmr.msra.gmra.mxu0 %vm792_vm11, %v4821_v42  ;;  %v4822_v20 = vmul.f32 %v8208_v27, %v10431_v12 }
0x14ee   : > { %7751 = vmatpush3.msk.msra.mxu0 %vm878_vm5, %v10397_v18  ;;  %7713 = vmatprep.mubr.msk.f32.mxu0 %vm8275_vm2, %v8274_v3  ;;  %v5143_v18 = vpop.permute.xlu0 %5142 }
0x14ef   : > { %7752 = vmatprep.subr.mxu0 %v8274_v3 }
0x14f0   : > { %v8210_v29 = vpop.eup %8209  ;;  %7753 = vmatpush3.msra.mxu0 %v10395_v13  ;;  %v5467_v13 = vpop.permute.xlu1 %5466 }
0x14f1   : > { %7754 = vmatprep.subr.mxu0 %v8274_v3  ;;  %7714 = vmatmul.mubr.msk.f32.gmra.mxu0 %vm792_vm11, %v4822_v20  ;;  %v4823_v16 = vmul.f32 %v8210_v29, %v10435_v32 }
0x14f2   : > { %7755 = vmatpush3.msra.mxu0 %v10271_v0  ;;  %7716 = vmatprep.mubr.msk.f32.mxu0 %vm8275_vm2, %v8274_v3 }
0x14f3   : > { %7756 = vmatprep.subr.mxu0 %v8274_v3 }
0x14f4   : > { %7757 = vmatpush3.msra.mxu0 %v10447_v43 }
0x14f5   : > { %7758 = vmatprep.subr.mxu0 %v8274_v3  ;;  %7717 = vmatmul.mubr.msk.f32.gmra.mxu0 %vm792_vm11, %v4823_v16 }
0x14f6   : > { %7759 = vmatpush3.msra.mxu0 %v5143_v18  ;;  %7719 = vmatprep.mubr.msk.f32.mxu0 %vm8275_vm2, %v8274_v3 }
0x14f7   : > { %7800 = vmatprep.subr.mxu0 %v8274_v3 }
0x1513   : > { %v4812_v0 = vpop.xlane.xlu1 %4811 }
0x1514   : > { %8211 = vrcp.f32 %v4812_v0  ;;  %v6547_v0 = vld [vmem:[%s10947_s5 + $0x58] sm:$0xff] }
0x1515   : > { %7826 = vmatpush3.msra.mxu1 %v6547_v0 }
0x1516   : > { %7827 = vmatprep.subr.mxu1 %v8274_v3 }
0x1517   : > { %v4815_v6 = vpop.xlane.xlu1 %4814  ;;  %v5119_v12 = vpop.xlane.xlu0 %5118 }
0x1518   : > { %8213 = vrcp.f32 %v4815_v6  ;;  %v6546_v6 = vld [vmem:[%s10947_s5 + $0x50] sm:$0xff] }
0x1519   : > { %8215 = vrcp.f32 %v5119_v12  ;;  %7828 = vmatpush3.msra.mxu1 %v6546_v6  ;;  %v10692_v6 = vld [vmem:[%s10944_s2 + $0xc] ss:$0 sm:$0xff] }
0x151a   : > { %7829 = vmatprep.subr.mxu1 %v8274_v3 }
0x151b   : > { %v5125_v43 = vpop.xlane.xlu0 %5124 }
0x151f   : > { %v5122_v32 = vpop.xlane.xlu1 %5121 }
0x1520   : > { %8217 = vrcp.f32 %v5122_v32  ;;  %v6545_v32 = vld [vmem:[%s10947_s5 + $0x48] sm:$0xff] }
0x1521   : > { %v8212_v8 = vpop.eup %8211  ;;  %8219 = vrcp.f32 %v5125_v43  ;;  %7830 = vmatpush3.msra.mxu1 %v6545_v32 }
0x1522   : > { %v4824_v40 = vmul.f32 %v8212_v8, %v10451_v19  ;;  %7831 = vmatprep.subr.mxu1 %v8274_v3 }
0x1523   : > { %v5128_v63 = vpop.xlane.xlu1 %5127 }
0x1524   : > { %7720 = vmatmul.mubr.msk.f32.gmra.mxu0 %vm792_vm11, %v4824_v40  ;;  %8221 = vrcp.f32 %v5128_v63 }
0x1525   : > { %7722 = vmatprep.mubr.msk.f32.mxu0 %vm8275_vm2, %v8274_v3  ;;  %v8214_v37 = vpop.eup %8213 }
0x1526   : > { %v4825_v31 = vmul.f32 %v8214_v37, %v10454_v1  ;;  %v8216_v38 = vpop.eup %8215 }
0x1527   : > { %v5435_v23 = vpop.xlane.xlu0 %5434  ;;  %v5131_v21 = vpop.xlane.xlu1 %5130  ;;  %v5137_v19 = vmul.f32 %v8216_v38, %v10459_v44 }
0x1528   : > { %7723 = vmatmul.mubr.msk.f32.gmra.mxu0 %vm792_vm11, %v4825_v31  ;;  %8223 = vrcp.f32 %v5131_v21 }
0x1529   : > { %7760 = vmatprep.mubr.msk.f32.mxu0 %vm8275_vm2, %v8274_v3  ;;  %8225 = vrcp.f32 %v5435_v23 }
0x152b   : > { %v5441_v11 = vpop.xlane.xlu0 %5440  ;;  %v5438_v28 = vpop.xlane.xlu1 %5437 }
0x152c   : > { %7761 = vmatmul.mubr.msk.f32.vlgmr.msra.gmra.mxu0 %vm792_vm11, %v5137_v19  ;;  %8227 = vrcp.f32 %v5438_v28 }
0x152d   : > { %v8218_v59 = vpop.eup %8217  ;;  %7801 = vmatpush3.msk.msra.mxu0 %vm878_vm5, %v5467_v13  ;;  %7763 = vmatprep.mubr.msk.f32.mxu0 %vm8275_vm2, %v8274_v3  ;;  %8229 = vrcp.f32 %v5441_v11 }
0x152e   : > { %v5138_v1 = vmul.f32 %v8218_v59, %v10471_v53  ;;  %7802 = vmatprep.subr.mxu0 %v8274_v3  ;;  %v8220_v33 = vpop.eup %8219  ;;  %v6544_v59 = vld [vmem:[%s10947_s5 + $0x40] sm:$0xff] }
0x152f   : > { %v5465_v60 = vpop.permute.xlu0 %5464  ;;  %v5463_v48 = vpop.permute.xlu1 %5462  ;;  %v5139_v53 = vmul.f32 %v8220_v33, %v10466_v22  ;;  %7832 = vmatpush3.msra.mxu1 %v6544_v59 }
0x1530   : > { %7803 = vmatpush3.msra.mxu0 %v5465_v60  ;;  %7871 = vmatprep.subr.mxu1 %v8274_v3 }
0x1531   : > { %7764 = vmatmul.mubr.msk.f32.gmra.mxu0 %vm792_vm11, %v5138_v1  ;;  %7804 = vmatprep.subr.mxu0 %v8274_v3  ;;  %v8222_v10 = vpop.eup %8221 }
0x1532   : > { %7805 = vmatpush3.msra.mxu0 %v5463_v48  ;;  %7766 = vmatprep.mubr.msk.f32.mxu0 %vm8275_vm2, %v8274_v3  ;;  %v5140_v9 = vmul.f32 %v8222_v10, %v10475_v15 }
0x1533   : > { %v5272_v44 = vpop.permute.xlu0 %5271  ;;  %7806 = vmatprep.subr.mxu0 %v8274_v3  ;;  %v5461_v24 = vpop.permute.xlu1 %5460 }
0x1534   : > { %7798 = vmatmul.mubr.msk.f32.gmra.mxu1 %vm671_vm4, %v5272_v44  ;;  %7807 = vmatpush3.msra.mxu0 %v5461_v24 }
0x1535   : > { %7767 = vmatmul.mubr.msk.f32.gmra.mxu0 %vm792_vm11, %v5139_v53  ;;  %7808 = vmatprep.subr.mxu0 %v8274_v3  ;;  %v8224_v61 = vpop.eup %8223 }
0x1536   : > { %7769 = vmatprep.mubr.msk.f32.mxu0 %vm8275_vm2, %v8274_v3  ;;  %7833 = vmatprep.mubr.msk.f32.mxu1 %vm8275_vm2, %v8274_v3  ;;  %v5141_v22 = vmul.f32 %v8224_v61, %v10479_v17  ;;  %v8226_v14 = vpop.eup %8225 }
0x1537   : > { %v5453_v15 = vmul.f32 %v8226_v14, %v10481_v4 }
0x1539   : > { %7770 = vmatmul.mubr.msk.f32.gmra.mxu0 %vm792_vm11, %v5140_v9  ;;  %v8228_v55 = vpop.eup %8227 }
0x153a   : > { %7772 = vmatprep.mubr.msk.f32.mxu0 %vm8275_vm2, %v8274_v3  ;;  %v5454_v17 = vmul.f32 %v8228_v55, %v10487_v30  ;;  %v8230_v25 = vpop.eup %8229 }
0x153b   : > { %v5455_v4 = vmul.f32 %v8230_v25, %v10489_v45 }
0x153d   : > { %7773 = vmatmul.mubr.msk.f32.gmra.mxu0 %vm792_vm11, %v5141_v22 }
0x153e   : > { %7810 = vmatprep.mubr.msk.f32.mxu0 %vm8275_vm2, %v8274_v3 }
0x1564   : > { %v5444_v35 = vpop.xlane.xlu1 %5443 }
0x1565   : > { %8231 = vrcp.f32 %v5444_v35 }
0x1568   : > { %v5459_v56 = vpop.permute.xlu1 %5458 }
0x1569   : > { %7809 = vmatpush3.msra.mxu0 %v5459_v56 }
0x156a   : > { %7811 = vmatmul.mubr.msk.f32.vlgmr.msra.gmra.mxu0 %vm792_vm11, %v5453_v15  ;;  %7848 = vmatprep.subr.mxu0 %v8274_v3 }
0x156b   : > { %7813 = vmatprep.mubr.msk.f32.mxu0 %vm8275_vm2, %v8274_v3 }
0x156e   : > { %7814 = vmatmul.mubr.msk.f32.gmra.mxu0 %vm792_vm11, %v5454_v17 }
0x156f   : > { %7816 = vmatprep.mubr.msk.f32.mxu0 %vm8275_vm2, %v8274_v3 }
0x1572   : > { %v8232_v41 = vpop.eup %8231  ;;  %7817 = vmatmul.mubr.msk.f32.gmra.mxu0 %vm792_vm11, %v5455_v4 }
0x1573   : > { %7819 = vmatprep.mubr.msk.f32.mxu0 %vm8275_vm2, %v8274_v3  ;;  %v5456_v26 = vmul.f32 %v8232_v41, %v10505_v47 }
0x1576   : > { %7820 = vmatmul.mubr.msk.f32.gmra.mxu0 %vm792_vm11, %v5456_v26 }
0x1577   : > { %7822 = vmatprep.mubr.msk.f32.mxu0 %vm8275_vm2, %v8274_v3 }
0x1597   : > { %v10616_v30 = vpop.f32.mrf.mxu0 }
0x1599   : > { %v7662_v39 = vpop.f32.mrf.mxu0 }
0x159d   : > { %v10618_v7 = vpop.f32.mrf.mxu0 }
0x159f   : > { %v7665_v34 = vpop.f32.mrf.mxu0 }
0x15a1   : > { %v10620_v45 = vpop.f32.mrf.mxu0 }
0x15a3   : > { %v7668_v5 = vpop.f32.mrf.mxu0 }
0x15a5   : > { %v10622_v51 = vpop.f32.mrf.mxu0 }
0x15a7   : > { %v7671_v54 = vpop.f32.mrf.mxu0 }
0x15a9   : > { %v10624_v57 = vpop.f32.mrf.mxu0 }
0x15ab   : > { %v7674_v47 = vpop.f32.mrf.mxu0 }
0x15ad   : > { %v4923_v58 = vpop.f32.mrf.mxu0 }
0x15ae   : > { %5584 = vrot.lane.b32.xlu1 %v4923_v58, %s10971_s12 }
0x15af   : > { %v7712_v52 = vpop.f32.mrf.mxu0 }
0x15b1   : > { %v4928_v42 = vpop.f32.mrf.mxu0 }
0x15b2   : > { %5586 = vrot.lane.b32.xlu0 %v4928_v42, %s10971_s12 }
0x15b3   : > { %v7715_v27 = vpop.f32.mrf.mxu0 }
0x15b5   : > { %v4933_v20 = vpop.f32.mrf.mxu0 }
0x15b6   : > { %5588 = vrot.lane.b32.xlu1 %v4933_v20, %s10971_s12 }
0x15b7   : > { %v7718_v29 = vpop.f32.mrf.mxu0 }
0x15e4   : > { %v4938_v16 = vpop.f32.mrf.mxu0 }
0x15e6   : > { %v7721_v18 = vpop.f32.mrf.mxu0 }
0x15e8   : > { %v10629_v13 = vpop.f32.mrf.mxu0 }
0x15ea   : > { %v7724_v12 = vpop.f32.mrf.mxu0 }
0x15ec   : > { %v5239_v43 = vpop.f32.mrf.mxu0 }
0x15ed   : > { %5604 = vrot.lane.b32.xlu0 %v5239_v43, %s10972_s30 }
0x15ee   : > { %v7762_v8 = vpop.f32.mrf.mxu0 }
0x15f1   : > { %v5244_v40 = vpop.f32.mrf.mxu0 }
0x15f2   : > { %5606 = vrot.lane.b32.xlu1 %v5244_v40, %s10972_s30 }
0x15f3   : > { %v7765_v63 = vpop.f32.mrf.mxu0 }
0x15f4   : > { %v5389_v37 = vpop.f32.mrf.mxu1 }
0x15f5   : > { %v5249_v23 = vpop.f32.mrf.mxu0  ;;  %v5397_v9 = vmul.f32 0.35355338, %v5389_v37 }
0x15f6   : > { %5608 = vrot.lane.b32.xlu0 %v5249_v23, %s10972_s30  ;;  %v7799_v21 = vpop.f32.mrf.mxu1 }
0x15f7   : > { %v7768_v31 = vpop.f32.mrf.mxu0  ;;  %v5402_v61 = vadd.f32 %v5397_v9, %v8672_v36 }
0x15f9   : > { %v5254_v38 = vpop.f32.mrf.mxu0  ;;  %v5415_v22 = vsel %vm805_vm6, %v5402_v61, -inf }
0x15fb   : > { %v7771_v19 = vpop.f32.mrf.mxu0 }
0x15fd   : > { %v10646_v11 = vpop.f32.mrf.mxu0 }
0x15ff   : > { %v7774_v28 = vpop.f32.mrf.mxu0 }
0x1620   : > { %v5585_v35 = vpop.permute.xlu1 %5584 }
0x1621   : > { %v5639_v17 = vsel %vm671_vm4, %v10616_v30, %v5585_v35 }
0x1624   : > { %v5587_v14 = vpop.permute.xlu0 %5586 }
0x1625   : > { %v5640_v36 = vsel %vm671_vm4, %v10618_v7, %v5587_v14 }
0x1628   : > { %v5589_v15 = vpop.permute.xlu1 %5588 }
0x1629   : > { %v5641_v54 = vsel %vm671_vm4, %v10620_v45, %v5589_v15 }
0x162a   : > { %v5555_v1 = vpop.f32.mrf.mxu0 }
0x162b   : > { %5624 = vrot.lane.b32.xlu1 %v5555_v1, %s10973_s28 }
0x162c   : > { %v7812_v60 = vpop.f32.mrf.mxu0 }
0x162e   : > { %v5560_v48 = vpop.f32.mrf.mxu0 }
0x162f   : > { %5610 = vrot.lane.b32.xlu1 %v5254_v38, %s10972_s30  ;;  %5626 = vrot.lane.b32.xlu0 %v5560_v48, %s10973_s28 }
0x1630   : > { %v7815_v33 = vpop.f32.mrf.mxu0 }
0x1632   : > { %v5565_v44 = vpop.f32.mrf.mxu0 }
0x1633   : > { %5590 = vrot.lane.b32.xlu0 %v4938_v16, %s10971_s12  ;;  %5628 = vrot.lane.b32.xlu1 %v5565_v44, %s10973_s28 }
0x1634   : > { %v7818_v24 = vpop.f32.mrf.mxu0 }
0x1636   : > { %v5570_v53 = vpop.f32.mrf.mxu0 }
0x1637   : > { %5630 = vrot.lane.b32.xlu0 %v5570_v53, %s10973_s28 }
0x1638   : > { %v7821_v10 = vpop.f32.mrf.mxu0 }
0x1657   : > { %5416 = vmax.xlane.f32.xlu1 %v5415_v22 }
0x165f   : > { %v5605_v56 = vpop.permute.xlu0 %5604 }
0x1660   : > { %v5644_v25 = vsel %vm1984_vm7, %v5639_v17, %v5605_v56 }
0x1664   : > { %v5607_v55 = vpop.permute.xlu1 %5606 }
0x1665   : > { %v5645_v39 = vsel %vm1984_vm7, %v5640_v36, %v5607_v55 }
0x1668   : > { %v5609_v4 = vpop.permute.xlu0 %5608 }
0x1669   : > { %v5646_v47 = vsel %vm1984_vm7, %v5641_v54, %v5609_v4  ;;  %v6628_v54 = vld [vmem:[%s10948_s6 + $0x30] sm:$0xff] }
0x169d   : > { %v5625_v41 = vpop.permute.xlu1 %5624 }
0x169e   : > { %v5649_v26 = vsel %vm1990_vm8, %v5644_v25, %v5625_v41 }
0x169f   : > { %7834 = vmatmul.mubr.msk.f32.vlgmr.msra.gmra.mxu1 %vm550_vm3, %v5649_v26 }
0x16a0   : > { %7836 = vmatprep.mubr.msk.f32.mxu1 %vm8275_vm2, %v8274_v3 }
0x16a1   : > { %v5611_v34 = vpop.permute.xlu1 %5610  ;;  %v5627_v5 = vpop.permute.xlu0 %5626 }
0x16a2   : > { %v5650_v30 = vsel %vm1990_vm8, %v5645_v39, %v5627_v5 }
0x16a3   : > { %7837 = vmatmul.mubr.msk.f32.gmra.mxu1 %vm550_vm3, %v5650_v30  ;;  %v6629_v30 = vld [vmem:[%s10948_s6 + $0x38] sm:$0xff] }
0x16a4   : > { %7839 = vmatprep.mubr.msk.f32.mxu1 %vm8275_vm2, %v8274_v3  ;;  %7849 = vmatpush3.msra.mxu0 %v6629_v30  ;;  %v6636_v30 = vld [vmem:[%s10950_s8 + $0x80] sm:$0xff] }
0x16a5   : > { %v5591_v7 = vpop.permute.xlu0 %5590  ;;  %v5629_v58 = vpop.permute.xlu1 %5628  ;;  %7850 = vmatprep.subr.mxu0 %v8274_v3 }
0x16a6   : > { %v5642_v52 = vsel %vm671_vm4, %v10622_v51, %v5591_v7  ;;  %v5651_v42 = vsel %vm1990_vm8, %v5646_v47, %v5629_v58  ;;  %7851 = vmatpush3.msra.mxu0 %v6628_v54  ;;  %v6651_v47 = vld [vmem:[%s10950_s8 + $0xf8] sm:$0xff]  ;;  %v6650_v7 = vld [vmem:[%s10950_s8 + $0xf0] sm:$0xff]  ;;  %v6649_v58 = vld [vmem:[%s10950_s8 + $0xe8] sm:$0xff] }
0x16a7   : > { %7840 = vmatmul.mubr.msk.f32.gmra.mxu1 %vm550_vm3, %v5651_v42  ;;  %v5647_v27 = vsel %vm1984_vm7, %v5642_v52, %v5611_v34  ;;  %7852 = vmatprep.subr.mxu0 %v8274_v3  ;;  %v6648_v52 = vld [vmem:[%s10950_s8 + $0xe0] sm:$0xff] }
0x16a8   : > { %7842 = vmatprep.mubr.msk.f32.mxu1 %vm8275_vm2, %v8274_v3  ;;  %7872 = vmatpush3.msra.mxu1 %v6651_v47  ;;  %v10872_v54 = vld [vmem:[%s10949_s7 + $0x1] ss:$0 sm:$0xff] }
0x16a9   : > { %v5631_v45 = vpop.permute.xlu0 %5630  ;;  %7873 = vmatprep.subr.mxu1 %v8274_v3 }
0x16aa   : > { %v5652_v20 = vsel %vm1990_vm8, %v5647_v27, %v5631_v45  ;;  %7874 = vmatpush3.msra.mxu1 %v6650_v7 }
0x16ab   : > { %7843 = vmatmul.mubr.msk.f32.gmra.mxu1 %vm550_vm3, %v5652_v20  ;;  %7875 = vmatprep.subr.mxu1 %v8274_v3 }
0x16ac   : > { %7845 = vmatprep.mubr.msk.f32.mxu1 %vm8275_vm2, %v8274_v3  ;;  %7876 = vmatpush3.msra.mxu1 %v6649_v58 }
0x16ad   : > { %7877 = vmatprep.subr.mxu1 %v8274_v3 }
0x16ae   : > { %7878 = vmatpush3.msra.mxu1 %v6648_v52 }
0x16af   : > { %7879 = vmatprep.subr.mxu1 %v8274_v3 }
0x16e0   : > { %v5417_v29 = vpop.xlane.xlu1 %5416 }
0x16e1   : > { %v5422_v16 = vsub.f32 %v5402_v61, %v5417_v29 }
0x16e3   : > { %v5431_v51 = vmul.f32 1.442695, %v5422_v16 }
0x16e5   : > { %8233 = vpow2.f32 %v5431_v51 }
0x16f2   : > { %v8234_v18 = vpop.eup %8233 }
0x16f3   : > { %v5445_v0 = vsel %vm805_vm6, %v8234_v18, 0.0 }
0x16f4   : > { %5446 = vadd.xlane.f32.xlu0 %v5445_v0 }
0x175f   : > { %v5739_v12 = vpop.f32.mrf.mxu1 }
0x1760   : > { %v5740_v32 = vadd.f32 %v10692_v6, %v5739_v12 }
0x1761   : > { %v7835_v43 = vpop.f32.mrf.mxu1 }
0x1762   : > { %v10696_v8 = vadd.f32 %v5740_v32, %v9985_v2 }
0x1763   : > { %v5744_v40 = vpop.f32.mrf.mxu1 }
0x1764   : > { %v5745_v63 = vadd.f32 %v10692_v6, %v5744_v40  ;;  %v5768_v37 = vsel %vm550_vm3, %v10696_v8, 0.0 }
0x1765   : > { %v7838_v23 = vpop.f32.mrf.mxu1  ;;  %5769 = vadd.xlane.f32.xlu0 %v5768_v37 }
0x1766   : > { %v10702_v21 = vadd.f32 %v5745_v63, %v9990_v62  ;;  %v10784_v23 = vld [vmem:[%s10944_s2 + $0xd] ss:$0 sm:$0xff] }
0x1767   : > { %v5749_v31 = vpop.f32.mrf.mxu1 }
0x1768   : > { %v5750_v38 = vadd.f32 %v10692_v6, %v5749_v31  ;;  %v5771_v19 = vsel %vm550_vm3, %v10702_v21, 0.0 }
0x1769   : > { %5772 = vadd.xlane.f32.xlu1 %v5771_v19  ;;  %v7841_v2 = vpop.f32.mrf.mxu1 }
0x176a   : > { %v10708_v28 = vadd.f32 %v5750_v38, %v9995_v49  ;;  %v10790_v38 = vld [vmem:[%s10944_s2 + $0xe] ss:$0 sm:$0xff] }
0x176b   : > { %v5754_v59 = vpop.f32.mrf.mxu1 }
0x176c   : > { %v5755_v1 = vadd.f32 %v10692_v6, %v5754_v59  ;;  %v5774_v60 = vsel %vm550_vm3, %v10708_v28, 0.0 }
0x176d   : > { %5775 = vadd.xlane.f32.xlu0 %v5774_v60  ;;  %v7844_v62 = vpop.f32.mrf.mxu1 }
0x176e   : > { %v10714_v48 = vadd.f32 %v5755_v1, %v10000_v46 }
0x1770   : > { %v5777_v33 = vsel %vm550_vm3, %v10714_v48, 0.0 }
0x1771   : > { %5778 = vadd.xlane.f32.xlu1 %v5777_v33 }
0x177d   : > { %v5447_v44 = vpop.xlane.xlu0 %5446 }
0x177e   : > { %8235 = vrcp.f32 %v5447_v44 }
0x178b   : > { %v8236_v24 = vpop.eup %8235 }
0x178c   : > { %v5457_v49 = vmul.f32 %v8236_v24, %v8234_v18 }
0x178e   : > { %7823 = vmatmul.mubr.msk.f32.gmra.mxu0 %vm792_vm11, %v5457_v49 }
0x178f   : > { %7856 = vmatprep.mubr.msk.f32.mxu0 %vm8275_vm2, %v8274_v3 }
0x17ee   : > { %v5770_v53 = vpop.xlane.xlu0 %5769 }
0x17ef   : > { %v5783_v10 = vmul.f32 0.03125, %v5770_v53 }
0x17f1   : > { %v10722_v9 = vsub.f32 %v10696_v8, %v5783_v10 }
0x17f2   : > { %v5773_v46 = vpop.xlane.xlu1 %5772 }
0x17f3   : > { %v5784_v61 = vmul.f32 0.03125, %v5773_v46  ;;  %v5793_v22 = vmul.f32 %v10722_v9, %v10722_v9 }
0x17f5   : > { %v10727_v35 = vsub.f32 %v10702_v21, %v5784_v61  ;;  %v5798_v14 = vsel %vm550_vm3, %v5793_v22, 0.0 }
0x17f6   : > { %5799 = vadd.xlane.f32.xlu0 %v5798_v14  ;;  %v5776_v15 = vpop.xlane.xlu0 %5775 }
0x17f7   : > { %v5785_v56 = vmul.f32 0.03125, %v5776_v15  ;;  %v5794_v55 = vmul.f32 %v10727_v35, %v10727_v35 }
0x17f9   : > { %v10733_v17 = vsub.f32 %v10708_v28, %v5785_v56  ;;  %v5801_v25 = vsel %vm550_vm3, %v5794_v55, 0.0  ;;  %v6647_v55 = vld [vmem:[%s10950_s8 + $0xd8] sm:$0xff] }
0x17fa   : > { %5802 = vadd.xlane.f32.xlu1 %v5801_v25  ;;  %v5779_v4 = vpop.xlane.xlu1 %5778  ;;  %7880 = vmatpush3.msra.mxu1 %v6647_v55  ;;  %v6644_v25 = vld [vmem:[%s10950_s8 + $0xc0] sm:$0xff] }
0x17fb   : > { %v5786_v41 = vmul.f32 0.03125, %v5779_v4  ;;  %v5795_v26 = vmul.f32 %v10733_v17, %v10733_v17  ;;  %7881 = vmatprep.subr.mxu1 %v8274_v3  ;;  %v6643_v4 = vld [vmem:[%s10950_s8 + $0xb8] sm:$0xff] }
0x17fd   : > { %v10739_v36 = vsub.f32 %v10714_v48, %v5786_v41  ;;  %v5804_v39 = vsel %vm550_vm3, %v5795_v26, 0.0  ;;  %v6642_v41 = vld [vmem:[%s10950_s8 + $0xb0] sm:$0xff]  ;;  %v6641_v26 = vld [vmem:[%s10950_s8 + $0xa8] sm:$0xff] }
0x17fe   : > { %5805 = vadd.xlane.f32.xlu0 %v5804_v39  ;;  %v6639_v39 = vld [vmem:[%s10950_s8 + $0x98] sm:$0xff] }
0x17ff   : > { %v5796_v34 = vmul.f32 %v10739_v36, %v10739_v36 }
0x1801   : > { %v5807_v5 = vsel %vm550_vm3, %v5796_v34, 0.0  ;;  %v6638_v34 = vld [vmem:[%s10950_s8 + $0x90] sm:$0xff] }
0x1802   : > { %5808 = vadd.xlane.f32.xlu1 %v5807_v5  ;;  %v6637_v5 = vld [vmem:[%s10950_s8 + $0x88] sm:$0xff] }
0x1813   : > { %5612 = vrot.lane.b32.xlu1 %v10646_v11, %s10972_s30  ;;  %v6627_v11 = vld [vmem:[%s10948_s6 + $0x28] sm:$0xff] }
0x1814   : > { %5592 = vrot.lane.b32.xlu0 %v10629_v13, %s10971_s12  ;;  %7853 = vmatpush3.msra.mxu0 %v6627_v11  ;;  %v6626_v13 = vld [vmem:[%s10948_s6 + $0x20] sm:$0xff]  ;;  %s10978_s12 = sshll.u32 %s10980_s19, 3 }
0x1815   : > { %7854 = vmatprep.subr.mxu0 %v8274_v3  ;;  %s361_s29 = scalar_lea.vmem %s10952_s10, %s10978_s12 }
0x1816   : > { %7855 = vmatpush3.msra.mxu0 %v6626_v13 }
0x184e   : > { %v5575_v42 = vpop.f32.mrf.mxu0 }
0x184f   : > { %5632 = vrot.lane.b32.xlu1 %v5575_v42, %s10973_s28 }
0x1850   : > { %v7824_v27 = vpop.f32.mrf.mxu0 }
0x187f   : > { %v5800_v45 = vpop.xlane.xlu0 %5799 }
0x1880   : > { %v5813_v20 = vmul.f32 0.03125, %v5800_v45 }
0x1882   : > { %v5818_v29 = vadd.f32 1e-05, %v5813_v20 }
0x1883   : > { %v5803_v16 = vpop.xlane.xlu1 %5802 }
0x1884   : > { %8237 = vrsqrt.f32 %v5818_v29  ;;  %v5814_v51 = vmul.f32 0.03125, %v5803_v16 }
0x1886   : > { %v5819_v18 = vadd.f32 1e-05, %v5814_v51 }
0x1887   : > { %v5806_v0 = vpop.xlane.xlu0 %5805 }
0x1888   : > { %8239 = vrsqrt.f32 %v5819_v18  ;;  %v5815_v12 = vmul.f32 0.03125, %v5806_v0 }
0x188a   : > { %v5820_v32 = vadd.f32 1e-05, %v5815_v12 }
0x188b   : > { %v5809_v43 = vpop.xlane.xlu1 %5808  ;;  %v5593_v61 = vpop.permute.xlu0 %5592 }
0x188c   : > { %8241 = vrsqrt.f32 %v5820_v32  ;;  %v5816_v40 = vmul.f32 0.03125, %v5809_v43 }
0x188e   : > { %v5821_v63 = vadd.f32 1e-05, %v5816_v40 }
0x188f   : > { %v5613_v22 = vpop.permute.xlu1 %5612 }
0x1890   : > { %8243 = vrsqrt.f32 %v5821_v63 }
0x1891   : > { %v8238_v37 = vpop.eup %8237 }
0x1892   : > { %v5828_v31 = vmul.f32 %v8238_v37, %v10722_v9 }
0x1894   : > { %v5837_v19 = vmul.f32 %v10784_v23, %v5828_v31 }
0x1895   : > { %v8240_v2 = vpop.eup %8239 }
0x1896   : > { %v5846_v59 = vadd.f32 %v10790_v38, %v5837_v19  ;;  %v5829_v1 = vmul.f32 %v8240_v2, %v10727_v35  ;;  %v5643_v35 = vsel %vm671_vm4, %v10624_v57, %v5593_v61  ;;  %v6646_v57 = vld [vmem:[%s10950_s8 + $0xd0] sm:$0xff] }
0x1897   : > { %v5648_v14 = vsel %vm1984_vm7, %v5643_v35, %v5613_v22  ;;  %7882 = vmatpush3.msra.mxu1 %v6646_v57 }
0x1898   : > { %7857 = vmatmul.mubr.msk.f32.vlgmr.msra.gmra.mxu0 %vm550_vm3, %v5846_v59  ;;  %v5838_v60 = vmul.f32 %v10784_v23, %v5829_v1  ;;  %7883 = vmatprep.subr.mxu1 %v8274_v3 }
0x1899   : > { %v8242_v62 = vpop.eup %8241  ;;  %7859 = vmatprep.mubr.msk.f32.mxu0 %vm8275_vm2, %v8274_v3 }
0x189a   : > { %v5830_v33 = vmul.f32 %v8242_v62, %v10733_v17  ;;  %v5847_v44 = vadd.f32 %v10790_v38, %v5838_v60  ;;  %v6645_v17 = vld [vmem:[%s10950_s8 + $0xc8] sm:$0xff] }
0x189b   : > { %7884 = vmatpush3.msra.mxu1 %v6645_v17 }
0x189c   : > { %7860 = vmatmul.mubr.msk.f32.gmra.mxu0 %vm550_vm3, %v5847_v44  ;;  %v5839_v24 = vmul.f32 %v10784_v23, %v5830_v33  ;;  %7885 = vmatprep.subr.mxu1 %v8274_v3 }
0x189d   : > { %v8244_v49 = vpop.eup %8243  ;;  %7862 = vmatprep.mubr.msk.f32.mxu0 %vm8275_vm2, %v8274_v3  ;;  %7886 = vmatpush3.msra.mxu1 %v6644_v25 }
0x189e   : > { %v5831_v53 = vmul.f32 %v8244_v49, %v10739_v36  ;;  %v5848_v10 = vadd.f32 %v10790_v38, %v5839_v24  ;;  %7887 = vmatprep.subr.mxu1 %v8274_v3  ;;  %v6640_v36 = vld [vmem:[%s10950_s8 + $0xa0] sm:$0xff] }
0x189f   : > { %7888 = vmatpush3.msra.mxu1 %v6643_v4 }
0x18a0   : > { %7863 = vmatmul.mubr.msk.f32.gmra.mxu0 %vm550_vm3, %v5848_v10  ;;  %v5840_v9 = vmul.f32 %v10784_v23, %v5831_v53  ;;  %7889 = vmatprep.subr.mxu1 %v8274_v3 }
0x18a1   : > { %7865 = vmatprep.mubr.msk.f32.mxu0 %vm8275_vm2, %v8274_v3  ;;  %7890 = vmatpush3.msra.mxu1 %v6642_v41 }
0x18a2   : > { %v5849_v46 = vadd.f32 %v10790_v38, %v5840_v9  ;;  %7891 = vmatprep.subr.mxu1 %v8274_v3 }
0x18a3   : > { %7892 = vmatpush3.msra.mxu1 %v6641_v26 }
0x18a4   : > { %7866 = vmatmul.mubr.msk.f32.gmra.mxu0 %vm550_vm3, %v5849_v46  ;;  %7893 = vmatprep.subr.mxu1 %v8274_v3 }
0x18a5   : > { %7868 = vmatprep.mubr.msk.f32.mxu0 %vm8275_vm2, %v8274_v3  ;;  %7894 = vmatpush3.msra.mxu1 %v6640_v36 }
0x18a6   : > { %7895 = vmatprep.subr.mxu1 %v8274_v3 }
0x18a7   : > { %7896 = vmatpush3.msra.mxu1 %v6639_v39 }
0x18a8   : > { %7897 = vmatprep.subr.mxu1 %v8274_v3 }
0x18a9   : > { %7898 = vmatpush3.msra.mxu1 %v6638_v34 }
0x18aa   : > { %7899 = vmatprep.subr.mxu1 %v8274_v3 }
0x18ab   : > { %7900 = vmatpush3.msra.mxu1 %v6637_v5 }
0x18ac   : > { %7901 = vmatprep.subr.mxu1 %v8274_v3 }
0x18ad   : > { %7902 = vmatpush3.msra.mxu1 %v6636_v30 }
0x18c1   : > { %v5633_v15 = vpop.permute.xlu1 %5632 }
0x18c2   : > { %v5653_v56 = vsel %vm1990_vm8, %v5648_v14, %v5633_v15 }
0x18c3   : > { %7846 = vmatmul.mubr.msk.f32.gmra.mxu1 %vm550_vm3, %v5653_v56 }
0x18c4   : > { %7903 = vmatprep.mubr.msk.f32.mxu1 %vm8275_vm2, %v8274_v3 }
0x1958   : > { %v5942_v11 = vpop.f32.mrf.mxu0 }
0x1959   : > { %v5943_v13 = vadd.f32 %v10872_v54, %v5942_v11 }
0x195a   : > { %v7858_v47 = vpop.f32.mrf.mxu0 }
0x195b   : > { %v5971_v7 = vmul.f32 0.70710677, %v5943_v13  ;;  %v5966_v43 = vmul.f32 0.5, %v5943_v13 }
0x195c   : > { %v5947_v58 = vpop.f32.mrf.mxu0 }
0x195d   : > { %8245 = verf.f32 %v5971_v7  ;;  %v5948_v52 = vadd.f32 %v10872_v54, %v5947_v58 }
0x195e   : > { %v7861_v42 = vpop.f32.mrf.mxu0 }
0x195f   : > { %v5972_v27 = vmul.f32 0.70710677, %v5948_v52  ;;  %v5967_v31 = vmul.f32 0.5, %v5948_v52 }
0x1960   : > { %v5952_v45 = vpop.f32.mrf.mxu0 }
0x1961   : > { %8247 = verf.f32 %v5972_v27  ;;  %v5953_v20 = vadd.f32 %v10872_v54, %v5952_v45 }
0x1962   : > { %v7864_v29 = vpop.f32.mrf.mxu0 }
0x1963   : > { %v5973_v16 = vmul.f32 0.70710677, %v5953_v20  ;;  %v5968_v1 = vmul.f32 0.5, %v5953_v20 }
0x1964   : > { %v5957_v51 = vpop.f32.mrf.mxu0 }
0x1965   : > { %8249 = verf.f32 %v5973_v16  ;;  %v5958_v18 = vadd.f32 %v10872_v54, %v5957_v51 }
0x1966   : > { %v7867_v0 = vpop.f32.mrf.mxu0 }
0x1967   : > { %v5974_v12 = vmul.f32 0.70710677, %v5958_v18  ;;  %v5969_v44 = vmul.f32 0.5, %v5958_v18 }
0x1969   : > { %8251 = verf.f32 %v5974_v12 }
0x196a   : > { %v8246_v32 = vpop.eup %8245 }
0x196b   : > { %v5981_v40 = vadd.f32 1.0, %v8246_v32 }
0x196d   : > { %v5986_v63 = vmul.f32 %v5981_v40, %v5966_v43 }
0x196e   : > { %v8248_v37 = vpop.eup %8247 }
0x196f   : > { %v5982_v19 = vadd.f32 1.0, %v8248_v37  ;;  %7904 = vmatmul.mubr.f32.vlgmr.msra.gmra.mxu1 %v5986_v63 }
0x1970   : > { %7906 = vmatprep.mubr.msk.f32.mxu1 %vm8275_vm2, %v8274_v3 }
0x1971   : > { %v5987_v2 = vmul.f32 %v5982_v19, %v5967_v31 }
0x1972   : > { %v8250_v59 = vpop.eup %8249 }
0x1973   : > { %v5983_v60 = vadd.f32 1.0, %v8250_v59  ;;  %7907 = vmatmul.mubr.f32.gmra.mxu1 %v5987_v2 }
0x1974   : > { %7909 = vmatprep.mubr.msk.f32.mxu1 %vm8275_vm2, %v8274_v3 }
0x1975   : > { %v5988_v62 = vmul.f32 %v5983_v60, %v5968_v1 }
0x1976   : > { %v8252_v33 = vpop.eup %8251 }
0x1977   : > { %v5984_v24 = vadd.f32 1.0, %v8252_v33  ;;  %7910 = vmatmul.mubr.f32.gmra.mxu1 %v5988_v62  ;;  %v6182_v62 = vld [vmem:[%s10951_s9 + $0x18] sm:$0xff]  ;;  %v6181_v33 = vld [vmem:[%s10951_s9 + $0x10] sm:$0xff] }
0x1978   : > { %7912 = vmatprep.mubr.msk.f32.mxu1 %vm8275_vm2, %v8274_v3  ;;  %7918 = vmatprep.subr.mxu0 %v6182_v62 }
0x1979   : > { %v5989_v49 = vmul.f32 %v5984_v24, %v5969_v44  ;;  %7919 = vmatpush3.msra.mxu0 %v6182_v62  ;;  %v6180_v44 = vld [vmem:[%s10951_s9 + $0x8] sm:$0xff]  ;;  %v6179_v24 = vld [vmem:[%s10951_s9] sm:$0xff] }
0x197a   : > { %7920 = vmatprep.subr.mxu0 %v6181_v33 }
0x197b   : > { %7913 = vmatmul.mubr.f32.gmra.mxu1 %v5989_v49  ;;  %7921 = vmatpush3.msra.mxu0 %v6181_v33 }
0x197c   : > { %7915 = vmatprep.mubr.msk.f32.mxu1 %vm8275_vm2, %v8274_v3  ;;  %v6652_v3 = vld [vmem:[%s10944_s2 + $0xf] ss:$0 sm:$0xff]  ;;  %7922 = vmatprep.subr.mxu0 %v6180_v44  ;;  %vm6285_vm2 = vcmask 23552  }
0x197d   : > { %7923 = vmatpush3.msra.mxu0 %v6180_v44 }
0x197e   : > { %7924 = vmatprep.subr.mxu0 %v6179_v24 }
0x197f   : > { %7925 = vmatpush3.msra.mxu0 %v6179_v24 }
0x1983   : > { %v5759_v53 = vpop.f32.mrf.mxu1 }
0x1984   : > { %v5760_v10 = vadd.f32 %v10692_v6, %v5759_v53 }
0x1985   : > { %v7847_v9 = vpop.f32.mrf.mxu1 }
0x1986   : > { %v5767_v46 = vadd.f32 %v5760_v10, %v10005_v50 }
0x1988   : > { %v5780_v61 = vsel %vm2128_vm9, %v5767_v46, 0.0 }
0x1989   : > { %5781 = vadd.xlane.f32.xlu0 %v5780_v61 }
0x1a12   : > { %v5782_v22 = vpop.xlane.xlu0 %5781 }
0x1a13   : > { %v5787_v35 = vmul.f32 0.03125, %v5782_v22 }
0x1a15   : > { %v5792_v14 = vsub.f32 %v5767_v46, %v5787_v35 }
0x1a17   : > { %v5797_v15 = vmul.f32 %v5792_v14, %v5792_v14 }
0x1a19   : > { %v5810_v56 = vsel %vm2128_vm9, %v5797_v15, 0.0 }
0x1a1a   : > { %5811 = vadd.xlane.f32.xlu1 %v5810_v56 }
0x1a2f   : > { %v6074_v55 = vpop.f32.mrf.mxu1 }
0x1a30   : > { %v6097_v6 = vadd.f32 %v6074_v55, %v10696_v8 }
0x1a31   : > { %v7905_v57 = vpop.f32.mrf.mxu1 }
0x1a32   : > { %v6105_v17 = vadd.f32 %v6652_v3, %v6097_v6  ;;  %v6653_v6 = vld [vmem:[%s10944_s2 + $0x2] ss:$0 sm:$0xff] }
0x1a33   : > { %v6079_v50 = vpop.f32.mrf.mxu1 }
0x1a34   : > { %v6098_v25 = vadd.f32 %v6079_v50, %v10702_v21  ;;  %v6111_v4 = vsel %vm550_vm3, %v6105_v17, 0.0 }
0x1a35   : > { %6112 = vadd.xlane.f32.xlu0 %v6111_v4  ;;  %v7908_v41 = vpop.f32.mrf.mxu1 }
0x1a36   : > { %v6106_v26 = vadd.f32 %v6652_v3, %v6098_v25 }
0x1a37   : > { %v6084_v36 = vpop.f32.mrf.mxu1 }
0x1a38   : > { %v6099_v39 = vadd.f32 %v6084_v36, %v10708_v28  ;;  %v6114_v34 = vsel %vm550_vm3, %v6106_v26, 0.0 }
0x1a39   : > { %6115 = vadd.xlane.f32.xlu0 %v6114_v34  ;;  %v7911_v5 = vpop.f32.mrf.mxu1 }
0x1a3a   : > { %v6107_v30 = vadd.f32 %v6652_v3, %v6099_v39 }
0x1a3b   : > { %v6089_v11 = vpop.f32.mrf.mxu1 }
0x1a3c   : > { %v6100_v8 = vadd.f32 %v6089_v11, %v10714_v48  ;;  %v6117_v13 = vsel %vm550_vm3, %v6107_v30, 0.0 }
0x1a3d   : > { %6118 = vadd.xlane.f32.xlu1 %v6117_v13  ;;  %v7914_v21 = vpop.f32.mrf.mxu1 }
0x1a3e   : > { %v6108_v47 = vadd.f32 %v6652_v3, %v6100_v8 }
0x1a40   : > { %v6120_v7 = vsel %vm550_vm3, %v6108_v47, 0.0 }
0x1a41   : > { %6121 = vadd.xlane.f32.xlu0 %v6120_v7 }
0x1aa3   : > { %v5812_v58 = vpop.xlane.xlu1 %5811 }
0x1aa4   : > { %v5817_v52 = vmul.f32 0.03125, %v5812_v58 }
0x1aa6   : > { %v5822_v42 = vadd.f32 1e-05, %v5817_v52 }
0x1aa8   : > { %8253 = vrsqrt.f32 %v5822_v42 }
0x1ab5   : > { %v8254_v28 = vpop.eup %8253 }
0x1ab6   : > { %v5832_v27 = vmul.f32 %v8254_v28, %v5792_v14 }
0x1ab8   : > { %v5841_v45 = vmul.f32 %v10784_v23, %v5832_v27 }
0x1aba   : > { %v5850_v20 = vadd.f32 %v10790_v38, %v5841_v45 }
0x1abc   : > { %7869 = vmatmul.mubr.msk.f32.gmra.mxu0 %vm550_vm3, %v5850_v20 }
0x1abe   : > { %v6113_v48 = vpop.xlane.xlu0 %6112 }
0x1abf   : > { %v6123_v29 = vmul.f32 0.03125, %v6113_v48  ;;  %v6655_v48 = vld [vmem:[%s10951_s9 + $0x20] ss:$0 sm:$0xff] }
0x1ac1   : > { %v6127_v16 = vsub.f32 %v6105_v17, %v6123_v29  ;;  %v6654_v17 = vld [vmem:[%s10944_s2 + $0x3] ss:$0 sm:$0xff] }
0x1ac2   : > { %v6116_v51 = vpop.xlane.xlu0 %6115 }
0x1ac3   : > { %v6124_v18 = vmul.f32 0.03125, %v6116_v51  ;;  %v6131_v0 = vmul.f32 %v6127_v16, %v6127_v16 }
0x1ac5   : > { %v6128_v12 = vsub.f32 %v6106_v26, %v6124_v18  ;;  %v6135_v32 = vsel %vm550_vm3, %v6131_v0, 0.0 }
0x1ac6   : > { %6136 = vadd.xlane.f32.xlu1 %v6135_v32  ;;  %v6119_v43 = vpop.xlane.xlu1 %6118 }
0x1ac7   : > { %v6125_v40 = vmul.f32 0.03125, %v6119_v43  ;;  %v6132_v63 = vmul.f32 %v6128_v12, %v6128_v12 }
0x1ac9   : > { %v6129_v37 = vsub.f32 %v6107_v30, %v6125_v40  ;;  %v6138_v23 = vsel %vm550_vm3, %v6132_v63, 0.0 }
0x1aca   : > { %6139 = vadd.xlane.f32.xlu0 %v6138_v23  ;;  %v6122_v38 = vpop.xlane.xlu0 %6121 }
0x1acb   : > { %v6126_v31 = vmul.f32 0.03125, %v6122_v38  ;;  %v6133_v19 = vmul.f32 %v6129_v37, %v6129_v37 }
0x1acd   : > { %v6130_v2 = vsub.f32 %v6108_v47, %v6126_v31  ;;  %v6141_v59 = vsel %vm550_vm3, %v6133_v19, 0.0 }
0x1ace   : > { %6142 = vadd.xlane.f32.xlu1 %v6141_v59 }
0x1acf   : > { %v6134_v1 = vmul.f32 %v6130_v2, %v6130_v2 }
0x1ad1   : > { %v6144_v60 = vsel %vm550_vm3, %v6134_v1, 0.0 }
0x1ad2   : > { %6145 = vadd.xlane.f32.xlu0 %v6144_v60 }
0x1b4f   : > { %v6137_v49 = vpop.xlane.xlu1 %6136 }
0x1b50   : > { %v6147_v53 = vmul.f32 0.03125, %v6137_v49 }
0x1b52   : > { %v6151_v10 = vadd.f32 1e-05, %v6147_v53 }
0x1b53   : > { %v6140_v9 = vpop.xlane.xlu0 %6139 }
0x1b54   : > { %8255 = vrsqrt.f32 %v6151_v10  ;;  %v6148_v46 = vmul.f32 0.03125, %v6140_v9 }
0x1b56   : > { %v6152_v61 = vadd.f32 1e-05, %v6148_v46 }
0x1b57   : > { %v6143_v22 = vpop.xlane.xlu1 %6142 }
0x1b58   : > { %8257 = vrsqrt.f32 %v6152_v61  ;;  %v6149_v35 = vmul.f32 0.03125, %v6143_v22 }
0x1b5a   : > { %v6153_v14 = vadd.f32 1e-05, %v6149_v35 }
0x1b5b   : > { %v6146_v15 = vpop.xlane.xlu0 %6145 }
0x1b5c   : > { %8259 = vrsqrt.f32 %v6153_v14  ;;  %v6150_v56 = vmul.f32 0.03125, %v6146_v15 }
0x1b5e   : > { %v6154_v3 = vadd.f32 1e-05, %v6150_v56 }
0x1b60   : > { %8261 = vrsqrt.f32 %v6154_v3 }
0x1b61   : > { %v8256_v55 = vpop.eup %8255 }
0x1b62   : > { %v6159_v57 = vmul.f32 %v8256_v55, %v6127_v16 }
0x1b64   : > { %v6167_v50 = vmul.f32 %v6653_v6, %v6159_v57 }
0x1b65   : > { %v8258_v25 = vpop.eup %8257 }
0x1b66   : > { %v6160_v4 = vmul.f32 %v8258_v25, %v6128_v12  ;;  %v6175_v41 = vadd.f32 %v6654_v17, %v6167_v50 }
0x1b68   : > { %v6168_v26 = vmul.f32 %v6653_v6, %v6160_v4  ;;  %7926 = vmatprep.mubr.msk.f32.mxu0 %vm550_vm3, %v6175_v41 }
0x1b69   : > { %v8260_v36 = vpop.eup %8259 }
0x1b6a   : > { %v6176_v39 = vadd.f32 %v6654_v17, %v6168_v26  ;;  %v6161_v34 = vmul.f32 %v8260_v36, %v6129_v37 }
0x1b6c   : > { %7927 = vmatmul.mubr.msk.f32.vlgmr.msra.gmra.mxu0 %vm550_vm3, %v6176_v39  ;;  %v6169_v5 = vmul.f32 %v6653_v6, %v6161_v34 }
0x1b6d   : > { %v8262_v30 = vpop.eup %8261 }
0x1b6e   : > { %v6162_v11 = vmul.f32 %v8262_v30, %v6130_v2  ;;  %v6177_v8 = vadd.f32 %v6654_v17, %v6169_v5 }
0x1b70   : > { %7929 = vmatprep.mubr.msk.f32.mxu0 %vm550_vm3, %v6177_v8  ;;  %v6170_v13 = vmul.f32 %v6653_v6, %v6162_v11 }
0x1b72   : > { %v6178_v21 = vadd.f32 %v6654_v17, %v6170_v13 }
0x1b74   : > { %7930 = vmatmul.mubr.msk.f32.gmra.mxu0 %vm550_vm3, %v6178_v21 }
0x1b7c   : > { %v5962_v47 = vpop.f32.mrf.mxu0 }
0x1b7d   : > { %v5963_v7 = vadd.f32 %v10872_v54, %v5962_v47 }
0x1b7e   : > { %v7870_v58 = vpop.f32.mrf.mxu0 }
0x1b7f   : > { %v5975_v52 = vmul.f32 0.70710677, %v5963_v7  ;;  %v5970_v28 = vmul.f32 0.5, %v5963_v7 }
0x1b81   : > { %8263 = verf.f32 %v5975_v52 }
0x1b8e   : > { %v8264_v42 = vpop.eup %8263 }
0x1b8f   : > { %v5985_v27 = vadd.f32 1.0, %v8264_v42 }
0x1b91   : > { %v5990_v45 = vmul.f32 %v5985_v27, %v5970_v28 }
0x1b93   : > { %7916 = vmatmul.mubr.f32.gmra.mxu1 %v5990_v45 }
0x1c2c   : > { %v7928_v20 = vpop.f32.mrf.mxu0 }
0x1c2d   : > { %v6272_v16 = vadd.f32 %v7928_v20, %v6655_v48 }
0x1c2e   : > { %v6266_v29 = vpop.f32.mrf.mxu0 }
0x1c2f   : > { %v6267_v54 = vadd.f32 %v6655_v48, %v6266_v29  ;;  %6287 = vst.msk [vmem:[%s361_s29 + $0x8] sm:$0xff] %vm6285_vm2, %v6272_v16 }
0x1c31   : > { %6286 = vst.msk [vmem:[%s361_s29] sm:$0xff] %vm6285_vm2, %v6267_v54 }
0x1c34   : > { %v7931_v51 = vpop.f32.mrf.mxu0 }
0x1c35   : > { %v6282_v12 = vadd.f32 %v7931_v51, %v6655_v48 }
0x1c36   : > { %v6276_v18 = vpop.f32.mrf.mxu0 }
0x1c37   : > { %v6277_v0 = vadd.f32 %v6655_v48, %v6276_v18  ;;  %6289 = vst.msk [vmem:[%s361_s29 + $0x18] sm:$0xff] %vm6285_vm2, %v6282_v12 }
0x1c39   : > { %6288 = vst.msk [vmem:[%s361_s29 + $0x10] sm:$0xff] %vm6285_vm2, %v6277_v0 }
0x1c53   : > { %v6094_v32 = vpop.f32.mrf.mxu1 }
0x1c55   : > { %v7917_v43 = vpop.f32.mrf.mxu1 }
0x1c56 PF: > { %s20_s13 = sadd.s32 1, %s8272_s13  }
0x1c57   : > { %p17_p4 = scmp.ge.s32.totalorder %s20_s13, 4  }
0x1c59   :  { %19 = sbr.rel (!%p17_p4) target bundleno = 1 (0x1), region = 96 }

</bundles_post_ra>
